<compile_context>
chip_gen: v7x
topology: tpu7x:2x2x1
jax: 0.10.0
libtpu: 0.0.40
codegen_flags: <defaults>
</compile_context>

<pallas_src>
import functools

import jax
import jax.numpy as jnp
import numpy as np
from jax.experimental import pallas as pl
from jax.experimental.pallas import tpu as pltpu

VOCAB = 16
N_EMBD = 32
N_HEAD = 4
HEAD_SIZE = N_EMBD // N_HEAD
SEQ = 8
BATCH = 2
N_OUT = 10
N_BLOCKS = 4
EPS = 1e-5  # nn.LayerNorm default


def _layernorm(x, g, b):
    mu = jnp.mean(x, axis=-1, keepdims=True)
    var = jnp.mean((x - mu) ** 2, axis=-1, keepdims=True)
    return (x - mu) * jax.lax.rsqrt(var + EPS) * g + b


# ---------------------------------------------------------------------------
# Fused Pallas kernel: embedding + 4 blocks + one fused final projection
# ---------------------------------------------------------------------------
def _fused_forward_kernel(tok_ref, emb_ref,
                          ln1g_ref, ln1b_ref, wqkv_ref, bqkv_ref,
                          wo_ref, bo_ref, ln2g_ref, ln2b_ref,
                          w1_ref, b1_ref, w2_ref, b2_ref,
                          wf_ref, bf_ref, out_ref,
                          *, n_blocks, n_head, head_size, batch, seq):
    bt = batch * seq
    c = n_head * head_size
    vocab = emb_ref.shape[0]

    # --- embedding gather as a one-hot matmul (table stays in VMEM) ---
    tok = tok_ref[...]                                             # (BT, 1) int32
    onehot = (tok == jax.lax.broadcasted_iota(jnp.int32, (bt, vocab), 1)
              ).astype(jnp.float32)                                # (BT, V)
    x = jnp.dot(onehot, emb_ref[...],
                preferred_element_type=jnp.float32)                # (BT, C)

    block_outs = []
    for blk in range(n_blocks):                                    # static unroll
        # ---------------- attention sub-layer ----------------
        h = _layernorm(x, ln1g_ref[blk], ln1b_ref[blk])            # (BT, C)
        qkv = (jnp.dot(h, wqkv_ref[blk],
                       preferred_element_type=jnp.float32)
               + bqkv_ref[blk])                                    # (BT, 3C)
        q = qkv[:, :c]
        k = qkv[:, c:2 * c]
        v = qkv[:, 2 * c:]

        # Stack every (batch, head) pair along ONE leading batch axis so the
        # whole attention is 2 batched einsums + 1 softmax (instead of a
        # 4-head Python loop with 8 tiny einsums and 4x the softmax work).
        def head_stack(m):                                         # -> (n_head*B, T, hd)
            return jnp.concatenate(
                [m[:, hd_i * head_size:(hd_i + 1) * head_size]
                 .reshape(batch, seq, head_size) for hd_i in range(n_head)],
                axis=0)

        qs, ks, vs = head_stack(q), head_stack(k), head_stack(v)
        # No 1/sqrt(head_size) scaling — matches the reference exactly.
        s = jnp.einsum("ntd,nsd->nts", qs, ks,
                       preferred_element_type=jnp.float32)         # (nh*B, T, T)
        s = s - jnp.max(s, axis=-1, keepdims=True)
        p = jnp.exp(s)
        # reciprocal of the row sum once, then multiply (no per-element div)
        p = p * (1.0 / jnp.sum(p, axis=-1, keepdims=True))
        o = jnp.einsum("nts,nsd->ntd", p, vs,
                       preferred_element_type=jnp.float32)         # (nh*B, T, hd)
        # Re-assemble (BT, C) with lanes ordered [head0 | head1 | ...].
        attn = jnp.concatenate(
            [o[hd_i * batch:(hd_i + 1) * batch].reshape(bt, head_size)
             for hd_i in range(n_head)], axis=-1)                  # (BT, C)

        # Single full-width output projection + residual.
        x = x + (jnp.dot(attn, wo_ref[blk],
                         preferred_element_type=jnp.float32) + bo_ref[blk])

        # ---------------- feed-forward sub-layer ----------------
        h2 = _layernorm(x, ln2g_ref[blk], ln2b_ref[blk])
        ff = jnp.maximum(
            jnp.dot(h2, w1_ref[blk], preferred_element_type=jnp.float32)
            + b1_ref[blk], 0.0)
        # Dropout is identity at inference time.
        ff = (jnp.dot(ff, w2_ref[blk], preferred_element_type=jnp.float32)
              + b2_ref[blk])
        x = x + ff

        block_outs.append(x)

    # ---------------- fused final projections ----------------
    # One (n_blocks*BT, C) @ (C, N_OUT) matmul and ONE contiguous store,
    # instead of 4 small matmuls + 4 masked epilogue stores.
    xs = jnp.concatenate(block_outs, axis=0)                       # (nb*BT, C)
    out_ref[...] = (jnp.dot(xs, wf_ref[...],
                            preferred_element_type=jnp.float32)
                    + bf_ref[...])                                 # (nb*BT, N_OUT)


# ---------------------------------------------------------------------------
# One-time parameter packing (NOT inside the jitted forward)
# ---------------------------------------------------------------------------
def pack_params(params):
    """Stack per-block params along a leading axis; fuse wq|wk|wv -> wqkv.

    Call once at init / checkpoint-load time and reuse the result for every
    forward() call, so the repacking never runs inside the jitted step.
    """
    blocks = params["blocks"]
    stk = lambda name: jnp.stack([b[name] for b in blocks], axis=0)
    return {
        "emb": params["emb"],
        "ln1_g": stk("ln1_g"), "ln1_b": stk("ln1_b"),
        "wqkv": jnp.concatenate([stk("wq"), stk("wk"), stk("wv")], axis=-1),
        "bqkv": jnp.concatenate([stk("bq"), stk("bk"), stk("bv")], axis=-1),
        "wo": stk("wo"), "bo": stk("bo"),
        "ln2_g": stk("ln2_g"), "ln2_b": stk("ln2_b"),
        "w1": stk("w1"), "b1": stk("b1"),
        "w2": stk("w2"), "b2": stk("b2"),
        "wf": params["wf"], "bf": params["bf"],
    }


# ---------------------------------------------------------------------------
# Wrapper
# ---------------------------------------------------------------------------
@jax.jit
def forward(tokens, packed):
    """return_all_blocks=True semantics as ONE (n_blocks, B, T, 10) array."""
    B, T = tokens.shape
    n_blocks = packed["ln1_g"].shape[0]
    C = packed["emb"].shape[1]
    head_size = C // N_HEAD
    tok2d = tokens.reshape(B * T, 1).astype(jnp.int32)

    kernel = functools.partial(
        _fused_forward_kernel, n_blocks=n_blocks, n_head=N_HEAD,
        head_size=head_size, batch=B, seq=T)

    vmem = pl.BlockSpec(memory_space=pltpu.MemorySpace.VMEM)
    args = (tok2d, packed["emb"],
            packed["ln1_g"], packed["ln1_b"], packed["wqkv"], packed["bqkv"],
            packed["wo"], packed["bo"], packed["ln2_g"], packed["ln2_b"],
            packed["w1"], packed["b1"], packed["w2"], packed["b2"],
            packed["wf"], packed["bf"])

    out = pl.pallas_call(
        kernel,
        out_shape=jax.ShapeDtypeStruct((n_blocks * B * T, N_OUT), jnp.float32),
        in_specs=[vmem] * len(args),
        out_specs=vmem,
    )(*args)

    return out.reshape(n_blocks, B, T, N_OUT)


# ---------------------------------------------------------------------------
# Deterministic parameter init (synthetic)
# ---------------------------------------------------------------------------
def _init_block(key, C):
    ks = jax.random.split(key, 12)
    s = 0.05
    n = lambda k, shape: (jax.random.normal(k, shape, jnp.float32) * s)
    return {
        "ln1_g": jnp.ones((1, C), jnp.float32),
        "ln1_b": jnp.zeros((1, C), jnp.float32),
        "wq": n(ks[0], (C, C)), "bq": n(ks[1], (1, C)),
        "wk": n(ks[2], (C, C)), "bk": n(ks[3], (1, C)),
        "wv": n(ks[4], (C, C)), "bv": n(ks[5], (1, C)),
        "wo": n(ks[6], (C, C)), "bo": n(ks[7], (1, C)),
        "ln2_g": jnp.ones((1, C), jnp.float32),
        "ln2_b": jnp.zeros((1, C), jnp.float32),
        "w1": n(ks[8], (C, 4 * C)), "b1": n(ks[9], (1, 4 * C)),
        "w2": n(ks[10], (4 * C, C)), "b2": n(ks[11], (1, C)),
    }


def init_params(key):
    keys = jax.random.split(key, 7)
    return {
        "emb": jax.random.normal(keys[0], (VOCAB, N_EMBD), jnp.float32) * 0.05,
        "blocks": [_init_block(keys[i + 1], N_EMBD) for i in range(N_BLOCKS)],
        "wf": jax.random.normal(keys[5], (N_EMBD, N_OUT), jnp.float32) * 0.05,
        "bf": jax.random.normal(keys[6], (1, N_OUT), jnp.float32) * 0.05,
    }


# ---------------------------------------------------------------------------
# Pure-JAX reference (same math) for verification
# ---------------------------------------------------------------------------
def _ref_block(x, p):
    h = _layernorm(x, p["ln1_g"][0], p["ln1_b"][0])
    q = h @ p["wq"] + p["bq"][0]
    k = h @ p["wk"] + p["bk"][0]
    v = h @ p["wv"] + p["bv"][0]
    heads = []
    for hd in range(N_HEAD):
        sl = slice(hd * HEAD_SIZE, (hd + 1) * HEAD_SIZE)
        s = jnp.einsum("btd,bsd->bts", q[..., sl], k[..., sl])
        w = jax.nn.softmax(s, axis=-1)
        heads.append(jnp.einsum("bts,bsd->btd", w, v[..., sl]))
    attn = jnp.concatenate(heads, axis=-1) @ p["wo"] + p["bo"][0]
    x = x + attn
    h2 = _layernorm(x, p["ln2_g"][0], p["ln2_b"][0])
    ff = jax.nn.relu(h2 @ p["w1"] + p["b1"][0]) @ p["w2"] + p["b2"][0]
    return x + ff


def ref_forward(tokens, params):
    x = jnp.take(params["emb"], tokens, axis=0)
    outs = []
    for p in params["blocks"]:
        x = _ref_block(x, p)
        outs.append(x @ params["wf"] + params["bf"][0])
    return outs


# ---------------------------------------------------------------------------
if __name__ == "__main__":
    key = jax.random.PRNGKey(0)
    pkey, tkey = jax.random.split(key)
    params = init_params(pkey)
    packed = pack_params(params)          # one-time packing, outside the jit
    tokens = jax.random.randint(tkey, (BATCH, SEQ), 0, VOCAB, dtype=jnp.int32)

    out = forward(tokens, packed)         # (n_blocks, B, T, N_OUT)
    out = jax.block_until_ready(out)

    refs = ref_forward(tokens, params)
    assert out.shape == (N_BLOCKS, BATCH, SEQ, N_OUT)
    for i, r in enumerate(refs):
        np.testing.assert_allclose(np.asarray(out[i]), np.asarray(r),
                                   rtol=1e-4, atol=1e-4)

    print("KERNEL_OK")
</pallas_src>

<mosaic_0001>
module attributes {stable_mosaic.version = 11 : i64} {
  func.func @_fused_forward_kernel(%arg0: memref<16x1xi32, #tpu.memory_space<vmem>>, %arg1: memref<16x32xf32, #tpu.memory_space<vmem>>, %arg2: memref<4x1x32xf32, #tpu.memory_space<vmem>>, %arg3: memref<4x1x32xf32, #tpu.memory_space<vmem>>, %arg4: memref<4x32x96xf32, #tpu.memory_space<vmem>>, %arg5: memref<4x1x96xf32, #tpu.memory_space<vmem>>, %arg6: memref<4x32x32xf32, #tpu.memory_space<vmem>>, %arg7: memref<4x1x32xf32, #tpu.memory_space<vmem>>, %arg8: memref<4x1x32xf32, #tpu.memory_space<vmem>>, %arg9: memref<4x1x32xf32, #tpu.memory_space<vmem>>, %arg10: memref<4x32x128xf32, #tpu.memory_space<vmem>>, %arg11: memref<4x1x128xf32, #tpu.memory_space<vmem>>, %arg12: memref<4x128x32xf32, #tpu.memory_space<vmem>>, %arg13: memref<4x1x32xf32, #tpu.memory_space<vmem>>, %arg14: memref<32x10xf32, #tpu.memory_space<vmem>>, %arg15: memref<1x10xf32, #tpu.memory_space<vmem>>, %arg16: memref<64x10xf32, #tpu.memory_space<vmem>>) attributes {dimension_semantics = [], scalar_prefetch = 0 : i64, scratch_operands = 0 : i64, tpu.core_type = #tpu.core_type<tc>} {
    %c0 = arith.constant 0 : index
    %c0_0 = arith.constant 0 : index
    %0 = vector.load %arg0[%c0, %c0_0] : memref<16x1xi32, #tpu.memory_space<vmem>>, vector<16x1xi32>
    %1 = tpu.iota {dimensions = array<i32: 1>} : vector<16x16xi32>
    %2 = vector.broadcast %0 : vector<16x1xi32> to vector<16x16xi32>
    %3 = arith.cmpi eq, %2, %1 : vector<16x16xi32>
    %4 = arith.extui %3 : vector<16x16xi1> to vector<16x16xi32>
    %5 = arith.sitofp %4 : vector<16x16xi32> to vector<16x16xf32>
    %c0_1 = arith.constant 0 : index
    %c0_2 = arith.constant 0 : index
    %6 = vector.load %arg1[%c0_1, %c0_2] : memref<16x32xf32, #tpu.memory_space<vmem>>, vector<16x32xf32>
    %cst = arith.constant dense<0.000000e+00> : vector<16x32xf32>
    %7 = tpu.matmul %5, %6, %cst {dimension_numbers = #tpu.dot_dimension_numbers<[1], [0], [0], [1], [0, 0, 1, 1], [], []>} : vector<16x16xf32>, vector<16x32xf32>, vector<16x32xf32> -> vector<16x32xf32>
    %c0_3 = arith.constant 0 : index
    %c0_4 = arith.constant 0 : index
    %c0_5 = arith.constant 0 : index
    %8 = vector.load %arg2[%c0_3, %c0_4, %c0_5] : memref<4x1x32xf32, #tpu.memory_space<vmem>>, vector<1x1x32xf32>
    %9 = vector.shape_cast %8 : vector<1x1x32xf32> to vector<1x32xf32>
    %c0_6 = arith.constant 0 : index
    %c0_7 = arith.constant 0 : index
    %c0_8 = arith.constant 0 : index
    %10 = vector.load %arg3[%c0_6, %c0_7, %c0_8] : memref<4x1x32xf32, #tpu.memory_space<vmem>>, vector<1x1x32xf32>
    %11 = vector.shape_cast %10 : vector<1x1x32xf32> to vector<1x32xf32>
    %cst_9 = arith.constant dense<0.000000e+00> : vector<16xf32>
    %12 = vector.multi_reduction <add>, %7, %cst_9 [1] : vector<16x32xf32> to vector<16xf32>
    %13 = vector.shape_cast %12 : vector<16xf32> to vector<16x1xf32>
    %cst_10 = arith.constant 3.200000e+01 : f32
    %14 = vector.broadcast %cst_10 : f32 to vector<16x1xf32>
    %15 = arith.divf %13, %14 : vector<16x1xf32>
    %16 = vector.broadcast %15 : vector<16x1xf32> to vector<16x32xf32>
    %17 = arith.subf %7, %16 : vector<16x32xf32>
    %18 = arith.mulf %17, %17 : vector<16x32xf32>
    %cst_11 = arith.constant dense<0.000000e+00> : vector<16xf32>
    %19 = vector.multi_reduction <add>, %18, %cst_11 [1] : vector<16x32xf32> to vector<16xf32>
    %20 = vector.shape_cast %19 : vector<16xf32> to vector<16x1xf32>
    %cst_12 = arith.constant 3.200000e+01 : f32
    %21 = vector.broadcast %cst_12 : f32 to vector<16x1xf32>
    %22 = arith.divf %20, %21 : vector<16x1xf32>
    %23 = vector.broadcast %15 : vector<16x1xf32> to vector<16x32xf32>
    %24 = arith.subf %7, %23 : vector<16x32xf32>
    %cst_13 = arith.constant 9.99999974E-6 : f32
    %25 = vector.broadcast %cst_13 : f32 to vector<16x1xf32>
    %26 = arith.addf %22, %25 : vector<16x1xf32>
    %27 = math.rsqrt %26 : vector<16x1xf32>
    %28 = vector.broadcast %27 : vector<16x1xf32> to vector<16x32xf32>
    %29 = arith.mulf %24, %28 : vector<16x32xf32>
    %30 = vector.broadcast %9 : vector<1x32xf32> to vector<16x32xf32>
    %31 = arith.mulf %29, %30 : vector<16x32xf32>
    %32 = vector.broadcast %11 : vector<1x32xf32> to vector<16x32xf32>
    %33 = arith.addf %31, %32 : vector<16x32xf32>
    %c0_14 = arith.constant 0 : index
    %c0_15 = arith.constant 0 : index
    %c0_16 = arith.constant 0 : index
    %34 = vector.load %arg4[%c0_14, %c0_15, %c0_16] : memref<4x32x96xf32, #tpu.memory_space<vmem>>, vector<1x32x96xf32>
    %35 = vector.shape_cast %34 : vector<1x32x96xf32> to vector<32x96xf32>
    %cst_17 = arith.constant dense<0.000000e+00> : vector<16x96xf32>
    %36 = tpu.matmul %33, %35, %cst_17 {dimension_numbers = #tpu.dot_dimension_numbers<[1], [0], [0], [1], [0, 0, 1, 1], [], []>} : vector<16x32xf32>, vector<32x96xf32>, vector<16x96xf32> -> vector<16x96xf32>
    %c0_18 = arith.constant 0 : index
    %c0_19 = arith.constant 0 : index
    %c0_20 = arith.constant 0 : index
    %37 = vector.load %arg5[%c0_18, %c0_19, %c0_20] : memref<4x1x96xf32, #tpu.memory_space<vmem>>, vector<1x1x96xf32>
    %38 = vector.shape_cast %37 : vector<1x1x96xf32> to vector<1x96xf32>
    %39 = vector.broadcast %38 : vector<1x96xf32> to vector<16x96xf32>
    %40 = arith.addf %36, %39 : vector<16x96xf32>
    %41 = vector.extract_strided_slice %40 {offsets = [0, 0], sizes = [16, 32], strides = [1, 1]} : vector<16x96xf32> to vector<16x32xf32>
    %42 = vector.extract_strided_slice %40 {offsets = [0, 32], sizes = [16, 32], strides = [1, 1]} : vector<16x96xf32> to vector<16x32xf32>
    %43 = vector.extract_strided_slice %40 {offsets = [0, 64], sizes = [16, 32], strides = [1, 1]} : vector<16x96xf32> to vector<16x32xf32>
    %44 = vector.extract_strided_slice %41 {offsets = [0, 0], sizes = [16, 8], strides = [1, 1]} : vector<16x32xf32> to vector<16x8xf32>
    %45 = vector.shape_cast %44 : vector<16x8xf32> to vector<2x8x8xf32>
    %46 = vector.extract_strided_slice %41 {offsets = [0, 8], sizes = [16, 8], strides = [1, 1]} : vector<16x32xf32> to vector<16x8xf32>
    %47 = vector.shape_cast %46 : vector<16x8xf32> to vector<2x8x8xf32>
    %48 = vector.extract_strided_slice %41 {offsets = [0, 16], sizes = [16, 8], strides = [1, 1]} : vector<16x32xf32> to vector<16x8xf32>
    %49 = vector.shape_cast %48 : vector<16x8xf32> to vector<2x8x8xf32>
    %50 = vector.extract_strided_slice %41 {offsets = [0, 24], sizes = [16, 8], strides = [1, 1]} : vector<16x32xf32> to vector<16x8xf32>
    %51 = vector.shape_cast %50 : vector<16x8xf32> to vector<2x8x8xf32>
    %52 = tpu.concatenate %45, %47, %49, %51 in 0 : vector<2x8x8xf32>, vector<2x8x8xf32>, vector<2x8x8xf32>, vector<2x8x8xf32> -> vector<8x8x8xf32>
    %53 = vector.extract_strided_slice %42 {offsets = [0, 0], sizes = [16, 8], strides = [1, 1]} : vector<16x32xf32> to vector<16x8xf32>
    %54 = vector.shape_cast %53 : vector<16x8xf32> to vector<2x8x8xf32>
    %55 = vector.extract_strided_slice %42 {offsets = [0, 8], sizes = [16, 8], strides = [1, 1]} : vector<16x32xf32> to vector<16x8xf32>
    %56 = vector.shape_cast %55 : vector<16x8xf32> to vector<2x8x8xf32>
    %57 = vector.extract_strided_slice %42 {offsets = [0, 16], sizes = [16, 8], strides = [1, 1]} : vector<16x32xf32> to vector<16x8xf32>
    %58 = vector.shape_cast %57 : vector<16x8xf32> to vector<2x8x8xf32>
    %59 = vector.extract_strided_slice %42 {offsets = [0, 24], sizes = [16, 8], strides = [1, 1]} : vector<16x32xf32> to vector<16x8xf32>
    %60 = vector.shape_cast %59 : vector<16x8xf32> to vector<2x8x8xf32>
    %61 = tpu.concatenate %54, %56, %58, %60 in 0 : vector<2x8x8xf32>, vector<2x8x8xf32>, vector<2x8x8xf32>, vector<2x8x8xf32> -> vector<8x8x8xf32>
    %62 = vector.extract_strided_slice %43 {offsets = [0, 0], sizes = [16, 8], strides = [1, 1]} : vector<16x32xf32> to vector<16x8xf32>
    %63 = vector.shape_cast %62 : vector<16x8xf32> to vector<2x8x8xf32>
    %64 = vector.extract_strided_slice %43 {offsets = [0, 8], sizes = [16, 8], strides = [1, 1]} : vector<16x32xf32> to vector<16x8xf32>
    %65 = vector.shape_cast %64 : vector<16x8xf32> to vector<2x8x8xf32>
    %66 = vector.extract_strided_slice %43 {offsets = [0, 16], sizes = [16, 8], strides = [1, 1]} : vector<16x32xf32> to vector<16x8xf32>
    %67 = vector.shape_cast %66 : vector<16x8xf32> to vector<2x8x8xf32>
    %68 = vector.extract_strided_slice %43 {offsets = [0, 24], sizes = [16, 8], strides = [1, 1]} : vector<16x32xf32> to vector<16x8xf32>
    %69 = vector.shape_cast %68 : vector<16x8xf32> to vector<2x8x8xf32>
    %70 = tpu.concatenate %63, %65, %67, %69 in 0 : vector<2x8x8xf32>, vector<2x8x8xf32>, vector<2x8x8xf32>, vector<2x8x8xf32> -> vector<8x8x8xf32>
    "tpu.trace_start"() <{level = 10 : i32, message = "ntd,nsd->nts"}> : () -> ()
    %cst_21 = arith.constant dense<0.000000e+00> : vector<8x8x8xf32>
    %71 = tpu.matmul %52, %61, %cst_21 {dimension_numbers = #tpu.dot_dimension_numbers<[2], [2], [1], [1], [0, 0, 0, 1, 1, 1], [0], [0]>} : vector<8x8x8xf32>, vector<8x8x8xf32>, vector<8x8x8xf32> -> vector<8x8x8xf32>
    "tpu.trace_stop"() : () -> ()
    %cst_22 = arith.constant dense<0xFF800000> : vector<8x8xf32>
    %72 = vector.multi_reduction <maximumf>, %71, %cst_22 [2] : vector<8x8x8xf32> to vector<8x8xf32>
    %73 = vector.shape_cast %72 : vector<8x8xf32> to vector<8x8x1xf32>
    %74 = vector.broadcast %73 : vector<8x8x1xf32> to vector<8x8x8xf32>
    %75 = arith.subf %71, %74 : vector<8x8x8xf32>
    %76 = math.exp %75 : vector<8x8x8xf32>
    %cst_23 = arith.constant dense<0.000000e+00> : vector<8x8xf32>
    %77 = vector.multi_reduction <add>, %76, %cst_23 [2] : vector<8x8x8xf32> to vector<8x8xf32>
    %78 = vector.shape_cast %77 : vector<8x8xf32> to vector<8x8x1xf32>
    %cst_24 = arith.constant 1.000000e+00 : f32
    %79 = vector.broadcast %cst_24 : f32 to vector<8x8x1xf32>
    %80 = arith.divf %79, %78 : vector<8x8x1xf32>
    %81 = vector.broadcast %80 : vector<8x8x1xf32> to vector<8x8x8xf32>
    %82 = arith.mulf %76, %81 : vector<8x8x8xf32>
    "tpu.trace_start"() <{level = 10 : i32, message = "nts,nsd->ntd"}> : () -> ()
    %cst_25 = arith.constant dense<0.000000e+00> : vector<8x8x8xf32>
    %83 = tpu.matmul %82, %70, %cst_25 {dimension_numbers = #tpu.dot_dimension_numbers<[2], [1], [1], [2], [0, 0, 0, 1, 1, 2], [0], [0]>} : vector<8x8x8xf32>, vector<8x8x8xf32>, vector<8x8x8xf32> -> vector<8x8x8xf32>
    "tpu.trace_stop"() : () -> ()
    %84 = vector.extract_strided_slice %83 {offsets = [0, 0, 0], sizes = [2, 8, 8], strides = [1, 1, 1]} : vector<8x8x8xf32> to vector<2x8x8xf32>
    %85 = vector.shape_cast %84 : vector<2x8x8xf32> to vector<16x8xf32>
    %86 = vector.extract_strided_slice %83 {offsets = [2, 0, 0], sizes = [2, 8, 8], strides = [1, 1, 1]} : vector<8x8x8xf32> to vector<2x8x8xf32>
    %87 = vector.shape_cast %86 : vector<2x8x8xf32> to vector<16x8xf32>
    %88 = vector.extract_strided_slice %83 {offsets = [4, 0, 0], sizes = [2, 8, 8], strides = [1, 1, 1]} : vector<8x8x8xf32> to vector<2x8x8xf32>
    %89 = vector.shape_cast %88 : vector<2x8x8xf32> to vector<16x8xf32>
    %90 = vector.extract_strided_slice %83 {offsets = [6, 0, 0], sizes = [2, 8, 8], strides = [1, 1, 1]} : vector<8x8x8xf32> to vector<2x8x8xf32>
    %91 = vector.shape_cast %90 : vector<2x8x8xf32> to vector<16x8xf32>
    %92 = tpu.concatenate %85, %87, %89, %91 in 1 : vector<16x8xf32>, vector<16x8xf32>, vector<16x8xf32>, vector<16x8xf32> -> vector<16x32xf32>
    %c0_26 = arith.constant 0 : index
    %c0_27 = arith.constant 0 : index
    %c0_28 = arith.constant 0 : index
    %93 = vector.load %arg6[%c0_26, %c0_27, %c0_28] : memref<4x32x32xf32, #tpu.memory_space<vmem>>, vector<1x32x32xf32>
    %94 = vector.shape_cast %93 : vector<1x32x32xf32> to vector<32x32xf32>
    %cst_29 = arith.constant dense<0.000000e+00> : vector<16x32xf32>
    %95 = tpu.matmul %92, %94, %cst_29 {dimension_numbers = #tpu.dot_dimension_numbers<[1], [0], [0], [1], [0, 0, 1, 1], [], []>} : vector<16x32xf32>, vector<32x32xf32>, vector<16x32xf32> -> vector<16x32xf32>
    %c0_30 = arith.constant 0 : index
    %c0_31 = arith.constant 0 : index
    %c0_32 = arith.constant 0 : index
    %96 = vector.load %arg7[%c0_30, %c0_31, %c0_32] : memref<4x1x32xf32, #tpu.memory_space<vmem>>, vector<1x1x32xf32>
    %97 = vector.shape_cast %96 : vector<1x1x32xf32> to vector<1x32xf32>
    %98 = vector.broadcast %97 : vector<1x32xf32> to vector<16x32xf32>
    %99 = arith.addf %95, %98 : vector<16x32xf32>
    %100 = arith.addf %7, %99 : vector<16x32xf32>
    %c0_33 = arith.constant 0 : index
    %c0_34 = arith.constant 0 : index
    %c0_35 = arith.constant 0 : index
    %101 = vector.load %arg8[%c0_33, %c0_34, %c0_35] : memref<4x1x32xf32, #tpu.memory_space<vmem>>, vector<1x1x32xf32>
    %102 = vector.shape_cast %101 : vector<1x1x32xf32> to vector<1x32xf32>
    %c0_36 = arith.constant 0 : index
    %c0_37 = arith.constant 0 : index
    %c0_38 = arith.constant 0 : index
    %103 = vector.load %arg9[%c0_36, %c0_37, %c0_38] : memref<4x1x32xf32, #tpu.memory_space<vmem>>, vector<1x1x32xf32>
    %104 = vector.shape_cast %103 : vector<1x1x32xf32> to vector<1x32xf32>
    %cst_39 = arith.constant dense<0.000000e+00> : vector<16xf32>
    %105 = vector.multi_reduction <add>, %100, %cst_39 [1] : vector<16x32xf32> to vector<16xf32>
    %106 = vector.shape_cast %105 : vector<16xf32> to vector<16x1xf32>
    %cst_40 = arith.constant 3.200000e+01 : f32
    %107 = vector.broadcast %cst_40 : f32 to vector<16x1xf32>
    %108 = arith.divf %106, %107 : vector<16x1xf32>
    %109 = vector.broadcast %108 : vector<16x1xf32> to vector<16x32xf32>
    %110 = arith.subf %100, %109 : vector<16x32xf32>
    %111 = arith.mulf %110, %110 : vector<16x32xf32>
    %cst_41 = arith.constant dense<0.000000e+00> : vector<16xf32>
    %112 = vector.multi_reduction <add>, %111, %cst_41 [1] : vector<16x32xf32> to vector<16xf32>
    %113 = vector.shape_cast %112 : vector<16xf32> to vector<16x1xf32>
    %cst_42 = arith.constant 3.200000e+01 : f32
    %114 = vector.broadcast %cst_42 : f32 to vector<16x1xf32>
    %115 = arith.divf %113, %114 : vector<16x1xf32>
    %116 = vector.broadcast %108 : vector<16x1xf32> to vector<16x32xf32>
    %117 = arith.subf %100, %116 : vector<16x32xf32>
    %cst_43 = arith.constant 9.99999974E-6 : f32
    %118 = vector.broadcast %cst_43 : f32 to vector<16x1xf32>
    %119 = arith.addf %115, %118 : vector<16x1xf32>
    %120 = math.rsqrt %119 : vector<16x1xf32>
    %121 = vector.broadcast %120 : vector<16x1xf32> to vector<16x32xf32>
    %122 = arith.mulf %117, %121 : vector<16x32xf32>
    %123 = vector.broadcast %102 : vector<1x32xf32> to vector<16x32xf32>
    %124 = arith.mulf %122, %123 : vector<16x32xf32>
    %125 = vector.broadcast %104 : vector<1x32xf32> to vector<16x32xf32>
    %126 = arith.addf %124, %125 : vector<16x32xf32>
    %c0_44 = arith.constant 0 : index
    %c0_45 = arith.constant 0 : index
    %c0_46 = arith.constant 0 : index
    %127 = vector.load %arg10[%c0_44, %c0_45, %c0_46] : memref<4x32x128xf32, #tpu.memory_space<vmem>>, vector<1x32x128xf32>
    %128 = vector.shape_cast %127 : vector<1x32x128xf32> to vector<32x128xf32>
    %cst_47 = arith.constant dense<0.000000e+00> : vector<16x128xf32>
    %129 = tpu.matmul %126, %128, %cst_47 {dimension_numbers = #tpu.dot_dimension_numbers<[1], [0], [0], [1], [0, 0, 1, 1], [], []>} : vector<16x32xf32>, vector<32x128xf32>, vector<16x128xf32> -> vector<16x128xf32>
    %c0_48 = arith.constant 0 : index
    %c0_49 = arith.constant 0 : index
    %c0_50 = arith.constant 0 : index
    %130 = vector.load %arg11[%c0_48, %c0_49, %c0_50] : memref<4x1x128xf32, #tpu.memory_space<vmem>>, vector<1x1x128xf32>
    %131 = vector.shape_cast %130 : vector<1x1x128xf32> to vector<1x128xf32>
    %132 = vector.broadcast %131 : vector<1x128xf32> to vector<16x128xf32>
    %133 = arith.addf %129, %132 : vector<16x128xf32>
    %cst_51 = arith.constant 0.000000e+00 : f32
    %134 = vector.broadcast %cst_51 : f32 to vector<16x128xf32>
    %135 = arith.maximumf %133, %134 : vector<16x128xf32>
    %c0_52 = arith.constant 0 : index
    %c0_53 = arith.constant 0 : index
    %c0_54 = arith.constant 0 : index
    %136 = vector.load %arg12[%c0_52, %c0_53, %c0_54] : memref<4x128x32xf32, #tpu.memory_space<vmem>>, vector<1x128x32xf32>
    %137 = vector.shape_cast %136 : vector<1x128x32xf32> to vector<128x32xf32>
    %cst_55 = arith.constant dense<0.000000e+00> : vector<16x32xf32>
    %138 = tpu.matmul %135, %137, %cst_55 {dimension_numbers = #tpu.dot_dimension_numbers<[1], [0], [0], [1], [0, 0, 1, 1], [], []>} : vector<16x128xf32>, vector<128x32xf32>, vector<16x32xf32> -> vector<16x32xf32>
    %c0_56 = arith.constant 0 : index
    %c0_57 = arith.constant 0 : index
    %c0_58 = arith.constant 0 : index
    %139 = vector.load %arg13[%c0_56, %c0_57, %c0_58] : memref<4x1x32xf32, #tpu.memory_space<vmem>>, vector<1x1x32xf32>
    %140 = vector.shape_cast %139 : vector<1x1x32xf32> to vector<1x32xf32>
    %141 = vector.broadcast %140 : vector<1x32xf32> to vector<16x32xf32>
    %142 = arith.addf %138, %141 : vector<16x32xf32>
    %143 = arith.addf %100, %142 : vector<16x32xf32>
    %c1 = arith.constant 1 : index
    %c0_59 = arith.constant 0 : index
    %c0_60 = arith.constant 0 : index
    %144 = vector.load %arg2[%c1, %c0_59, %c0_60] : memref<4x1x32xf32, #tpu.memory_space<vmem>>, vector<1x1x32xf32>
    %145 = vector.shape_cast %144 : vector<1x1x32xf32> to vector<1x32xf32>
    %c1_61 = arith.constant 1 : index
    %c0_62 = arith.constant 0 : index
    %c0_63 = arith.constant 0 : index
    %146 = vector.load %arg3[%c1_61, %c0_62, %c0_63] : memref<4x1x32xf32, #tpu.memory_space<vmem>>, vector<1x1x32xf32>
    %147 = vector.shape_cast %146 : vector<1x1x32xf32> to vector<1x32xf32>
    %cst_64 = arith.constant dense<0.000000e+00> : vector<16xf32>
    %148 = vector.multi_reduction <add>, %143, %cst_64 [1] : vector<16x32xf32> to vector<16xf32>
    %149 = vector.shape_cast %148 : vector<16xf32> to vector<16x1xf32>
    %cst_65 = arith.constant 3.200000e+01 : f32
    %150 = vector.broadcast %cst_65 : f32 to vector<16x1xf32>
    %151 = arith.divf %149, %150 : vector<16x1xf32>
    %152 = vector.broadcast %151 : vector<16x1xf32> to vector<16x32xf32>
    %153 = arith.subf %143, %152 : vector<16x32xf32>
    %154 = arith.mulf %153, %153 : vector<16x32xf32>
    %cst_66 = arith.constant dense<0.000000e+00> : vector<16xf32>
    %155 = vector.multi_reduction <add>, %154, %cst_66 [1] : vector<16x32xf32> to vector<16xf32>
    %156 = vector.shape_cast %155 : vector<16xf32> to vector<16x1xf32>
    %cst_67 = arith.constant 3.200000e+01 : f32
    %157 = vector.broadcast %cst_67 : f32 to vector<16x1xf32>
    %158 = arith.divf %156, %157 : vector<16x1xf32>
    %159 = vector.broadcast %151 : vector<16x1xf32> to vector<16x32xf32>
    %160 = arith.subf %143, %159 : vector<16x32xf32>
    %cst_68 = arith.constant 9.99999974E-6 : f32
    %161 = vector.broadcast %cst_68 : f32 to vector<16x1xf32>
    %162 = arith.addf %158, %161 : vector<16x1xf32>
    %163 = math.rsqrt %162 : vector<16x1xf32>
    %164 = vector.broadcast %163 : vector<16x1xf32> to vector<16x32xf32>
    %165 = arith.mulf %160, %164 : vector<16x32xf32>
    %166 = vector.broadcast %145 : vector<1x32xf32> to vector<16x32xf32>
    %167 = arith.mulf %165, %166 : vector<16x32xf32>
    %168 = vector.broadcast %147 : vector<1x32xf32> to vector<16x32xf32>
    %169 = arith.addf %167, %168 : vector<16x32xf32>
    %c1_69 = arith.constant 1 : index
    %c0_70 = arith.constant 0 : index
    %c0_71 = arith.constant 0 : index
    %170 = vector.load %arg4[%c1_69, %c0_70, %c0_71] : memref<4x32x96xf32, #tpu.memory_space<vmem>>, vector<1x32x96xf32>
    %171 = vector.shape_cast %170 : vector<1x32x96xf32> to vector<32x96xf32>
    %cst_72 = arith.constant dense<0.000000e+00> : vector<16x96xf32>
    %172 = tpu.matmul %169, %171, %cst_72 {dimension_numbers = #tpu.dot_dimension_numbers<[1], [0], [0], [1], [0, 0, 1, 1], [], []>} : vector<16x32xf32>, vector<32x96xf32>, vector<16x96xf32> -> vector<16x96xf32>
    %c1_73 = arith.constant 1 : index
    %c0_74 = arith.constant 0 : index
    %c0_75 = arith.constant 0 : index
    %173 = vector.load %arg5[%c1_73, %c0_74, %c0_75] : memref<4x1x96xf32, #tpu.memory_space<vmem>>, vector<1x1x96xf32>
    %174 = vector.shape_cast %173 : vector<1x1x96xf32> to vector<1x96xf32>
    %175 = vector.broadcast %174 : vector<1x96xf32> to vector<16x96xf32>
    %176 = arith.addf %172, %175 : vector<16x96xf32>
    %177 = vector.extract_strided_slice %176 {offsets = [0, 0], sizes = [16, 32], strides = [1, 1]} : vector<16x96xf32> to vector<16x32xf32>
    %178 = vector.extract_strided_slice %176 {offsets = [0, 32], sizes = [16, 32], strides = [1, 1]} : vector<16x96xf32> to vector<16x32xf32>
    %179 = vector.extract_strided_slice %176 {offsets = [0, 64], sizes = [16, 32], strides = [1, 1]} : vector<16x96xf32> to vector<16x32xf32>
    %180 = vector.extract_strided_slice %177 {offsets = [0, 0], sizes = [16, 8], strides = [1, 1]} : vector<16x32xf32> to vector<16x8xf32>
    %181 = vector.shape_cast %180 : vector<16x8xf32> to vector<2x8x8xf32>
    %182 = vector.extract_strided_slice %177 {offsets = [0, 8], sizes = [16, 8], strides = [1, 1]} : vector<16x32xf32> to vector<16x8xf32>
    %183 = vector.shape_cast %182 : vector<16x8xf32> to vector<2x8x8xf32>
    %184 = vector.extract_strided_slice %177 {offsets = [0, 16], sizes = [16, 8], strides = [1, 1]} : vector<16x32xf32> to vector<16x8xf32>
    %185 = vector.shape_cast %184 : vector<16x8xf32> to vector<2x8x8xf32>
    %186 = vector.extract_strided_slice %177 {offsets = [0, 24], sizes = [16, 8], strides = [1, 1]} : vector<16x32xf32> to vector<16x8xf32>
    %187 = vector.shape_cast %186 : vector<16x8xf32> to vector<2x8x8xf32>
    %188 = tpu.concatenate %181, %183, %185, %187 in 0 : vector<2x8x8xf32>, vector<2x8x8xf32>, vector<2x8x8xf32>, vector<2x8x8xf32> -> vector<8x8x8xf32>
    %189 = vector.extract_strided_slice %178 {offsets = [0, 0], sizes = [16, 8], strides = [1, 1]} : vector<16x32xf32> to vector<16x8xf32>
    %190 = vector.shape_cast %189 : vector<16x8xf32> to vector<2x8x8xf32>
    %191 = vector.extract_strided_slice %178 {offsets = [0, 8], sizes = [16, 8], strides = [1, 1]} : vector<16x32xf32> to vector<16x8xf32>
    %192 = vector.shape_cast %191 : vector<16x8xf32> to vector<2x8x8xf32>
    %193 = vector.extract_strided_slice %178 {offsets = [0, 16], sizes = [16, 8], strides = [1, 1]} : vector<16x32xf32> to vector<16x8xf32>
    %194 = vector.shape_cast %193 : vector<16x8xf32> to vector<2x8x8xf32>
    %195 = vector.extract_strided_slice %178 {offsets = [0, 24], sizes = [16, 8], strides = [1, 1]} : vector<16x32xf32> to vector<16x8xf32>
    %196 = vector.shape_cast %195 : vector<16x8xf32> to vector<2x8x8xf32>
    %197 = tpu.concatenate %190, %192, %194, %196 in 0 : vector<2x8x8xf32>, vector<2x8x8xf32>, vector<2x8x8xf32>, vector<2x8x8xf32> -> vector<8x8x8xf32>
    %198 = vector.extract_strided_slice %179 {offsets = [0, 0], sizes = [16, 8], strides = [1, 1]} : vector<16x32xf32> to vector<16x8xf32>
    %199 = vector.shape_cast %198 : vector<16x8xf32> to vector<2x8x8xf32>
    %200 = vector.extract_strided_slice %179 {offsets = [0, 8], sizes = [16, 8], strides = [1, 1]} : vector<16x32xf32> to vector<16x8xf32>
    %201 = vector.shape_cast %200 : vector<16x8xf32> to vector<2x8x8xf32>
    %202 = vector.extract_strided_slice %179 {offsets = [0, 16], sizes = [16, 8], strides = [1, 1]} : vector<16x32xf32> to vector<16x8xf32>
    %203 = vector.shape_cast %202 : vector<16x8xf32> to vector<2x8x8xf32>
    %204 = vector.extract_strided_slice %179 {offsets = [0, 24], sizes = [16, 8], strides = [1, 1]} : vector<16x32xf32> to vector<16x8xf32>
    %205 = vector.shape_cast %204 : vector<16x8xf32> to vector<2x8x8xf32>
    %206 = tpu.concatenate %199, %201, %203, %205 in 0 : vector<2x8x8xf32>, vector<2x8x8xf32>, vector<2x8x8xf32>, vector<2x8x8xf32> -> vector<8x8x8xf32>
    "tpu.trace_start"() <{level = 10 : i32, message = "ntd,nsd->nts"}> : () -> ()
    %cst_76 = arith.constant dense<0.000000e+00> : vector<8x8x8xf32>
    %207 = tpu.matmul %188, %197, %cst_76 {dimension_numbers = #tpu.dot_dimension_numbers<[2], [2], [1], [1], [0, 0, 0, 1, 1, 1], [0], [0]>} : vector<8x8x8xf32>, vector<8x8x8xf32>, vector<8x8x8xf32> -> vector<8x8x8xf32>
    "tpu.trace_stop"() : () -> ()
    %cst_77 = arith.constant dense<0xFF800000> : vector<8x8xf32>
    %208 = vector.multi_reduction <maximumf>, %207, %cst_77 [2] : vector<8x8x8xf32> to vector<8x8xf32>
    %209 = vector.shape_cast %208 : vector<8x8xf32> to vector<8x8x1xf32>
    %210 = vector.broadcast %209 : vector<8x8x1xf32> to vector<8x8x8xf32>
    %211 = arith.subf %207, %210 : vector<8x8x8xf32>
    %212 = math.exp %211 : vector<8x8x8xf32>
    %cst_78 = arith.constant dense<0.000000e+00> : vector<8x8xf32>
    %213 = vector.multi_reduction <add>, %212, %cst_78 [2] : vector<8x8x8xf32> to vector<8x8xf32>
    %214 = vector.shape_cast %213 : vector<8x8xf32> to vector<8x8x1xf32>
    %cst_79 = arith.constant 1.000000e+00 : f32
    %215 = vector.broadcast %cst_79 : f32 to vector<8x8x1xf32>
    %216 = arith.divf %215, %214 : vector<8x8x1xf32>
    %217 = vector.broadcast %216 : vector<8x8x1xf32> to vector<8x8x8xf32>
    %218 = arith.mulf %212, %217 : vector<8x8x8xf32>
    "tpu.trace_start"() <{level = 10 : i32, message = "nts,nsd->ntd"}> : () -> ()
    %cst_80 = arith.constant dense<0.000000e+00> : vector<8x8x8xf32>
    %219 = tpu.matmul %218, %206, %cst_80 {dimension_numbers = #tpu.dot_dimension_numbers<[2], [1], [1], [2], [0, 0, 0, 1, 1, 2], [0], [0]>} : vector<8x8x8xf32>, vector<8x8x8xf32>, vector<8x8x8xf32> -> vector<8x8x8xf32>
    "tpu.trace_stop"() : () -> ()
    %220 = vector.extract_strided_slice %219 {offsets = [0, 0, 0], sizes = [2, 8, 8], strides = [1, 1, 1]} : vector<8x8x8xf32> to vector<2x8x8xf32>
    %221 = vector.shape_cast %220 : vector<2x8x8xf32> to vector<16x8xf32>
    %222 = vector.extract_strided_slice %219 {offsets = [2, 0, 0], sizes = [2, 8, 8], strides = [1, 1, 1]} : vector<8x8x8xf32> to vector<2x8x8xf32>
    %223 = vector.shape_cast %222 : vector<2x8x8xf32> to vector<16x8xf32>
    %224 = vector.extract_strided_slice %219 {offsets = [4, 0, 0], sizes = [2, 8, 8], strides = [1, 1, 1]} : vector<8x8x8xf32> to vector<2x8x8xf32>
    %225 = vector.shape_cast %224 : vector<2x8x8xf32> to vector<16x8xf32>
    %226 = vector.extract_strided_slice %219 {offsets = [6, 0, 0], sizes = [2, 8, 8], strides = [1, 1, 1]} : vector<8x8x8xf32> to vector<2x8x8xf32>
    %227 = vector.shape_cast %226 : vector<2x8x8xf32> to vector<16x8xf32>
    %228 = tpu.concatenate %221, %223, %225, %227 in 1 : vector<16x8xf32>, vector<16x8xf32>, vector<16x8xf32>, vector<16x8xf32> -> vector<16x32xf32>
    %c1_81 = arith.constant 1 : index
    %c0_82 = arith.constant 0 : index
    %c0_83 = arith.constant 0 : index
    %229 = vector.load %arg6[%c1_81, %c0_82, %c0_83] : memref<4x32x32xf32, #tpu.memory_space<vmem>>, vector<1x32x32xf32>
    %230 = vector.shape_cast %229 : vector<1x32x32xf32> to vector<32x32xf32>
    %cst_84 = arith.constant dense<0.000000e+00> : vector<16x32xf32>
    %231 = tpu.matmul %228, %230, %cst_84 {dimension_numbers = #tpu.dot_dimension_numbers<[1], [0], [0], [1], [0, 0, 1, 1], [], []>} : vector<16x32xf32>, vector<32x32xf32>, vector<16x32xf32> -> vector<16x32xf32>
    %c1_85 = arith.constant 1 : index
    %c0_86 = arith.constant 0 : index
    %c0_87 = arith.constant 0 : index
    %232 = vector.load %arg7[%c1_85, %c0_86, %c0_87] : memref<4x1x32xf32, #tpu.memory_space<vmem>>, vector<1x1x32xf32>
    %233 = vector.shape_cast %232 : vector<1x1x32xf32> to vector<1x32xf32>
    %234 = vector.broadcast %233 : vector<1x32xf32> to vector<16x32xf32>
    %235 = arith.addf %231, %234 : vector<16x32xf32>
    %236 = arith.addf %143, %235 : vector<16x32xf32>
    %c1_88 = arith.constant 1 : index
    %c0_89 = arith.constant 0 : index
    %c0_90 = arith.constant 0 : index
    %237 = vector.load %arg8[%c1_88, %c0_89, %c0_90] : memref<4x1x32xf32, #tpu.memory_space<vmem>>, vector<1x1x32xf32>
    %238 = vector.shape_cast %237 : vector<1x1x32xf32> to vector<1x32xf32>
    %c1_91 = arith.constant 1 : index
    %c0_92 = arith.constant 0 : index
    %c0_93 = arith.constant 0 : index
    %239 = vector.load %arg9[%c1_91, %c0_92, %c0_93] : memref<4x1x32xf32, #tpu.memory_space<vmem>>, vector<1x1x32xf32>
    %240 = vector.shape_cast %239 : vector<1x1x32xf32> to vector<1x32xf32>
    %cst_94 = arith.constant dense<0.000000e+00> : vector<16xf32>
    %241 = vector.multi_reduction <add>, %236, %cst_94 [1] : vector<16x32xf32> to vector<16xf32>
    %242 = vector.shape_cast %241 : vector<16xf32> to vector<16x1xf32>
    %cst_95 = arith.constant 3.200000e+01 : f32
    %243 = vector.broadcast %cst_95 : f32 to vector<16x1xf32>
    %244 = arith.divf %242, %243 : vector<16x1xf32>
    %245 = vector.broadcast %244 : vector<16x1xf32> to vector<16x32xf32>
    %246 = arith.subf %236, %245 : vector<16x32xf32>
    %247 = arith.mulf %246, %246 : vector<16x32xf32>
    %cst_96 = arith.constant dense<0.000000e+00> : vector<16xf32>
    %248 = vector.multi_reduction <add>, %247, %cst_96 [1] : vector<16x32xf32> to vector<16xf32>
    %249 = vector.shape_cast %248 : vector<16xf32> to vector<16x1xf32>
    %cst_97 = arith.constant 3.200000e+01 : f32
    %250 = vector.broadcast %cst_97 : f32 to vector<16x1xf32>
    %251 = arith.divf %249, %250 : vector<16x1xf32>
    %252 = vector.broadcast %244 : vector<16x1xf32> to vector<16x32xf32>
    %253 = arith.subf %236, %252 : vector<16x32xf32>
    %cst_98 = arith.constant 9.99999974E-6 : f32
    %254 = vector.broadcast %cst_98 : f32 to vector<16x1xf32>
    %255 = arith.addf %251, %254 : vector<16x1xf32>
    %256 = math.rsqrt %255 : vector<16x1xf32>
    %257 = vector.broadcast %256 : vector<16x1xf32> to vector<16x32xf32>
    %258 = arith.mulf %253, %257 : vector<16x32xf32>
    %259 = vector.broadcast %238 : vector<1x32xf32> to vector<16x32xf32>
    %260 = arith.mulf %258, %259 : vector<16x32xf32>
    %261 = vector.broadcast %240 : vector<1x32xf32> to vector<16x32xf32>
    %262 = arith.addf %260, %261 : vector<16x32xf32>
    %c1_99 = arith.constant 1 : index
    %c0_100 = arith.constant 0 : index
    %c0_101 = arith.constant 0 : index
    %263 = vector.load %arg10[%c1_99, %c0_100, %c0_101] : memref<4x32x128xf32, #tpu.memory_space<vmem>>, vector<1x32x128xf32>
    %264 = vector.shape_cast %263 : vector<1x32x128xf32> to vector<32x128xf32>
    %cst_102 = arith.constant dense<0.000000e+00> : vector<16x128xf32>
    %265 = tpu.matmul %262, %264, %cst_102 {dimension_numbers = #tpu.dot_dimension_numbers<[1], [0], [0], [1], [0, 0, 1, 1], [], []>} : vector<16x32xf32>, vector<32x128xf32>, vector<16x128xf32> -> vector<16x128xf32>
    %c1_103 = arith.constant 1 : index
    %c0_104 = arith.constant 0 : index
    %c0_105 = arith.constant 0 : index
    %266 = vector.load %arg11[%c1_103, %c0_104, %c0_105] : memref<4x1x128xf32, #tpu.memory_space<vmem>>, vector<1x1x128xf32>
    %267 = vector.shape_cast %266 : vector<1x1x128xf32> to vector<1x128xf32>
    %268 = vector.broadcast %267 : vector<1x128xf32> to vector<16x128xf32>
    %269 = arith.addf %265, %268 : vector<16x128xf32>
    %cst_106 = arith.constant 0.000000e+00 : f32
    %270 = vector.broadcast %cst_106 : f32 to vector<16x128xf32>
    %271 = arith.maximumf %269, %270 : vector<16x128xf32>
    %c1_107 = arith.constant 1 : index
    %c0_108 = arith.constant 0 : index
    %c0_109 = arith.constant 0 : index
    %272 = vector.load %arg12[%c1_107, %c0_108, %c0_109] : memref<4x128x32xf32, #tpu.memory_space<vmem>>, vector<1x128x32xf32>
    %273 = vector.shape_cast %272 : vector<1x128x32xf32> to vector<128x32xf32>
    %cst_110 = arith.constant dense<0.000000e+00> : vector<16x32xf32>
    %274 = tpu.matmul %271, %273, %cst_110 {dimension_numbers = #tpu.dot_dimension_numbers<[1], [0], [0], [1], [0, 0, 1, 1], [], []>} : vector<16x128xf32>, vector<128x32xf32>, vector<16x32xf32> -> vector<16x32xf32>
    %c1_111 = arith.constant 1 : index
    %c0_112 = arith.constant 0 : index
    %c0_113 = arith.constant 0 : index
    %275 = vector.load %arg13[%c1_111, %c0_112, %c0_113] : memref<4x1x32xf32, #tpu.memory_space<vmem>>, vector<1x1x32xf32>
    %276 = vector.shape_cast %275 : vector<1x1x32xf32> to vector<1x32xf32>
    %277 = vector.broadcast %276 : vector<1x32xf32> to vector<16x32xf32>
    %278 = arith.addf %274, %277 : vector<16x32xf32>
    %279 = arith.addf %236, %278 : vector<16x32xf32>
    %c2 = arith.constant 2 : index
    %c0_114 = arith.constant 0 : index
    %c0_115 = arith.constant 0 : index
    %280 = vector.load %arg2[%c2, %c0_114, %c0_115] : memref<4x1x32xf32, #tpu.memory_space<vmem>>, vector<1x1x32xf32>
    %281 = vector.shape_cast %280 : vector<1x1x32xf32> to vector<1x32xf32>
    %c2_116 = arith.constant 2 : index
    %c0_117 = arith.constant 0 : index
    %c0_118 = arith.constant 0 : index
    %282 = vector.load %arg3[%c2_116, %c0_117, %c0_118] : memref<4x1x32xf32, #tpu.memory_space<vmem>>, vector<1x1x32xf32>
    %283 = vector.shape_cast %282 : vector<1x1x32xf32> to vector<1x32xf32>
    %cst_119 = arith.constant dense<0.000000e+00> : vector<16xf32>
    %284 = vector.multi_reduction <add>, %279, %cst_119 [1] : vector<16x32xf32> to vector<16xf32>
    %285 = vector.shape_cast %284 : vector<16xf32> to vector<16x1xf32>
    %cst_120 = arith.constant 3.200000e+01 : f32
    %286 = vector.broadcast %cst_120 : f32 to vector<16x1xf32>
    %287 = arith.divf %285, %286 : vector<16x1xf32>
    %288 = vector.broadcast %287 : vector<16x1xf32> to vector<16x32xf32>
    %289 = arith.subf %279, %288 : vector<16x32xf32>
    %290 = arith.mulf %289, %289 : vector<16x32xf32>
    %cst_121 = arith.constant dense<0.000000e+00> : vector<16xf32>
    %291 = vector.multi_reduction <add>, %290, %cst_121 [1] : vector<16x32xf32> to vector<16xf32>
    %292 = vector.shape_cast %291 : vector<16xf32> to vector<16x1xf32>
    %cst_122 = arith.constant 3.200000e+01 : f32
    %293 = vector.broadcast %cst_122 : f32 to vector<16x1xf32>
    %294 = arith.divf %292, %293 : vector<16x1xf32>
    %295 = vector.broadcast %287 : vector<16x1xf32> to vector<16x32xf32>
    %296 = arith.subf %279, %295 : vector<16x32xf32>
    %cst_123 = arith.constant 9.99999974E-6 : f32
    %297 = vector.broadcast %cst_123 : f32 to vector<16x1xf32>
    %298 = arith.addf %294, %297 : vector<16x1xf32>
    %299 = math.rsqrt %298 : vector<16x1xf32>
    %300 = vector.broadcast %299 : vector<16x1xf32> to vector<16x32xf32>
    %301 = arith.mulf %296, %300 : vector<16x32xf32>
    %302 = vector.broadcast %281 : vector<1x32xf32> to vector<16x32xf32>
    %303 = arith.mulf %301, %302 : vector<16x32xf32>
    %304 = vector.broadcast %283 : vector<1x32xf32> to vector<16x32xf32>
    %305 = arith.addf %303, %304 : vector<16x32xf32>
    %c2_124 = arith.constant 2 : index
    %c0_125 = arith.constant 0 : index
    %c0_126 = arith.constant 0 : index
    %306 = vector.load %arg4[%c2_124, %c0_125, %c0_126] : memref<4x32x96xf32, #tpu.memory_space<vmem>>, vector<1x32x96xf32>
    %307 = vector.shape_cast %306 : vector<1x32x96xf32> to vector<32x96xf32>
    %cst_127 = arith.constant dense<0.000000e+00> : vector<16x96xf32>
    %308 = tpu.matmul %305, %307, %cst_127 {dimension_numbers = #tpu.dot_dimension_numbers<[1], [0], [0], [1], [0, 0, 1, 1], [], []>} : vector<16x32xf32>, vector<32x96xf32>, vector<16x96xf32> -> vector<16x96xf32>
    %c2_128 = arith.constant 2 : index
    %c0_129 = arith.constant 0 : index
    %c0_130 = arith.constant 0 : index
    %309 = vector.load %arg5[%c2_128, %c0_129, %c0_130] : memref<4x1x96xf32, #tpu.memory_space<vmem>>, vector<1x1x96xf32>
    %310 = vector.shape_cast %309 : vector<1x1x96xf32> to vector<1x96xf32>
    %311 = vector.broadcast %310 : vector<1x96xf32> to vector<16x96xf32>
    %312 = arith.addf %308, %311 : vector<16x96xf32>
    %313 = vector.extract_strided_slice %312 {offsets = [0, 0], sizes = [16, 32], strides = [1, 1]} : vector<16x96xf32> to vector<16x32xf32>
    %314 = vector.extract_strided_slice %312 {offsets = [0, 32], sizes = [16, 32], strides = [1, 1]} : vector<16x96xf32> to vector<16x32xf32>
    %315 = vector.extract_strided_slice %312 {offsets = [0, 64], sizes = [16, 32], strides = [1, 1]} : vector<16x96xf32> to vector<16x32xf32>
    %316 = vector.extract_strided_slice %313 {offsets = [0, 0], sizes = [16, 8], strides = [1, 1]} : vector<16x32xf32> to vector<16x8xf32>
    %317 = vector.shape_cast %316 : vector<16x8xf32> to vector<2x8x8xf32>
    %318 = vector.extract_strided_slice %313 {offsets = [0, 8], sizes = [16, 8], strides = [1, 1]} : vector<16x32xf32> to vector<16x8xf32>
    %319 = vector.shape_cast %318 : vector<16x8xf32> to vector<2x8x8xf32>
    %320 = vector.extract_strided_slice %313 {offsets = [0, 16], sizes = [16, 8], strides = [1, 1]} : vector<16x32xf32> to vector<16x8xf32>
    %321 = vector.shape_cast %320 : vector<16x8xf32> to vector<2x8x8xf32>
    %322 = vector.extract_strided_slice %313 {offsets = [0, 24], sizes = [16, 8], strides = [1, 1]} : vector<16x32xf32> to vector<16x8xf32>
    %323 = vector.shape_cast %322 : vector<16x8xf32> to vector<2x8x8xf32>
    %324 = tpu.concatenate %317, %319, %321, %323 in 0 : vector<2x8x8xf32>, vector<2x8x8xf32>, vector<2x8x8xf32>, vector<2x8x8xf32> -> vector<8x8x8xf32>
    %325 = vector.extract_strided_slice %314 {offsets = [0, 0], sizes = [16, 8], strides = [1, 1]} : vector<16x32xf32> to vector<16x8xf32>
    %326 = vector.shape_cast %325 : vector<16x8xf32> to vector<2x8x8xf32>
    %327 = vector.extract_strided_slice %314 {offsets = [0, 8], sizes = [16, 8], strides = [1, 1]} : vector<16x32xf32> to vector<16x8xf32>
    %328 = vector.shape_cast %327 : vector<16x8xf32> to vector<2x8x8xf32>
    %329 = vector.extract_strided_slice %314 {offsets = [0, 16], sizes = [16, 8], strides = [1, 1]} : vector<16x32xf32> to vector<16x8xf32>
    %330 = vector.shape_cast %329 : vector<16x8xf32> to vector<2x8x8xf32>
    %331 = vector.extract_strided_slice %314 {offsets = [0, 24], sizes = [16, 8], strides = [1, 1]} : vector<16x32xf32> to vector<16x8xf32>
    %332 = vector.shape_cast %331 : vector<16x8xf32> to vector<2x8x8xf32>
    %333 = tpu.concatenate %326, %328, %330, %332 in 0 : vector<2x8x8xf32>, vector<2x8x8xf32>, vector<2x8x8xf32>, vector<2x8x8xf32> -> vector<8x8x8xf32>
    %334 = vector.extract_strided_slice %315 {offsets = [0, 0], sizes = [16, 8], strides = [1, 1]} : vector<16x32xf32> to vector<16x8xf32>
    %335 = vector.shape_cast %334 : vector<16x8xf32> to vector<2x8x8xf32>
    %336 = vector.extract_strided_slice %315 {offsets = [0, 8], sizes = [16, 8], strides = [1, 1]} : vector<16x32xf32> to vector<16x8xf32>
    %337 = vector.shape_cast %336 : vector<16x8xf32> to vector<2x8x8xf32>
    %338 = vector.extract_strided_slice %315 {offsets = [0, 16], sizes = [16, 8], strides = [1, 1]} : vector<16x32xf32> to vector<16x8xf32>
    %339 = vector.shape_cast %338 : vector<16x8xf32> to vector<2x8x8xf32>
    %340 = vector.extract_strided_slice %315 {offsets = [0, 24], sizes = [16, 8], strides = [1, 1]} : vector<16x32xf32> to vector<16x8xf32>
    %341 = vector.shape_cast %340 : vector<16x8xf32> to vector<2x8x8xf32>
    %342 = tpu.concatenate %335, %337, %339, %341 in 0 : vector<2x8x8xf32>, vector<2x8x8xf32>, vector<2x8x8xf32>, vector<2x8x8xf32> -> vector<8x8x8xf32>
    "tpu.trace_start"() <{level = 10 : i32, message = "ntd,nsd->nts"}> : () -> ()
    %cst_131 = arith.constant dense<0.000000e+00> : vector<8x8x8xf32>
    %343 = tpu.matmul %324, %333, %cst_131 {dimension_numbers = #tpu.dot_dimension_numbers<[2], [2], [1], [1], [0, 0, 0, 1, 1, 1], [0], [0]>} : vector<8x8x8xf32>, vector<8x8x8xf32>, vector<8x8x8xf32> -> vector<8x8x8xf32>
    "tpu.trace_stop"() : () -> ()
    %cst_132 = arith.constant dense<0xFF800000> : vector<8x8xf32>
    %344 = vector.multi_reduction <maximumf>, %343, %cst_132 [2] : vector<8x8x8xf32> to vector<8x8xf32>
    %345 = vector.shape_cast %344 : vector<8x8xf32> to vector<8x8x1xf32>
    %346 = vector.broadcast %345 : vector<8x8x1xf32> to vector<8x8x8xf32>
    %347 = arith.subf %343, %346 : vector<8x8x8xf32>
    %348 = math.exp %347 : vector<8x8x8xf32>
    %cst_133 = arith.constant dense<0.000000e+00> : vector<8x8xf32>
    %349 = vector.multi_reduction <add>, %348, %cst_133 [2] : vector<8x8x8xf32> to vector<8x8xf32>
    %350 = vector.shape_cast %349 : vector<8x8xf32> to vector<8x8x1xf32>
    %cst_134 = arith.constant 1.000000e+00 : f32
    %351 = vector.broadcast %cst_134 : f32 to vector<8x8x1xf32>
    %352 = arith.divf %351, %350 : vector<8x8x1xf32>
    %353 = vector.broadcast %352 : vector<8x8x1xf32> to vector<8x8x8xf32>
    %354 = arith.mulf %348, %353 : vector<8x8x8xf32>
    "tpu.trace_start"() <{level = 10 : i32, message = "nts,nsd->ntd"}> : () -> ()
    %cst_135 = arith.constant dense<0.000000e+00> : vector<8x8x8xf32>
    %355 = tpu.matmul %354, %342, %cst_135 {dimension_numbers = #tpu.dot_dimension_numbers<[2], [1], [1], [2], [0, 0, 0, 1, 1, 2], [0], [0]>} : vector<8x8x8xf32>, vector<8x8x8xf32>, vector<8x8x8xf32> -> vector<8x8x8xf32>
    "tpu.trace_stop"() : () -> ()
    %356 = vector.extract_strided_slice %355 {offsets = [0, 0, 0], sizes = [2, 8, 8], strides = [1, 1, 1]} : vector<8x8x8xf32> to vector<2x8x8xf32>
    %357 = vector.shape_cast %356 : vector<2x8x8xf32> to vector<16x8xf32>
    %358 = vector.extract_strided_slice %355 {offsets = [2, 0, 0], sizes = [2, 8, 8], strides = [1, 1, 1]} : vector<8x8x8xf32> to vector<2x8x8xf32>
    %359 = vector.shape_cast %358 : vector<2x8x8xf32> to vector<16x8xf32>
    %360 = vector.extract_strided_slice %355 {offsets = [4, 0, 0], sizes = [2, 8, 8], strides = [1, 1, 1]} : vector<8x8x8xf32> to vector<2x8x8xf32>
    %361 = vector.shape_cast %360 : vector<2x8x8xf32> to vector<16x8xf32>
    %362 = vector.extract_strided_slice %355 {offsets = [6, 0, 0], sizes = [2, 8, 8], strides = [1, 1, 1]} : vector<8x8x8xf32> to vector<2x8x8xf32>
    %363 = vector.shape_cast %362 : vector<2x8x8xf32> to vector<16x8xf32>
    %364 = tpu.concatenate %357, %359, %361, %363 in 1 : vector<16x8xf32>, vector<16x8xf32>, vector<16x8xf32>, vector<16x8xf32> -> vector<16x32xf32>
    %c2_136 = arith.constant 2 : index
    %c0_137 = arith.constant 0 : index
    %c0_138 = arith.constant 0 : index
    %365 = vector.load %arg6[%c2_136, %c0_137, %c0_138] : memref<4x32x32xf32, #tpu.memory_space<vmem>>, vector<1x32x32xf32>
    %366 = vector.shape_cast %365 : vector<1x32x32xf32> to vector<32x32xf32>
    %cst_139 = arith.constant dense<0.000000e+00> : vector<16x32xf32>
    %367 = tpu.matmul %364, %366, %cst_139 {dimension_numbers = #tpu.dot_dimension_numbers<[1], [0], [0], [1], [0, 0, 1, 1], [], []>} : vector<16x32xf32>, vector<32x32xf32>, vector<16x32xf32> -> vector<16x32xf32>
    %c2_140 = arith.constant 2 : index
    %c0_141 = arith.constant 0 : index
    %c0_142 = arith.constant 0 : index
    %368 = vector.load %arg7[%c2_140, %c0_141, %c0_142] : memref<4x1x32xf32, #tpu.memory_space<vmem>>, vector<1x1x32xf32>
    %369 = vector.shape_cast %368 : vector<1x1x32xf32> to vector<1x32xf32>
    %370 = vector.broadcast %369 : vector<1x32xf32> to vector<16x32xf32>
    %371 = arith.addf %367, %370 : vector<16x32xf32>
    %372 = arith.addf %279, %371 : vector<16x32xf32>
    %c2_143 = arith.constant 2 : index
    %c0_144 = arith.constant 0 : index
    %c0_145 = arith.constant 0 : index
    %373 = vector.load %arg8[%c2_143, %c0_144, %c0_145] : memref<4x1x32xf32, #tpu.memory_space<vmem>>, vector<1x1x32xf32>
    %374 = vector.shape_cast %373 : vector<1x1x32xf32> to vector<1x32xf32>
    %c2_146 = arith.constant 2 : index
    %c0_147 = arith.constant 0 : index
    %c0_148 = arith.constant 0 : index
    %375 = vector.load %arg9[%c2_146, %c0_147, %c0_148] : memref<4x1x32xf32, #tpu.memory_space<vmem>>, vector<1x1x32xf32>
    %376 = vector.shape_cast %375 : vector<1x1x32xf32> to vector<1x32xf32>
    %cst_149 = arith.constant dense<0.000000e+00> : vector<16xf32>
    %377 = vector.multi_reduction <add>, %372, %cst_149 [1] : vector<16x32xf32> to vector<16xf32>
    %378 = vector.shape_cast %377 : vector<16xf32> to vector<16x1xf32>
    %cst_150 = arith.constant 3.200000e+01 : f32
    %379 = vector.broadcast %cst_150 : f32 to vector<16x1xf32>
    %380 = arith.divf %378, %379 : vector<16x1xf32>
    %381 = vector.broadcast %380 : vector<16x1xf32> to vector<16x32xf32>
    %382 = arith.subf %372, %381 : vector<16x32xf32>
    %383 = arith.mulf %382, %382 : vector<16x32xf32>
    %cst_151 = arith.constant dense<0.000000e+00> : vector<16xf32>
    %384 = vector.multi_reduction <add>, %383, %cst_151 [1] : vector<16x32xf32> to vector<16xf32>
    %385 = vector.shape_cast %384 : vector<16xf32> to vector<16x1xf32>
    %cst_152 = arith.constant 3.200000e+01 : f32
    %386 = vector.broadcast %cst_152 : f32 to vector<16x1xf32>
    %387 = arith.divf %385, %386 : vector<16x1xf32>
    %388 = vector.broadcast %380 : vector<16x1xf32> to vector<16x32xf32>
    %389 = arith.subf %372, %388 : vector<16x32xf32>
    %cst_153 = arith.constant 9.99999974E-6 : f32
    %390 = vector.broadcast %cst_153 : f32 to vector<16x1xf32>
    %391 = arith.addf %387, %390 : vector<16x1xf32>
    %392 = math.rsqrt %391 : vector<16x1xf32>
    %393 = vector.broadcast %392 : vector<16x1xf32> to vector<16x32xf32>
    %394 = arith.mulf %389, %393 : vector<16x32xf32>
    %395 = vector.broadcast %374 : vector<1x32xf32> to vector<16x32xf32>
    %396 = arith.mulf %394, %395 : vector<16x32xf32>
    %397 = vector.broadcast %376 : vector<1x32xf32> to vector<16x32xf32>
    %398 = arith.addf %396, %397 : vector<16x32xf32>
    %c2_154 = arith.constant 2 : index
    %c0_155 = arith.constant 0 : index
    %c0_156 = arith.constant 0 : index
    %399 = vector.load %arg10[%c2_154, %c0_155, %c0_156] : memref<4x32x128xf32, #tpu.memory_space<vmem>>, vector<1x32x128xf32>
    %400 = vector.shape_cast %399 : vector<1x32x128xf32> to vector<32x128xf32>
    %cst_157 = arith.constant dense<0.000000e+00> : vector<16x128xf32>
    %401 = tpu.matmul %398, %400, %cst_157 {dimension_numbers = #tpu.dot_dimension_numbers<[1], [0], [0], [1], [0, 0, 1, 1], [], []>} : vector<16x32xf32>, vector<32x128xf32>, vector<16x128xf32> -> vector<16x128xf32>
    %c2_158 = arith.constant 2 : index
    %c0_159 = arith.constant 0 : index
    %c0_160 = arith.constant 0 : index
    %402 = vector.load %arg11[%c2_158, %c0_159, %c0_160] : memref<4x1x128xf32, #tpu.memory_space<vmem>>, vector<1x1x128xf32>
    %403 = vector.shape_cast %402 : vector<1x1x128xf32> to vector<1x128xf32>
    %404 = vector.broadcast %403 : vector<1x128xf32> to vector<16x128xf32>
    %405 = arith.addf %401, %404 : vector<16x128xf32>
    %cst_161 = arith.constant 0.000000e+00 : f32
    %406 = vector.broadcast %cst_161 : f32 to vector<16x128xf32>
    %407 = arith.maximumf %405, %406 : vector<16x128xf32>
    %c2_162 = arith.constant 2 : index
    %c0_163 = arith.constant 0 : index
    %c0_164 = arith.constant 0 : index
    %408 = vector.load %arg12[%c2_162, %c0_163, %c0_164] : memref<4x128x32xf32, #tpu.memory_space<vmem>>, vector<1x128x32xf32>
    %409 = vector.shape_cast %408 : vector<1x128x32xf32> to vector<128x32xf32>
    %cst_165 = arith.constant dense<0.000000e+00> : vector<16x32xf32>
    %410 = tpu.matmul %407, %409, %cst_165 {dimension_numbers = #tpu.dot_dimension_numbers<[1], [0], [0], [1], [0, 0, 1, 1], [], []>} : vector<16x128xf32>, vector<128x32xf32>, vector<16x32xf32> -> vector<16x32xf32>
    %c2_166 = arith.constant 2 : index
    %c0_167 = arith.constant 0 : index
    %c0_168 = arith.constant 0 : index
    %411 = vector.load %arg13[%c2_166, %c0_167, %c0_168] : memref<4x1x32xf32, #tpu.memory_space<vmem>>, vector<1x1x32xf32>
    %412 = vector.shape_cast %411 : vector<1x1x32xf32> to vector<1x32xf32>
    %413 = vector.broadcast %412 : vector<1x32xf32> to vector<16x32xf32>
    %414 = arith.addf %410, %413 : vector<16x32xf32>
    %415 = arith.addf %372, %414 : vector<16x32xf32>
    %c3 = arith.constant 3 : index
    %c0_169 = arith.constant 0 : index
    %c0_170 = arith.constant 0 : index
    %416 = vector.load %arg2[%c3, %c0_169, %c0_170] : memref<4x1x32xf32, #tpu.memory_space<vmem>>, vector<1x1x32xf32>
    %417 = vector.shape_cast %416 : vector<1x1x32xf32> to vector<1x32xf32>
    %c3_171 = arith.constant 3 : index
    %c0_172 = arith.constant 0 : index
    %c0_173 = arith.constant 0 : index
    %418 = vector.load %arg3[%c3_171, %c0_172, %c0_173] : memref<4x1x32xf32, #tpu.memory_space<vmem>>, vector<1x1x32xf32>
    %419 = vector.shape_cast %418 : vector<1x1x32xf32> to vector<1x32xf32>
    %cst_174 = arith.constant dense<0.000000e+00> : vector<16xf32>
    %420 = vector.multi_reduction <add>, %415, %cst_174 [1] : vector<16x32xf32> to vector<16xf32>
    %421 = vector.shape_cast %420 : vector<16xf32> to vector<16x1xf32>
    %cst_175 = arith.constant 3.200000e+01 : f32
    %422 = vector.broadcast %cst_175 : f32 to vector<16x1xf32>
    %423 = arith.divf %421, %422 : vector<16x1xf32>
    %424 = vector.broadcast %423 : vector<16x1xf32> to vector<16x32xf32>
    %425 = arith.subf %415, %424 : vector<16x32xf32>
    %426 = arith.mulf %425, %425 : vector<16x32xf32>
    %cst_176 = arith.constant dense<0.000000e+00> : vector<16xf32>
    %427 = vector.multi_reduction <add>, %426, %cst_176 [1] : vector<16x32xf32> to vector<16xf32>
    %428 = vector.shape_cast %427 : vector<16xf32> to vector<16x1xf32>
    %cst_177 = arith.constant 3.200000e+01 : f32
    %429 = vector.broadcast %cst_177 : f32 to vector<16x1xf32>
    %430 = arith.divf %428, %429 : vector<16x1xf32>
    %431 = vector.broadcast %423 : vector<16x1xf32> to vector<16x32xf32>
    %432 = arith.subf %415, %431 : vector<16x32xf32>
    %cst_178 = arith.constant 9.99999974E-6 : f32
    %433 = vector.broadcast %cst_178 : f32 to vector<16x1xf32>
    %434 = arith.addf %430, %433 : vector<16x1xf32>
    %435 = math.rsqrt %434 : vector<16x1xf32>
    %436 = vector.broadcast %435 : vector<16x1xf32> to vector<16x32xf32>
    %437 = arith.mulf %432, %436 : vector<16x32xf32>
    %438 = vector.broadcast %417 : vector<1x32xf32> to vector<16x32xf32>
    %439 = arith.mulf %437, %438 : vector<16x32xf32>
    %440 = vector.broadcast %419 : vector<1x32xf32> to vector<16x32xf32>
    %441 = arith.addf %439, %440 : vector<16x32xf32>
    %c3_179 = arith.constant 3 : index
    %c0_180 = arith.constant 0 : index
    %c0_181 = arith.constant 0 : index
    %442 = vector.load %arg4[%c3_179, %c0_180, %c0_181] : memref<4x32x96xf32, #tpu.memory_space<vmem>>, vector<1x32x96xf32>
    %443 = vector.shape_cast %442 : vector<1x32x96xf32> to vector<32x96xf32>
    %cst_182 = arith.constant dense<0.000000e+00> : vector<16x96xf32>
    %444 = tpu.matmul %441, %443, %cst_182 {dimension_numbers = #tpu.dot_dimension_numbers<[1], [0], [0], [1], [0, 0, 1, 1], [], []>} : vector<16x32xf32>, vector<32x96xf32>, vector<16x96xf32> -> vector<16x96xf32>
    %c3_183 = arith.constant 3 : index
    %c0_184 = arith.constant 0 : index
    %c0_185 = arith.constant 0 : index
    %445 = vector.load %arg5[%c3_183, %c0_184, %c0_185] : memref<4x1x96xf32, #tpu.memory_space<vmem>>, vector<1x1x96xf32>
    %446 = vector.shape_cast %445 : vector<1x1x96xf32> to vector<1x96xf32>
    %447 = vector.broadcast %446 : vector<1x96xf32> to vector<16x96xf32>
    %448 = arith.addf %444, %447 : vector<16x96xf32>
    %449 = vector.extract_strided_slice %448 {offsets = [0, 0], sizes = [16, 32], strides = [1, 1]} : vector<16x96xf32> to vector<16x32xf32>
    %450 = vector.extract_strided_slice %448 {offsets = [0, 32], sizes = [16, 32], strides = [1, 1]} : vector<16x96xf32> to vector<16x32xf32>
    %451 = vector.extract_strided_slice %448 {offsets = [0, 64], sizes = [16, 32], strides = [1, 1]} : vector<16x96xf32> to vector<16x32xf32>
    %452 = vector.extract_strided_slice %449 {offsets = [0, 0], sizes = [16, 8], strides = [1, 1]} : vector<16x32xf32> to vector<16x8xf32>
    %453 = vector.shape_cast %452 : vector<16x8xf32> to vector<2x8x8xf32>
    %454 = vector.extract_strided_slice %449 {offsets = [0, 8], sizes = [16, 8], strides = [1, 1]} : vector<16x32xf32> to vector<16x8xf32>
    %455 = vector.shape_cast %454 : vector<16x8xf32> to vector<2x8x8xf32>
    %456 = vector.extract_strided_slice %449 {offsets = [0, 16], sizes = [16, 8], strides = [1, 1]} : vector<16x32xf32> to vector<16x8xf32>
    %457 = vector.shape_cast %456 : vector<16x8xf32> to vector<2x8x8xf32>
    %458 = vector.extract_strided_slice %449 {offsets = [0, 24], sizes = [16, 8], strides = [1, 1]} : vector<16x32xf32> to vector<16x8xf32>
    %459 = vector.shape_cast %458 : vector<16x8xf32> to vector<2x8x8xf32>
    %460 = tpu.concatenate %453, %455, %457, %459 in 0 : vector<2x8x8xf32>, vector<2x8x8xf32>, vector<2x8x8xf32>, vector<2x8x8xf32> -> vector<8x8x8xf32>
    %461 = vector.extract_strided_slice %450 {offsets = [0, 0], sizes = [16, 8], strides = [1, 1]} : vector<16x32xf32> to vector<16x8xf32>
    %462 = vector.shape_cast %461 : vector<16x8xf32> to vector<2x8x8xf32>
    %463 = vector.extract_strided_slice %450 {offsets = [0, 8], sizes = [16, 8], strides = [1, 1]} : vector<16x32xf32> to vector<16x8xf32>
    %464 = vector.shape_cast %463 : vector<16x8xf32> to vector<2x8x8xf32>
    %465 = vector.extract_strided_slice %450 {offsets = [0, 16], sizes = [16, 8], strides = [1, 1]} : vector<16x32xf32> to vector<16x8xf32>
    %466 = vector.shape_cast %465 : vector<16x8xf32> to vector<2x8x8xf32>
    %467 = vector.extract_strided_slice %450 {offsets = [0, 24], sizes = [16, 8], strides = [1, 1]} : vector<16x32xf32> to vector<16x8xf32>
    %468 = vector.shape_cast %467 : vector<16x8xf32> to vector<2x8x8xf32>
    %469 = tpu.concatenate %462, %464, %466, %468 in 0 : vector<2x8x8xf32>, vector<2x8x8xf32>, vector<2x8x8xf32>, vector<2x8x8xf32> -> vector<8x8x8xf32>
    %470 = vector.extract_strided_slice %451 {offsets = [0, 0], sizes = [16, 8], strides = [1, 1]} : vector<16x32xf32> to vector<16x8xf32>
    %471 = vector.shape_cast %470 : vector<16x8xf32> to vector<2x8x8xf32>
    %472 = vector.extract_strided_slice %451 {offsets = [0, 8], sizes = [16, 8], strides = [1, 1]} : vector<16x32xf32> to vector<16x8xf32>
    %473 = vector.shape_cast %472 : vector<16x8xf32> to vector<2x8x8xf32>
    %474 = vector.extract_strided_slice %451 {offsets = [0, 16], sizes = [16, 8], strides = [1, 1]} : vector<16x32xf32> to vector<16x8xf32>
    %475 = vector.shape_cast %474 : vector<16x8xf32> to vector<2x8x8xf32>
    %476 = vector.extract_strided_slice %451 {offsets = [0, 24], sizes = [16, 8], strides = [1, 1]} : vector<16x32xf32> to vector<16x8xf32>
    %477 = vector.shape_cast %476 : vector<16x8xf32> to vector<2x8x8xf32>
    %478 = tpu.concatenate %471, %473, %475, %477 in 0 : vector<2x8x8xf32>, vector<2x8x8xf32>, vector<2x8x8xf32>, vector<2x8x8xf32> -> vector<8x8x8xf32>
    "tpu.trace_start"() <{level = 10 : i32, message = "ntd,nsd->nts"}> : () -> ()
    %cst_186 = arith.constant dense<0.000000e+00> : vector<8x8x8xf32>
    %479 = tpu.matmul %460, %469, %cst_186 {dimension_numbers = #tpu.dot_dimension_numbers<[2], [2], [1], [1], [0, 0, 0, 1, 1, 1], [0], [0]>} : vector<8x8x8xf32>, vector<8x8x8xf32>, vector<8x8x8xf32> -> vector<8x8x8xf32>
    "tpu.trace_stop"() : () -> ()
    %cst_187 = arith.constant dense<0xFF800000> : vector<8x8xf32>
    %480 = vector.multi_reduction <maximumf>, %479, %cst_187 [2] : vector<8x8x8xf32> to vector<8x8xf32>
    %481 = vector.shape_cast %480 : vector<8x8xf32> to vector<8x8x1xf32>
    %482 = vector.broadcast %481 : vector<8x8x1xf32> to vector<8x8x8xf32>
    %483 = arith.subf %479, %482 : vector<8x8x8xf32>
    %484 = math.exp %483 : vector<8x8x8xf32>
    %cst_188 = arith.constant dense<0.000000e+00> : vector<8x8xf32>
    %485 = vector.multi_reduction <add>, %484, %cst_188 [2] : vector<8x8x8xf32> to vector<8x8xf32>
    %486 = vector.shape_cast %485 : vector<8x8xf32> to vector<8x8x1xf32>
    %cst_189 = arith.constant 1.000000e+00 : f32
    %487 = vector.broadcast %cst_189 : f32 to vector<8x8x1xf32>
    %488 = arith.divf %487, %486 : vector<8x8x1xf32>
    %489 = vector.broadcast %488 : vector<8x8x1xf32> to vector<8x8x8xf32>
    %490 = arith.mulf %484, %489 : vector<8x8x8xf32>
    "tpu.trace_start"() <{level = 10 : i32, message = "nts,nsd->ntd"}> : () -> ()
    %cst_190 = arith.constant dense<0.000000e+00> : vector<8x8x8xf32>
    %491 = tpu.matmul %490, %478, %cst_190 {dimension_numbers = #tpu.dot_dimension_numbers<[2], [1], [1], [2], [0, 0, 0, 1, 1, 2], [0], [0]>} : vector<8x8x8xf32>, vector<8x8x8xf32>, vector<8x8x8xf32> -> vector<8x8x8xf32>
    "tpu.trace_stop"() : () -> ()
    %492 = vector.extract_strided_slice %491 {offsets = [0, 0, 0], sizes = [2, 8, 8], strides = [1, 1, 1]} : vector<8x8x8xf32> to vector<2x8x8xf32>
    %493 = vector.shape_cast %492 : vector<2x8x8xf32> to vector<16x8xf32>
    %494 = vector.extract_strided_slice %491 {offsets = [2, 0, 0], sizes = [2, 8, 8], strides = [1, 1, 1]} : vector<8x8x8xf32> to vector<2x8x8xf32>
    %495 = vector.shape_cast %494 : vector<2x8x8xf32> to vector<16x8xf32>
    %496 = vector.extract_strided_slice %491 {offsets = [4, 0, 0], sizes = [2, 8, 8], strides = [1, 1, 1]} : vector<8x8x8xf32> to vector<2x8x8xf32>
    %497 = vector.shape_cast %496 : vector<2x8x8xf32> to vector<16x8xf32>
    %498 = vector.extract_strided_slice %491 {offsets = [6, 0, 0], sizes = [2, 8, 8], strides = [1, 1, 1]} : vector<8x8x8xf32> to vector<2x8x8xf32>
    %499 = vector.shape_cast %498 : vector<2x8x8xf32> to vector<16x8xf32>
    %500 = tpu.concatenate %493, %495, %497, %499 in 1 : vector<16x8xf32>, vector<16x8xf32>, vector<16x8xf32>, vector<16x8xf32> -> vector<16x32xf32>
    %c3_191 = arith.constant 3 : index
    %c0_192 = arith.constant 0 : index
    %c0_193 = arith.constant 0 : index
    %501 = vector.load %arg6[%c3_191, %c0_192, %c0_193] : memref<4x32x32xf32, #tpu.memory_space<vmem>>, vector<1x32x32xf32>
    %502 = vector.shape_cast %501 : vector<1x32x32xf32> to vector<32x32xf32>
    %cst_194 = arith.constant dense<0.000000e+00> : vector<16x32xf32>
    %503 = tpu.matmul %500, %502, %cst_194 {dimension_numbers = #tpu.dot_dimension_numbers<[1], [0], [0], [1], [0, 0, 1, 1], [], []>} : vector<16x32xf32>, vector<32x32xf32>, vector<16x32xf32> -> vector<16x32xf32>
    %c3_195 = arith.constant 3 : index
    %c0_196 = arith.constant 0 : index
    %c0_197 = arith.constant 0 : index
    %504 = vector.load %arg7[%c3_195, %c0_196, %c0_197] : memref<4x1x32xf32, #tpu.memory_space<vmem>>, vector<1x1x32xf32>
    %505 = vector.shape_cast %504 : vector<1x1x32xf32> to vector<1x32xf32>
    %506 = vector.broadcast %505 : vector<1x32xf32> to vector<16x32xf32>
    %507 = arith.addf %503, %506 : vector<16x32xf32>
    %508 = arith.addf %415, %507 : vector<16x32xf32>
    %c3_198 = arith.constant 3 : index
    %c0_199 = arith.constant 0 : index
    %c0_200 = arith.constant 0 : index
    %509 = vector.load %arg8[%c3_198, %c0_199, %c0_200] : memref<4x1x32xf32, #tpu.memory_space<vmem>>, vector<1x1x32xf32>
    %510 = vector.shape_cast %509 : vector<1x1x32xf32> to vector<1x32xf32>
    %c3_201 = arith.constant 3 : index
    %c0_202 = arith.constant 0 : index
    %c0_203 = arith.constant 0 : index
    %511 = vector.load %arg9[%c3_201, %c0_202, %c0_203] : memref<4x1x32xf32, #tpu.memory_space<vmem>>, vector<1x1x32xf32>
    %512 = vector.shape_cast %511 : vector<1x1x32xf32> to vector<1x32xf32>
    %cst_204 = arith.constant dense<0.000000e+00> : vector<16xf32>
    %513 = vector.multi_reduction <add>, %508, %cst_204 [1] : vector<16x32xf32> to vector<16xf32>
    %514 = vector.shape_cast %513 : vector<16xf32> to vector<16x1xf32>
    %cst_205 = arith.constant 3.200000e+01 : f32
    %515 = vector.broadcast %cst_205 : f32 to vector<16x1xf32>
    %516 = arith.divf %514, %515 : vector<16x1xf32>
    %517 = vector.broadcast %516 : vector<16x1xf32> to vector<16x32xf32>
    %518 = arith.subf %508, %517 : vector<16x32xf32>
    %519 = arith.mulf %518, %518 : vector<16x32xf32>
    %cst_206 = arith.constant dense<0.000000e+00> : vector<16xf32>
    %520 = vector.multi_reduction <add>, %519, %cst_206 [1] : vector<16x32xf32> to vector<16xf32>
    %521 = vector.shape_cast %520 : vector<16xf32> to vector<16x1xf32>
    %cst_207 = arith.constant 3.200000e+01 : f32
    %522 = vector.broadcast %cst_207 : f32 to vector<16x1xf32>
    %523 = arith.divf %521, %522 : vector<16x1xf32>
    %524 = vector.broadcast %516 : vector<16x1xf32> to vector<16x32xf32>
    %525 = arith.subf %508, %524 : vector<16x32xf32>
    %cst_208 = arith.constant 9.99999974E-6 : f32
    %526 = vector.broadcast %cst_208 : f32 to vector<16x1xf32>
    %527 = arith.addf %523, %526 : vector<16x1xf32>
    %528 = math.rsqrt %527 : vector<16x1xf32>
    %529 = vector.broadcast %528 : vector<16x1xf32> to vector<16x32xf32>
    %530 = arith.mulf %525, %529 : vector<16x32xf32>
    %531 = vector.broadcast %510 : vector<1x32xf32> to vector<16x32xf32>
    %532 = arith.mulf %530, %531 : vector<16x32xf32>
    %533 = vector.broadcast %512 : vector<1x32xf32> to vector<16x32xf32>
    %534 = arith.addf %532, %533 : vector<16x32xf32>
    %c3_209 = arith.constant 3 : index
    %c0_210 = arith.constant 0 : index
    %c0_211 = arith.constant 0 : index
    %535 = vector.load %arg10[%c3_209, %c0_210, %c0_211] : memref<4x32x128xf32, #tpu.memory_space<vmem>>, vector<1x32x128xf32>
    %536 = vector.shape_cast %535 : vector<1x32x128xf32> to vector<32x128xf32>
    %cst_212 = arith.constant dense<0.000000e+00> : vector<16x128xf32>
    %537 = tpu.matmul %534, %536, %cst_212 {dimension_numbers = #tpu.dot_dimension_numbers<[1], [0], [0], [1], [0, 0, 1, 1], [], []>} : vector<16x32xf32>, vector<32x128xf32>, vector<16x128xf32> -> vector<16x128xf32>
    %c3_213 = arith.constant 3 : index
    %c0_214 = arith.constant 0 : index
    %c0_215 = arith.constant 0 : index
    %538 = vector.load %arg11[%c3_213, %c0_214, %c0_215] : memref<4x1x128xf32, #tpu.memory_space<vmem>>, vector<1x1x128xf32>
    %539 = vector.shape_cast %538 : vector<1x1x128xf32> to vector<1x128xf32>
    %540 = vector.broadcast %539 : vector<1x128xf32> to vector<16x128xf32>
    %541 = arith.addf %537, %540 : vector<16x128xf32>
    %cst_216 = arith.constant 0.000000e+00 : f32
    %542 = vector.broadcast %cst_216 : f32 to vector<16x128xf32>
    %543 = arith.maximumf %541, %542 : vector<16x128xf32>
    %c3_217 = arith.constant 3 : index
    %c0_218 = arith.constant 0 : index
    %c0_219 = arith.constant 0 : index
    %544 = vector.load %arg12[%c3_217, %c0_218, %c0_219] : memref<4x128x32xf32, #tpu.memory_space<vmem>>, vector<1x128x32xf32>
    %545 = vector.shape_cast %544 : vector<1x128x32xf32> to vector<128x32xf32>
    %cst_220 = arith.constant dense<0.000000e+00> : vector<16x32xf32>
    %546 = tpu.matmul %543, %545, %cst_220 {dimension_numbers = #tpu.dot_dimension_numbers<[1], [0], [0], [1], [0, 0, 1, 1], [], []>} : vector<16x128xf32>, vector<128x32xf32>, vector<16x32xf32> -> vector<16x32xf32>
    %c3_221 = arith.constant 3 : index
    %c0_222 = arith.constant 0 : index
    %c0_223 = arith.constant 0 : index
    %547 = vector.load %arg13[%c3_221, %c0_222, %c0_223] : memref<4x1x32xf32, #tpu.memory_space<vmem>>, vector<1x1x32xf32>
    %548 = vector.shape_cast %547 : vector<1x1x32xf32> to vector<1x32xf32>
    %549 = vector.broadcast %548 : vector<1x32xf32> to vector<16x32xf32>
    %550 = arith.addf %546, %549 : vector<16x32xf32>
    %551 = arith.addf %508, %550 : vector<16x32xf32>
    %552 = tpu.concatenate %143, %279, %415, %551 in 0 : vector<16x32xf32>, vector<16x32xf32>, vector<16x32xf32>, vector<16x32xf32> -> vector<64x32xf32>
    %c0_224 = arith.constant 0 : index
    %c0_225 = arith.constant 0 : index
    %553 = vector.load %arg14[%c0_224, %c0_225] : memref<32x10xf32, #tpu.memory_space<vmem>>, vector<32x10xf32>
    %cst_226 = arith.constant dense<0.000000e+00> : vector<64x10xf32>
    %554 = tpu.matmul %552, %553, %cst_226 {dimension_numbers = #tpu.dot_dimension_numbers<[1], [0], [0], [1], [0, 0, 1, 1], [], []>} : vector<64x32xf32>, vector<32x10xf32>, vector<64x10xf32> -> vector<64x10xf32>
    %c0_227 = arith.constant 0 : index
    %c0_228 = arith.constant 0 : index
    %555 = vector.load %arg15[%c0_227, %c0_228] : memref<1x10xf32, #tpu.memory_space<vmem>>, vector<1x10xf32>
    %556 = vector.broadcast %555 : vector<1x10xf32> to vector<64x10xf32>
    %557 = arith.addf %554, %556 : vector<64x10xf32>
    %c0_229 = arith.constant 0 : index
    %c0_230 = arith.constant 0 : index
    %558 = vector.load %arg16[%c0_229, %c0_230] : memref<64x10xf32, #tpu.memory_space<vmem>>, vector<64x10xf32>
    tpu.vector_store %arg16[%c0_229, %c0_230], %557 {strides = array<i32>} : memref<64x10xf32, #tpu.memory_space<vmem>>, vector<64x10xf32>,
    return
  }
}

</mosaic_0001>

<bundles_post_ra>
// kernel: forward.1
= control target key start
LH: loop header
LB: loop body
LE: loop exit
PB: predicated region body
PF: predicated region fallthrough
CT: control target
= control target key end

     0   :  { %s10750_s0 = inlined_call_operand.vmem [shape: s32[16,1], index: 0, kind: input, shape index: {}]   ;;  %s10751_s1 = inlined_call_operand.vmem [shape: f32[16,32], index: 1, kind: input, shape index: {}]   ;;  %s10752_s2 = inlined_call_operand.vmem [shape: f32[4,1,32], index: 2, kind: input, shape index: {}]   ;;  %s10753_s3 = inlined_call_operand.vmem [shape: f32[4,1,32], index: 3, kind: input, shape index: {}]   ;;  %s10754_s4 = inlined_call_operand.vmem [shape: f32[4,32,96], index: 4, kind: input, shape index: {}]   ;;  %s10755_s5 = inlined_call_operand.vmem [shape: f32[4,1,96], index: 5, kind: input, shape index: {}]   ;;  %s10756_s6 = inlined_call_operand.vmem [shape: f32[4,32,32], index: 6, kind: input, shape index: {}]   ;;  %s10757_s7 = inlined_call_operand.vmem [shape: f32[4,1,32], index: 7, kind: input, shape index: {}]   ;;  %s10758_s8 = inlined_call_operand.vmem [shape: f32[4,1,32], index: 8, kind: input, shape index: {}]   ;;  %s10759_s9 = inlined_call_operand.vmem [shape: f32[4,1,32], index: 9, kind: input, shape index: {}]   ;;  %s10760_s10 = inlined_call_operand.vmem [shape: f32[4,32,128], index: 10, kind: input, shape index: {}]   ;;  %s10761_s11 = inlined_call_operand.vmem [shape: f32[4,1,128], index: 11, kind: input, shape index: {}]   ;;  %s10762_s12 = inlined_call_operand.vmem [shape: f32[4,128,32], index: 12, kind: input, shape index: {}]   ;;  %s10763_s13 = inlined_call_operand.vmem [shape: f32[4,1,32], index: 13, kind: input, shape index: {}]   ;;  %s10764_s14 = inlined_call_operand.vmem [shape: f32[32,10], index: 14, kind: input, shape index: {}]   ;;  %s10765_s15 = inlined_call_operand.vmem [shape: f32[1,10], index: 15, kind: input, shape index: {}]   ;;  %s10766_s16 = inlined_call_operand.hbm [shape: f32[64,10], index: 16, kind: output, shape index: {}]  }
   0x1   :  { %10780 = sst [smem:[#allocation5_spill]] %s10750_s0 }
   0x2   :  { %s10781_s23 = sld [smem:[#allocation5_spill]] }
   0x8   :  { %v54_v0 = vld [vmem:[%s10781_s23] sm:$0xff] }
   0x9   :  { %21 = vsyncpa [#allocation3], 0  ;;  %v9269_v1 = vmov 0   ;;  %v70_v2 = vld [vmem:[%s10751_s1] sm:$0xff]  ;;  %v71_v3 = vld [vmem:[%s10751_s1 + $0x8] sm:$0xff]  ;;  %v9270_v6 = vmov 0.0   ;;  %v56_v7 = vlaneseq }
   0xa   :  { %9084 = vset.pattern.permute.xlu0 %v9269_v1  ;;  %v8835_v4 = vpack.c.bf16 %v71_v3, %v70_v2  ;;  %v55_v5 = vld [vmem:[%s10781_s23 + $0x8] sm:$0xff]  ;;  %vm72_vm0 = vcmask 130048   ;;  %vm156_vm3 = vcmask 261120   ;;  %v200_v27 = vld [vmem:[%s10754_s4] sm:$0xff]  ;;  %v202_v29 = vld [vmem:[%s10754_s4 + $0x10] sm:$0xff]  ;;  %s9271_s28 = smov 120  }
   0xb   :  { %59 = vperm.xlu0 %9084, %v54_v0   ;;  %v57_v8 = vand.u32 127, %v56_v7  ;;  %v201_v28 = vld [vmem:[%s10754_s4 + $0x8] sm:$0xff]  ;;  %v203_v31 = vld [vmem:[%s10754_s4 + $0x18] sm:$0xff]  ;;  %v7659_v40 = vld [vmem:[%s10752_s2] ss:$0 sm:$0xff]  ;;  %s9272_s29 = smov 104  }
   0xc   :  { %8836 = vmatprep.subr.bf16.mxu0 %v8835_v4  ;;  %v8839_v30 = vpack.c.bf16 %v201_v28, %v200_v27  ;;  %v8843_v32 = vpack.c.bf16 %v203_v31, %v202_v29  ;;  %v7660_v42 = vld [vmem:[%s10753_s3] ss:$0 sm:$0xff]  ;;  %s10778_s1 = smov 112   ;;  %vm9274_vm4 = vmmov 0   ;;  %s10776_s30 = smov 96   ;;  %vm308_vm5 = vcmask 64512  }
   0xd   :  { %8838 = vmatpush3.bf16.msra.mxu0 %v8835_v4  ;;  %v7661_v49 = vld [vmem:[%s10755_s5] ss:$0 sm:$0xff]  ;;  %s10774_s0 = smov 64   ;;  %s10772_s25 = smov 8   ;;  %vm1647_vm6 = vcmask 195584   ;;  %vm7630_vm7 = vcmask 80896  }
   0xe   :  { %8234 = vmatprep.subr.mxu0 %v9270_v6  ;;  %8840 = vmatprep.subr.bf16.mxu1 %v8839_v30  ;;  %s10770_s26 = smov 16   ;;  %s10768_s27 = smov 24  }
   0xf   :  { %62 = vperm.xlu0 %9084, %v55_v5   ;;  %8842 = vmatpush3.bf16.msra.mxu1 %v8839_v30  ;;  %s10782_s21 = smov 16   ;;  %s10783_s22 = smov 24  }
  0x10   :  { %8844 = vmatprep.subr.bf16.mxu1 %v8843_v32  ;;  %s10784_s19 = smov 64   ;;  %s10785_s24 = smov 8  }
  0x13   :  { %8846 = vmatpush3.bf16.msra.mxu1 %v8843_v32 }
  0x14   :  { %8254 = vmatprep.subr.mxu1 %v9270_v6 }
  0x8a   :  { %v60_v9 = vpop.permute.xlu0 %59 }
  0x8b   :  { %vm64_vm1 = vcmp.eq.s32.totalorder %v60_v9, %v57_v8 }
  0x8c   :  { %v7655_v10 = vsel %vm64_vm1, 1.0, %v9270_v6 }
  0x8d   :  { %8220 = vmatprep.mubr.msk.f32.mxu0 %vm72_vm0, %v7655_v10 }
  0x8e   :  { %v63_v11 = vpop.permute.xlu0 %62 }
  0x8f   :  { %vm65_vm2 = vcmp.eq.s32.totalorder %v63_v11, %v57_v8 }
  0x90   :  { %v7656_v12 = vsel %vm65_vm2, 1.0, %v9270_v6 }
  0x91   :  { %8221 = vmatmul.mubr.msk.f32.vlgmr.msra.gmra.mrb[0].mxu0 %vm72_vm0, %v7656_v12 }
  0x92   :  { %8236 = vmatprep.mubr.msk.f32.mxu0 %vm9274_vm4, %v9270_v6 }
 0x164   :  { %v9384_v13 = vpop.f32.mrb[0].mxu0 }
 0x165   :  { %v9386_v14 = vpop.f32.mrb[1].mxu0  ;;  %v160_v16 = vsel %vm156_vm3, %v9384_v13, 0.0 }
 0x166   :  { %v157_v15 = vsel %vm156_vm3, %v9386_v14, 0.0 }
 0x167   :  { %158 = vadd.xlane.f32.xlu1 %v157_v15 }
 0x16b   :  { %161 = vadd.xlane.f32.xlu1 %v160_v16 }
 0x1f4   :  { %v159_v17 = vpop.xlane.xlu1 %158 }
 0x1f5   :  { %v164_v18 = vmul.f32 0.03125, %v159_v17 }
 0x1f7   :  { %v166_v19 = vsub.f32 %v9386_v14, %v164_v18 }
 0x1f8   :  { %v162_v20 = vpop.xlane.xlu1 %161 }
 0x1f9   :  { %v165_v21 = vmul.f32 0.03125, %v162_v20  ;;  %v168_v22 = vmul.f32 %v166_v19, %v166_v19 }
 0x1fb   :  { %v167_v23 = vsub.f32 %v9384_v13, %v165_v21  ;;  %v170_v24 = vsel %vm156_vm3, %v168_v22, 0.0 }
 0x1fc   :  { %171 = vadd.xlane.f32.xlu0 %v170_v24 }
 0x1fd   :  { %v169_v25 = vmul.f32 %v167_v23, %v167_v23 }
 0x1ff   :  { %v173_v26 = vsel %vm156_vm3, %v169_v25, 0.0 }
 0x200   :  { %174 = vadd.xlane.f32.xlu1 %v173_v26 }
 0x289   :  { %v172_v33 = vpop.xlane.xlu0 %171 }
 0x28a   :  { %v176_v34 = vmul.f32 0.03125, %v172_v33 }
 0x28c   :  { %v178_v35 = vadd.f32 1e-05, %v176_v34 }
 0x28d   :  { %v175_v36 = vpop.xlane.xlu1 %174 }
 0x28e   :  { %9085 = vrsqrt.f32 %v178_v35  ;;  %v177_v37 = vmul.f32 0.03125, %v175_v36 }
 0x290   :  { %v179_v38 = vadd.f32 1e-05, %v177_v37 }
 0x292   :  { %9087 = vrsqrt.f32 %v179_v38 }
 0x298   :  { %v9086_v39 = vpop.eup %9085 }
 0x299   :  { %v182_v41 = vmul.f32 %v9086_v39, %v166_v19 }
 0x29b   :  { %v190_v43 = vmul.f32 %v7659_v40, %v182_v41 }
 0x29c   :  { %v9088_v44 = vpop.eup %9087 }
 0x29d   :  { %v183_v45 = vmul.f32 %v9088_v44, %v167_v23  ;;  %v198_v46 = vadd.f32 %v7660_v42, %v190_v43 }
 0x29f   :  { %v191_v47 = vmul.f32 %v7659_v40, %v183_v45  ;;  %8231 = vmatprep.mubr.msk.f32.mxu1 %vm156_vm3, %v198_v46 }
 0x2a1   :  { %v199_v48 = vadd.f32 %v7660_v42, %v191_v47 }
 0x2a3   :  { %8232 = vmatmul.mubr.msk.f32.vlgmr.msra.gmra.mrb[0].mxu1 %vm156_vm3, %v199_v48 }
 0x2a4   :  { %8256 = vmatprep.mubr.msk.f32.mxu1 %vm9274_vm4, %v9270_v6 }
 0x376   :  { %v8233_v50 = vpop.f32.mrb[0].mxu1 }
 0x377   :  { %v9420_v51 = vadd.f32 %v8233_v50, %v7661_v49  ;;  %v283_v52 = vpop.f32.mrb[1].mxu1 }
 0x378   :  { %v9422_v53 = vadd.f32 %v7661_v49, %v283_v52 }
 0x379   :  { %296 = vrot.lane.b32.xlu1 %v9420_v51, %s9271_s28 }
 0x37a   :  { %302 = vrot.lane.b32.xlu0 %v9422_v53, %s9272_s29 }
 0x37d   :  { %294 = vrot.lane.b32.xlu1 %v9422_v53, %s9271_s28 }
 0x381   :  { %298 = vrot.lane.b32.xlu1 %v9422_v53, %s10778_s1 }
 0x385   :  { %300 = vrot.lane.b32.xlu1 %v9420_v51, %s10778_s1 }
 0x389   :  { %304 = vrot.lane.b32.xlu1 %v9420_v51, %s9272_s29 }
 0x38d   :  { %306 = vrot.lane.b32.xlu1 %v9422_v53, %s10776_s30 }
 0x391   :  { %383 = vrot.lane.b32.xlu1 %v9420_v51, %s10776_s30 }
 0x3eb   :  { %v9444_v54 = vpop.permute.xlu1 %296 }
 0x3ec   :  { %v9456_v57 = vpop.permute.xlu0 %302 }
 0x3ef   :  { %v9446_v55 = vpop.permute.xlu1 %294 }
 0x3f0   :  { %459 = vrot.lane.b32.xlu1 %v9446_v55, %s10776_s30 }
 0x3f3   :  { %v9450_v56 = vpop.permute.xlu1 %298 }
 0x3f4   :  { %535 = vrot.lane.b32.xlu1 %v9444_v54, %s10776_s30  ;;  %611 = vrot.lane.b32.xlu0 %v9450_v56, %s10776_s30 }
 0x3f7   :  { %v9458_v58 = vpop.permute.xlu1 %300 }
 0x3f8   :  { %763 = vrot.lane.b32.xlu0 %v9456_v57, %s10776_s30  ;;  %687 = vrot.lane.b32.xlu1 %v9458_v58, %s10776_s30 }
 0x3fb   :  { %v9464_v59 = vpop.permute.xlu1 %304 }
 0x3fc   :  { %839 = vrot.lane.b32.xlu1 %v9464_v59, %s10776_s30 }
 0x3ff   :  { %v307_v60 = vpop.permute.xlu1 %306 }
 0x400   :  { %8235 = vmatpush3.xpose.msk.msra.mxu0 %vm308_vm5, %v307_v60 }
 0x401   :  { %8239 = vmatprep.subr.mxu0 %v9270_v6 }
 0x403   :  { %8237 = vmatmul.mubr.msk.f32.vlgmr.msra.gmra.mrb[2].mxu0 %vm308_vm5, %v9422_v53  ;;  %v384_v61 = vpop.permute.xlu1 %383 }
 0x404   :  { %8240 = vmatpush3.xpose.msk.msra.mxu0 %vm308_vm5, %v384_v61  ;;  %8241 = vmatprep.mubr.msk.f32.mxu0 %vm9274_vm4, %v9270_v6 }
 0x405   :  { %8244 = vmatprep.subr.mxu0 %v9270_v6 }
 0x407   :  { %8242 = vmatmul.mubr.msk.f32.vlgmr.msra.gmra.mrb[4].mxu0 %vm308_vm5, %v9420_v51 }
 0x408   :  { %8246 = vmatprep.mubr.msk.f32.mxu0 %vm9274_vm4, %v9270_v6 }
 0x462   :  { %v460_v62 = vpop.permute.xlu1 %459 }
 0x463   :  { %8245 = vmatpush3.xpose.msk.msra.mxu0 %vm308_vm5, %v460_v62 }
 0x464   :  { %8249 = vmatprep.subr.mxu0 %v9270_v6 }
 0x466   :  { %v612_v63 = vpop.permute.xlu0 %611  ;;  %8247 = vmatmul.mubr.msk.f32.vlgmr.msra.gmra.mrb[6].mxu0 %vm308_vm5, %v9446_v55  ;;  %v536_v0 = vpop.permute.xlu1 %535 }
 0x467   :  { %8250 = vmatpush3.xpose.msk.msra.mxu0 %vm308_vm5, %v536_v0  ;;  %8255 = vmatpush3.xpose.msk.msra.mxu1 %vm308_vm5, %v612_v63 }
 0x468   :  { %8251 = vmatprep.mubr.msk.f32.mxu0 %vm9274_vm4, %v9270_v6  ;;  %8264 = vmatprep.subr.mxu1 %v9270_v6 }
 0x469   :  { %8259 = vmatprep.subr.mxu0 %v9270_v6 }
 0x46a   :  { %8257 = vmatmul.mubr.msk.f32.vlgmr.msra.gmra.mrb[2].mxu1 %vm308_vm5, %v9450_v56  ;;  %v764_v1 = vpop.permute.xlu0 %763  ;;  %8252 = vmatmul.mubr.msk.f32.vlgmr.msra.gmra.mrb[8].mxu0 %vm308_vm5, %v9444_v54  ;;  %v688_v2 = vpop.permute.xlu1 %687 }
 0x46b   :  { %8260 = vmatpush3.xpose.msk.msra.mxu0 %vm308_vm5, %v688_v2  ;;  %8265 = vmatpush3.xpose.msk.msra.mxu1 %vm308_vm5, %v764_v1 }
 0x46c   :  { %8261 = vmatprep.mubr.msk.f32.mxu0 %vm9274_vm4, %v9270_v6  ;;  %8266 = vmatprep.mubr.msk.f32.mxu1 %vm9274_vm4, %v9270_v6 }
 0x46d   :  { %8269 = vmatprep.subr.mxu0 %v9270_v6  ;;  %8274 = vmatprep.subr.mxu1 %v9270_v6 }
 0x46e   :  { %8262 = vmatmul.mubr.msk.f32.vlgmr.msra.gmra.mrb[10].mxu0 %vm308_vm5, %v9458_v58  ;;  %8267 = vmatmul.mubr.msk.f32.vlgmr.msra.gmra.mrb[4].mxu1 %vm308_vm5, %v9456_v57  ;;  %v840_v3 = vpop.permute.xlu1 %839 }
 0x46f   :  { %8270 = vmatpush3.xpose.msk.msra.mxu0 %vm308_vm5, %v840_v3  ;;  %8271 = vmatprep.mubr.msk.f32.mxu0 %vm9274_vm4, %v9270_v6 }
 0x470   :  { %8279 = vmatprep.subr.mxu0 %v9270_v6  ;;  %8276 = vmatprep.mubr.msk.f32.mxu1 %vm9274_vm4, %v9270_v6 }
 0x472   :  { %8272 = vmatmul.mubr.msk.f32.vlgmr.msra.gmra.mrb[12].mxu0 %vm308_vm5, %v9464_v59 }
 0x473   :  { %8281 = vmatprep.mubr.msk.f32.mxu0 %vm9274_vm4, %v9270_v6 }
 0x4d6   :  { %v379_v4 = vpop.f32.mrb[2].mxu0 }
 0x4d7   :  { %v8238_v5 = vpop.f32.mrb[3].mxu0  ;;  %v915_v7 = vsel %vm308_vm5, %v379_v4, -inf }
 0x4d8   :  { %916 = vmax.xlane.f32.xlu0 %v915_v7 }
 0x4da   :  { %v455_v8 = vpop.f32.mrb[4].mxu0 }
 0x4db   :  { %v8243_v9 = vpop.f32.mrb[5].mxu0  ;;  %v918_v10 = vsel %vm308_vm5, %v455_v8, -inf }
 0x4dc   :  { %919 = vmax.xlane.f32.xlu1 %v918_v10 }
 0x539   :  { %v531_v11 = vpop.f32.mrb[6].mxu0 }
 0x53a   :  { %v8248_v12 = vpop.f32.mrb[7].mxu0  ;;  %v921_v15 = vsel %vm308_vm5, %v531_v11, -inf }
 0x53b   :  { %922 = vmax.xlane.f32.xlu0 %v921_v15 }
 0x53d   :  { %v607_v16 = vpop.f32.mrb[8].mxu0  ;;  %v683_v17 = vpop.f32.mrb[2].mxu1 }
 0x53e   :  { %v8253_v18 = vpop.f32.mrb[9].mxu0  ;;  %v8258_v19 = vpop.f32.mrb[3].mxu1  ;;  %v927_v20 = vsel %vm308_vm5, %v683_v17, -inf  ;;  %v924_v21 = vsel %vm308_vm5, %v607_v16, -inf }
 0x53f   :  { %928 = vmax.xlane.f32.xlu1 %v927_v20  ;;  %925 = vmax.xlane.f32.xlu0 %v924_v21 }
 0x541   :  { %v759_v22 = vpop.f32.mrb[10].mxu0  ;;  %v835_v23 = vpop.f32.mrb[4].mxu1 }
 0x542   :  { %v8263_v24 = vpop.f32.mrb[11].mxu0  ;;  %v8268_v25 = vpop.f32.mrb[5].mxu1  ;;  %v933_v26 = vsel %vm308_vm5, %v835_v23, -inf  ;;  %v930_v27 = vsel %vm308_vm5, %v759_v22, -inf }
 0x543   :  { %934 = vmax.xlane.f32.xlu1 %v933_v26  ;;  %931 = vmax.xlane.f32.xlu0 %v930_v27 }
 0x545   :  { %v911_v28 = vpop.f32.mrb[12].mxu0 }
 0x546   :  { %v8273_v29 = vpop.f32.mrb[13].mxu0  ;;  %v936_v30 = vsel %vm308_vm5, %v911_v28, -inf }
 0x547   :  { %937 = vmax.xlane.f32.xlu0 %v936_v30 }
 0x554   :  { %1011 = vrot.lane.b32.xlu1 %v9422_v53, %s10774_s0 }
 0x558   :  { %1163 = vrot.lane.b32.xlu1 %v9446_v55, %s10774_s0 }
 0x55c   :  { %1239 = vrot.lane.b32.xlu1 %v9444_v54, %s10774_s0 }
 0x55d   :  { %1087 = vrot.lane.b32.xlu0 %v9420_v51, %s10774_s0 }
 0x560   :  { %1391 = vrot.lane.b32.xlu1 %v9458_v58, %s10774_s0 }
 0x561   :  { %1315 = vrot.lane.b32.xlu0 %v9450_v56, %s10774_s0 }
 0x565   :  { %v917_v33 = vpop.xlane.xlu0 %916 }
 0x566   :  { %v939_v34 = vsub.f32 %v379_v4, %v917_v33 }
 0x568   :  { %v947_v36 = vmul.f32 1.442695, %v939_v34 }
 0x569   :  { %v920_v31 = vpop.xlane.xlu1 %919 }
 0x56a   :  { %v940_v32 = vsub.f32 %v455_v8, %v920_v31 }
 0x56c   :  { %v949_v35 = vmul.f32 1.442695, %v940_v32 }
 0x56e   :  { %9089 = vpow2.f32 %v949_v35 }
 0x56f   :  { %9091 = vpow2.f32 %v947_v36 }
 0x578   :  { %v9536_v37 = vpop.eup %9089 }
 0x579   :  { %v966_v38 = vsel %vm308_vm5, %v9536_v37, 0.0  ;;  %v9540_v39 = vpop.eup %9091 }
 0x57a   :  { %v963_v40 = vsel %vm308_vm5, %v9540_v39, 0.0 }
 0x580   :  { %967 = vadd.xlane.f32.xlu0 %v966_v38 }
 0x584   :  { %964 = vadd.xlane.f32.xlu1 %v963_v40 }
 0x5c8   :  { %v923_v41 = vpop.xlane.xlu0 %922 }
 0x5c9   :  { %v941_v42 = vsub.f32 %v531_v11, %v923_v41 }
 0x5cb   :  { %v951_v43 = vmul.f32 1.442695, %v941_v42 }
 0x5cc   :  { %v926_v44 = vpop.xlane.xlu0 %925  ;;  %v929_v45 = vpop.xlane.xlu1 %928 }
 0x5cd   :  { %9093 = vpow2.f32 %v951_v43  ;;  %v942_v46 = vsub.f32 %v607_v16, %v926_v44  ;;  %v943_v47 = vsub.f32 %v683_v17, %v929_v45 }
 0x5cf   :  { %v953_v48 = vmul.f32 1.442695, %v942_v46  ;;  %v955_v49 = vmul.f32 1.442695, %v943_v47  ;;  %v1650_v46 = vld [vmem:[%s10756_s6] sm:$0xff]  ;;  %v1651_v47 = vld [vmem:[%s10756_s6 + $0x8] sm:$0xff] }
 0x5d0   :  { %v932_v50 = vpop.xlane.xlu0 %931  ;;  %v935_v51 = vpop.xlane.xlu1 %934 }
 0x5d1   :  { %9095 = vpow2.f32 %v953_v48  ;;  %v944_v52 = vsub.f32 %v759_v22, %v932_v50  ;;  %v945_v53 = vsub.f32 %v835_v23, %v935_v51  ;;  %v8847_v48 = vpack.c.bf16 %v1651_v47, %v1650_v46  ;;  %v1653_v50 = vld [vmem:[%s10756_s6 + $0x18] sm:$0xff]  ;;  %v1888_v47 = vld [vmem:[%s10762_s12 + $0x30] sm:$0xff] }
 0x5d2   :  { %9097 = vpow2.f32 %v955_v49  ;;  %v1652_v49 = vld [vmem:[%s10756_s6 + $0x10] sm:$0xff] }
 0x5d3   :  { %v957_v54 = vmul.f32 1.442695, %v944_v52  ;;  %v959_v55 = vmul.f32 1.442695, %v945_v53  ;;  %v8851_v51 = vpack.c.bf16 %v1653_v50, %v1652_v49  ;;  %v1890_v50 = vld [vmem:[%s10762_s12 + $0x40] sm:$0xff] }
 0x5d4   :  { %v938_v56 = vpop.xlane.xlu0 %937  ;;  %v1012_v58 = vpop.permute.xlu1 %1011 }
 0x5d5   :  { %9099 = vpow2.f32 %v957_v54  ;;  %v946_v60 = vsub.f32 %v911_v28, %v938_v56  ;;  %8275 = vmatpush3.msra.mxu1 %v1012_v58 }
 0x5d6   :  { %9101 = vpow2.f32 %v959_v55  ;;  %8284 = vmatprep.subr.mxu1 %v9270_v6 }
 0x5d7   :  { %v9094_v61 = vpop.eup %9093  ;;  %v961_v62 = vmul.f32 1.442695, %v946_v60 }
 0x5d8   :  { %v1088_v63 = vpop.permute.xlu0 %1087  ;;  %v969_v0 = vsel %vm308_vm5, %v9094_v61, 0.0  ;;  %v1164_v12 = vpop.permute.xlu1 %1163 }
 0x5d9   :  { %9103 = vpow2.f32 %v961_v62  ;;  %970 = vadd.xlane.f32.xlu1 %v969_v0  ;;  %8280 = vmatpush3.msra.mxu0 %v1088_v63 }
 0x5da   :  { %8289 = vmatprep.subr.mxu0 %v9270_v6 }
 0x5db   :  { %v9096_v1 = vpop.eup %9095 }
 0x5dc   :  { %v9098_v2 = vpop.eup %9097  ;;  %v972_v3 = vsel %vm308_vm5, %v9096_v1, 0.0  ;;  %v1240_v15 = vpop.permute.xlu1 %1239 }
 0x5dd   :  { %973 = vadd.xlane.f32.xlu0 %v972_v3  ;;  %v975_v4 = vsel %vm308_vm5, %v9098_v2, 0.0  ;;  %v1316_v16 = vpop.permute.xlu0 %1315 }
 0x5de   :  { %976 = vadd.xlane.f32.xlu1 %v975_v4 }
 0x5df   :  { %v9100_v5 = vpop.eup %9099 }
 0x5e0   :  { %v9549_v7 = vpop.eup %9101  ;;  %v978_v8 = vsel %vm308_vm5, %v9100_v5, 0.0  ;;  %v1392_v17 = vpop.permute.xlu1 %1391 }
 0x5e1   :  { %979 = vadd.xlane.f32.xlu0 %v978_v8  ;;  %v981_v9 = vsel %vm308_vm5, %v9549_v7, 0.0 }
 0x5e2   :  { %982 = vadd.xlane.f32.xlu1 %v981_v9 }
 0x5e3   :  { %v9554_v10 = vpop.eup %9103 }
 0x5e4   :  { %v984_v11 = vsel %vm308_vm5, %v9554_v10, 0.0 }
 0x5e5   :  { %985 = vadd.xlane.f32.xlu0 %v984_v11 }
 0x5f3   :  { %1543 = vrot.lane.b32.xlu1 %v9464_v59, %s10774_s0 }
 0x5fb   :  { %1467 = vrot.lane.b32.xlu0 %v9456_v57, %s10774_s0 }
 0x60d   :  { %v968_v18 = vpop.xlane.xlu0 %967 }
 0x60e   :  { %9105 = vrcp.f32 %v968_v18 }
 0x611   :  { %v965_v19 = vpop.xlane.xlu1 %964 }
 0x612   :  { %9107 = vrcp.f32 %v965_v19 }
 0x618   :  { %v9106_v20 = vpop.eup %9105 }
 0x619   :  { %v1004_v21 = vmul.f32 %v9106_v20, %v9536_v37 }
 0x61b   :  { %8282 = vmatmul.mubr.msk.f32.vlgmr.msra.gmra.mrb[14].mxu0 %vm308_vm5, %v1004_v21 }
 0x61c   :  { %v9108_v22 = vpop.eup %9107  ;;  %8290 = vmatpush3.msra.mxu0 %v1240_v15  ;;  %8291 = vmatprep.mubr.msk.f32.mxu0 %vm9274_vm4, %v9270_v6 }
 0x61d   :  { %v1003_v57 = vmul.f32 %v9108_v22, %v9540_v39  ;;  %8299 = vmatprep.subr.mxu0 %v9270_v6 }
 0x61f   :  { %8277 = vmatmul.mubr.msk.f32.vlgmr.msra.gmra.mrb[6].mxu1 %vm308_vm5, %v1003_v57 }
 0x620   :  { %8285 = vmatpush3.msra.mxu1 %v1164_v12  ;;  %8286 = vmatprep.mubr.msk.f32.mxu1 %vm9274_vm4, %v9270_v6 }
 0x621   :  { %8294 = vmatprep.subr.mxu1 %v9270_v6 }
 0x666   :  { %v971_v59 = vpop.xlane.xlu1 %970 }
 0x667   :  { %9109 = vrcp.f32 %v971_v59 }
 0x66a   :  { %v974_v23 = vpop.xlane.xlu0 %973 }
 0x66b   :  { %9111 = vrcp.f32 %v974_v23  ;;  %v977_v24 = vpop.xlane.xlu1 %976 }
 0x66c   :  { %9113 = vrcp.f32 %v977_v24 }
 0x66e   :  { %v980_v25 = vpop.xlane.xlu0 %979 }
 0x66f   :  { %9115 = vrcp.f32 %v980_v25  ;;  %v983_v26 = vpop.xlane.xlu1 %982 }
 0x670   :  { %9117 = vrcp.f32 %v983_v26 }
 0x671   :  { %v9110_v27 = vpop.eup %9109 }
 0x672   :  { %v986_v28 = vpop.xlane.xlu0 %985  ;;  %v1005_v29 = vmul.f32 %v9110_v27, %v9094_v61 }
 0x673   :  { %9119 = vrcp.f32 %v986_v28  ;;  %v1544_v39 = vpop.permute.xlu1 %1543 }
 0x674   :  { %8287 = vmatmul.mubr.msk.f32.vlgmr.msra.gmra.mrb[8].mxu1 %vm308_vm5, %v1005_v29 }
 0x675   :  { %v9112_v30 = vpop.eup %9111  ;;  %8295 = vmatpush3.msra.mxu1 %v1316_v16  ;;  %8296 = vmatprep.mubr.msk.f32.mxu1 %vm9274_vm4, %v9270_v6 }
 0x676   :  { %v9114_v31 = vpop.eup %9113  ;;  %8304 = vmatprep.subr.mxu1 %v9270_v6  ;;  %v1006_v32 = vmul.f32 %v9112_v30, %v9096_v1  ;;  %v1468_v33 = vpop.permute.xlu0 %1467 }
 0x677   :  { %v1007_v34 = vmul.f32 %v9114_v31, %v9098_v2 }
 0x678   :  { %8292 = vmatmul.mubr.msk.f32.vlgmr.msra.gmra.mrb[16].mxu0 %vm308_vm5, %v1006_v32  ;;  %v1788_v32 = vld [vmem:[%s10760_s10] sm:$0xff] }
 0x679   :  { %v9116_v35 = vpop.eup %9115  ;;  %8297 = vmatmul.mubr.msk.f32.vlgmr.msra.gmra.mrb[10].mxu1 %vm308_vm5, %v1007_v34  ;;  %8300 = vmatpush3.msra.mxu0 %v1392_v17  ;;  %v7688_v17 = vld [vmem:[%s10757_s7] ss:$0 sm:$0xff]  ;;  %v1790_v34 = vld [vmem:[%s10760_s10 + $0x10] sm:$0xff] }
 0x67a   :  { %v9118_v36 = vpop.eup %9117  ;;  %8305 = vmatpush3.msra.mxu1 %v1468_v33  ;;  %8301 = vmatprep.mubr.msk.f32.mxu0 %vm9274_vm4, %v9270_v6  ;;  %v1008_v37 = vmul.f32 %v9116_v35, %v9100_v5  ;;  %v1789_v33 = vld [vmem:[%s10760_s10 + $0x8] sm:$0xff] }
 0x67b   :  { %8306 = vmatprep.mubr.msk.f32.mxu1 %vm9274_vm4, %v9270_v6  ;;  %8309 = vmatprep.subr.mxu0 %v9270_v6  ;;  %v1009_v38 = vmul.f32 %v9118_v36, %v9549_v7  ;;  %v8855_v35 = vpack.c.bf16 %v1789_v33, %v1788_v32  ;;  %v1791_v36 = vld [vmem:[%s10760_s10 + $0x18] sm:$0xff] }
 0x67c   :  { %8302 = vmatmul.mubr.msk.f32.vlgmr.msra.gmra.mrb[18].mxu0 %vm308_vm5, %v1008_v37  ;;  %8848 = vmatprep.subr.bf16.mxu1 %v8847_v48  ;;  %v8859_v37 = vpack.c.bf16 %v1791_v36, %v1790_v34 }
 0x67d   :  { %v9120_v40 = vpop.eup %9119  ;;  %8307 = vmatmul.mubr.msk.f32.vlgmr.msra.gmra.mrb[12].mxu1 %vm308_vm5, %v1009_v38  ;;  %8310 = vmatpush3.msra.mxu0 %v1544_v39  ;;  %v1882_v38 = vld [vmem:[%s10762_s12] sm:$0xff]  ;;  %v1883_v39 = vld [vmem:[%s10762_s12 + $0x8] sm:$0xff] }
 0x67e   :  { %8311 = vmatprep.mubr.msk.f32.mxu0 %vm9274_vm4, %v9270_v6  ;;  %v1010_v41 = vmul.f32 %v9120_v40, %v9554_v10  ;;  %8850 = vmatpush3.bf16.msra.mxu1 %v8847_v48  ;;  %v1884_v40 = vld [vmem:[%s10762_s12 + $0x10] sm:$0xff]  ;;  %v1889_v48 = vld [vmem:[%s10762_s12 + $0x38] sm:$0xff] }
 0x67f   :  { %8852 = vmatprep.subr.bf16.mxu1 %v8851_v51  ;;  %8856 = vmatprep.subr.bf16.mxu0 %v8855_v35  ;;  %v8875_v49 = vpack.c.bf16 %v1889_v48, %v1888_v47 }
 0x680   :  { %8312 = vmatmul.mubr.msk.f32.vlgmr.msra.gmra.mrb[20].mxu0 %vm308_vm5, %v1010_v41  ;;  %v8863_v41 = vpack.c.bf16 %v1883_v39, %v1882_v38 }
 0x681   :  { %8858 = vmatpush3.bf16.msra.mxu0 %v8855_v35 }
 0x682   :  { %8854 = vmatpush3.bf16.msra.mxu1 %v8851_v51  ;;  %8860 = vmatprep.subr.bf16.mxu0 %v8859_v37  ;;  %v1891_v51 = vld [vmem:[%s10762_s12 + $0x48] sm:$0xff] }
 0x683   :  { %8864 = vmatprep.subr.bf16.mxu1 %v8863_v41 }
 0x685   :  { %8862 = vmatpush3.bf16.msra.mxu0 %v8859_v37 }
 0x6ee   :  { %v1159_v42 = vpop.f32.mrb[14].mxu0 }
 0x6ef   :  { %v8283_v43 = vpop.f32.mrb[15].mxu0 }
 0x6f2   :  { %v1083_v44 = vpop.f32.mrb[6].mxu1 }
 0x6f3   :  { %v8278_v45 = vpop.f32.mrb[7].mxu1 }
 0x6f4   :  { %v1887_v45 = vld [vmem:[%s10762_s12 + $0x28] sm:$0xff] }
 0x747   :  { %v1235_v52 = vpop.f32.mrb[8].mxu1 }
 0x748   :  { %1621 = vrot.lane.b32.xlu0 %v1235_v52, %s10772_s25  ;;  %v8288_v53 = vpop.f32.mrb[9].mxu1  ;;  %v8879_v52 = vpack.c.bf16 %v1891_v51, %v1890_v50 }
 0x749   :  { %v1892_v53 = vld [vmem:[%s10762_s12 + $0x50] sm:$0xff] }
 0x74b   :  { %v1311_v54 = vpop.f32.mrb[16].mxu0 }
 0x74c   :  { %v1387_v55 = vpop.f32.mrb[10].mxu1  ;;  %1623 = vrot.lane.b32.xlu1 %v1311_v54, %s10772_s25  ;;  %v8293_v56 = vpop.f32.mrb[17].mxu0  ;;  %v1893_v54 = vld [vmem:[%s10762_s12 + $0x58] sm:$0xff] }
 0x74d   :  { %1629 = vrot.lane.b32.xlu0 %v1387_v55, %s10770_s26  ;;  %v8298_v58 = vpop.f32.mrb[11].mxu1  ;;  %v8883_v55 = vpack.c.bf16 %v1893_v54, %v1892_v53  ;;  %v1894_v56 = vld [vmem:[%s10762_s12 + $0x60] sm:$0xff] }
 0x74e   :  { %v1895_v58 = vld [vmem:[%s10762_s12 + $0x68] sm:$0xff]  ;;  %v7699_v54 = vld [vmem:[%s10752_s2 + $0x1] ss:$0 sm:$0xff] }
 0x74f   :  { %v1463_v60 = vpop.f32.mrb[18].mxu0 }
 0x750   :  { %v1539_v61 = vpop.f32.mrb[12].mxu1  ;;  %1631 = vrot.lane.b32.xlu1 %v1463_v60, %s10770_s26  ;;  %v8303_v62 = vpop.f32.mrb[19].mxu0  ;;  %v8887_v60 = vpack.c.bf16 %v1895_v58, %v1894_v56 }
 0x751   :  { %1637 = vrot.lane.b32.xlu0 %v1539_v61, %s10768_s27  ;;  %v8308_v63 = vpop.f32.mrb[13].mxu1 }
 0x753   :  { %v1615_v0 = vpop.f32.mrb[20].mxu0 }
 0x754   :  { %1639 = vrot.lane.b32.xlu1 %v1615_v0, %s10768_s27  ;;  %v8313_v1 = vpop.f32.mrb[21].mxu0 }
 0x7ba   :  { %v1622_v2 = vpop.permute.xlu0 %1621 }
 0x7bb   :  { %v1643_v5 = vsel %vm308_vm5, %v1083_v44, %v1622_v2  ;;  %v1886_v44 = vld [vmem:[%s10762_s12 + $0x20] sm:$0xff] }
 0x7bc   :  { %v8871_v46 = vpack.c.bf16 %v1887_v45, %v1886_v44  ;;  %v7704_v45 = vld [vmem:[%s10754_s4 + $0x38] sm:$0xff] }
 0x7be   :  { %v1624_v3 = vpop.permute.xlu1 %1623 }
 0x7bf   :  { %v1630_v4 = vpop.permute.xlu0 %1629  ;;  %v1644_v11 = vsel %vm308_vm5, %v1159_v42, %v1624_v3  ;;  %v1885_v42 = vld [vmem:[%s10762_s12 + $0x18] sm:$0xff] }
 0x7c0   :  { %v1645_v8 = vsel %vm72_vm0, %v1643_v5, %v1630_v4  ;;  %v8867_v43 = vpack.c.bf16 %v1885_v42, %v1884_v40  ;;  %v7691_v4 = vld [vmem:[%s10758_s8] ss:$0 sm:$0xff]  ;;  %v7702_v42 = vld [vmem:[%s10754_s4 + $0x28] sm:$0xff] }
 0x7c2   :  { %v1632_v7 = vpop.permute.xlu1 %1631 }
 0x7c3   :  { %v1638_v9 = vpop.permute.xlu0 %1637  ;;  %v1646_v12 = vsel %vm72_vm0, %v1644_v11, %v1632_v7  ;;  %v7692_v7 = vld [vmem:[%s10759_s9] ss:$0 sm:$0xff] }
 0x7c4   :  { %v1648_v10 = vsel %vm1647_vm6, %v1645_v8, %v1638_v9 }
 0x7c5   :  { %8322 = vmatprep.mubr.msk.f32.mxu1 %vm156_vm3, %v1648_v10 }
 0x7c6   :  { %v1640_v15 = vpop.permute.xlu1 %1639 }
 0x7c7   :  { %v1649_v16 = vsel %vm1647_vm6, %v1646_v12, %v1640_v15 }
 0x7c8   :  { %8323 = vmatmul.mubr.msk.f32.vlgmr.msra.gmra.mrb[14].mxu1 %vm156_vm3, %v1649_v16  ;;  %v1896_v16 = vld [vmem:[%s10762_s12 + $0x70] sm:$0xff] }
 0x7c9   :  { %8866 = vmatpush3.bf16.msra.mxu1 %v8863_v41  ;;  %v7701_v41 = vld [vmem:[%s10754_s4 + $0x20] sm:$0xff] }
 0x7ca   :  { %8868 = vmatprep.subr.bf16.mxu1 %v8867_v43  ;;  %v8895_v44 = vpack.c.bf16 %v7702_v42, %v7701_v41 }
 0x7cc   :  { %8896 = vmatprep.subr.bf16.mxu0 %v8895_v44 }
 0x7cd   :  { %8870 = vmatpush3.bf16.msra.mxu1 %v8867_v43  ;;  %v7703_v43 = vld [vmem:[%s10754_s4 + $0x30] sm:$0xff] }
 0x7ce   :  { %8872 = vmatprep.subr.bf16.mxu1 %v8871_v46 }
 0x7d1   :  { %8874 = vmatpush3.bf16.msra.mxu1 %v8871_v46  ;;  %v8899_v46 = vpack.c.bf16 %v7704_v45, %v7703_v43 }
 0x7d2   :  { %8876 = vmatprep.subr.bf16.mxu1 %v8875_v49 }
 0x7d5   :  { %8878 = vmatpush3.bf16.msra.mxu1 %v8875_v49 }
 0x7d6   :  { %8880 = vmatprep.subr.bf16.mxu1 %v8879_v52 }
 0x7d9   :  { %8882 = vmatpush3.bf16.msra.mxu1 %v8879_v52 }
 0x7da   :  { %8884 = vmatprep.subr.bf16.mxu1 %v8883_v55 }
 0x7dd   :  { %8886 = vmatpush3.bf16.msra.mxu1 %v8883_v55 }
 0x7de   :  { %8888 = vmatprep.subr.bf16.mxu1 %v8887_v60 }
 0x7e1   :  { %8890 = vmatpush3.bf16.msra.mxu1 %v8887_v60  ;;  %v7700_v60 = vld [vmem:[%s10753_s3 + $0x1] ss:$0 sm:$0xff] }
 0x89b   :  { %v8324_v18 = vpop.f32.mrb[14].mxu1 }
 0x89c   :  { %v1739_v19 = vadd.f32 %v8324_v18, %v7688_v17  ;;  %v1733_v20 = vpop.f32.mrb[15].mxu1 }
 0x89d   :  { %v1734_v21 = vadd.f32 %v7688_v17, %v1733_v20  ;;  %v1897_v17 = vld [vmem:[%s10762_s12 + $0x78] sm:$0xff] }
 0x89e   :  { %v9620_v22 = vadd.f32 %v9384_v13, %v1739_v19  ;;  %v8891_v18 = vpack.c.bf16 %v1897_v17, %v1896_v16  ;;  %v7693_v19 = vld [vmem:[%s10761_s11] ss:$0 sm:$0xff] }
 0x89f   :  { %v9623_v57 = vadd.f32 %v1734_v21, %v9386_v14 }
 0x8a0   :  { %v1749_v59 = vsel %vm156_vm3, %v9620_v22, 0.0  ;;  %8892 = vmatprep.subr.bf16.mxu1 %v8891_v18 }
 0x8a1   :  { %1750 = vadd.xlane.f32.xlu1 %v1749_v59  ;;  %v1746_v23 = vsel %vm156_vm3, %v9623_v57, 0.0  ;;  %8894 = vmatpush3.bf16.msra.mxu1 %v8891_v18 }
 0x8a2   :  { %1747 = vadd.xlane.f32.xlu0 %v1746_v23  ;;  %8412 = vmatprep.subr.mxu1 %v9270_v6 }
 0x92e   :  { %v1751_v24 = vpop.xlane.xlu1 %1750 }
 0x92f   :  { %v1753_v25 = vmul.f32 0.03125, %v1751_v24  ;;  %v1748_v26 = vpop.xlane.xlu0 %1747 }
 0x930   :  { %v1752_v27 = vmul.f32 0.03125, %v1748_v26  ;;  %v7696_v26 = vld [vmem:[%s10763_s13] ss:$0 sm:$0xff] }
 0x931   :  { %v9630_v28 = vsub.f32 %v9620_v22, %v1753_v25 }
 0x932   :  { %v1754_v13 = vsub.f32 %v9623_v57, %v1752_v27 }
 0x933   :  { %v1757_v30 = vmul.f32 %v9630_v28, %v9630_v28 }
 0x934   :  { %v1756_v29 = vmul.f32 %v1754_v13, %v1754_v13 }
 0x935   :  { %v1761_v31 = vsel %vm156_vm3, %v1757_v30, 0.0 }
 0x936   :  { %v1758_v14 = vsel %vm156_vm3, %v1756_v29, 0.0 }
 0x937   :  { %1759 = vadd.xlane.f32.xlu0 %v1758_v14 }
 0x93b   :  { %1762 = vadd.xlane.f32.xlu0 %v1761_v31 }
 0x9c4   :  { %v1760_v61 = vpop.xlane.xlu0 %1759 }
 0x9c5   :  { %v1764_v62 = vmul.f32 0.03125, %v1760_v61 }
 0x9c7   :  { %v1766_v63 = vadd.f32 1e-05, %v1764_v62 }
 0x9c8   :  { %v1763_v0 = vpop.xlane.xlu0 %1762 }
 0x9c9   :  { %9121 = vrsqrt.f32 %v1766_v63  ;;  %v1765_v1 = vmul.f32 0.03125, %v1763_v0 }
 0x9cb   :  { %v1767_v2 = vadd.f32 1e-05, %v1765_v1  ;;  %v7706_v1 = vld [vmem:[%s10755_s5 + $0x1] ss:$0 sm:$0xff] }
 0x9cd   :  { %9123 = vrsqrt.f32 %v1767_v2 }
 0x9d3   :  { %v9122_v3 = vpop.eup %9121 }
 0x9d4   :  { %v1770_v5 = vmul.f32 %v9122_v3, %v1754_v13 }
 0x9d6   :  { %v1778_v8 = vmul.f32 %v7691_v4, %v1770_v5 }
 0x9d7   :  { %v9124_v9 = vpop.eup %9123 }
 0x9d8   :  { %v1771_v10 = vmul.f32 %v9124_v9, %v9630_v28  ;;  %v1786_v11 = vadd.f32 %v7692_v7, %v1778_v8 }
 0x9da   :  { %v1779_v12 = vmul.f32 %v7691_v4, %v1771_v10  ;;  %8333 = vmatprep.mubr.msk.f32.mxu0 %vm156_vm3, %v1786_v11 }
 0x9dc   :  { %v1787_v15 = vadd.f32 %v7692_v7, %v1779_v12 }
 0x9de   :  { %8334 = vmatmul.mubr.msk.f32.vlgmr.msra.gmra.mrb[22].mxu0 %vm156_vm3, %v1787_v15 }
 0x9df   :  { %8898 = vmatpush3.bf16.msra.mxu0 %v8895_v44 }
 0x9e0   :  { %8900 = vmatprep.subr.bf16.mxu0 %v8899_v46 }
 0x9e3   :  { %8902 = vmatpush3.bf16.msra.mxu0 %v8899_v46 }
 0x9e4   :  { %8382 = vmatprep.subr.mxu0 %v9270_v6 }
 0xab1   :  { %v8335_v20 = vpop.f32.mrb[22].mxu0 }
 0xab2   :  { %v1877_v21 = vadd.f32 %v8335_v20, %v7693_v19  ;;  %v1871_v59 = vpop.f32.mrb[23].mxu0 }
 0xab3   :  { %v1872_v23 = vadd.f32 %v7693_v19, %v1871_v59 }
 0xab4   :  { %v1881_v25 = vmax.f32 %v1877_v21, 0.0 }
 0xab5   :  { %v1880_v24 = vmax.f32 %v1872_v23, 0.0 }
 0xab7   :  { %8368 = vmatprep.mubr.f32.mxu1 %v1880_v24 }
 0xab8   :  { %8369 = vmatmul.mubr.f32.vlgmr.msra.gmra.mrb[16].mxu1 %v1881_v25 }
 0xab9   :  { %8414 = vmatprep.mubr.msk.f32.mxu1 %vm9274_vm4, %v9270_v6 }
 0xb8b   :  { %v8370_v27 = vpop.f32.mrb[16].mxu1 }
 0xb8c   :  { %v1977_v28 = vadd.f32 %v8370_v27, %v7696_v26  ;;  %v1971_v13 = vpop.f32.mrb[17].mxu1 }
 0xb8d   :  { %v1972_v29 = vadd.f32 %v7696_v26, %v1971_v13 }
 0xb8e   :  { %v9716_v14 = vadd.f32 %v1977_v28, %v9620_v22 }
 0xb8f   :  { %v9719_v30 = vadd.f32 %v1972_v29, %v9623_v57 }
 0xb90   :  { %v1989_v31 = vsel %vm156_vm3, %v9716_v14, 0.0 }
 0xb91   :  { %1990 = vadd.xlane.f32.xlu0 %v1989_v31  ;;  %v1986_v32 = vsel %vm156_vm3, %v9719_v30, 0.0 }
 0xb92   :  { %1987 = vadd.xlane.f32.xlu1 %v1986_v32 }
 0xc1e   :  { %v1991_v33 = vpop.xlane.xlu0 %1990 }
 0xc1f   :  { %v1993_v34 = vmul.f32 0.03125, %v1991_v33  ;;  %v1988_v35 = vpop.xlane.xlu1 %1987 }
 0xc20   :  { %v1992_v36 = vmul.f32 0.03125, %v1988_v35 }
 0xc21   :  { %v1995_v37 = vsub.f32 %v9716_v14, %v1993_v34 }
 0xc22   :  { %v1994_v22 = vsub.f32 %v9719_v30, %v1992_v36 }
 0xc23   :  { %v1997_v38 = vmul.f32 %v1995_v37, %v1995_v37 }
 0xc24   :  { %v1996_v39 = vmul.f32 %v1994_v22, %v1994_v22 }
 0xc25   :  { %v2001_v57 = vsel %vm156_vm3, %v1997_v38, 0.0 }
 0xc26   :  { %2002 = vadd.xlane.f32.xlu0 %v2001_v57  ;;  %v1998_v40 = vsel %vm156_vm3, %v1996_v39, 0.0 }
 0xc27   :  { %1999 = vadd.xlane.f32.xlu1 %v1998_v40 }
 0xcb3   :  { %v2003_v47 = vpop.xlane.xlu0 %2002 }
 0xcb4   :  { %v2005_v48 = vmul.f32 0.03125, %v2003_v47  ;;  %v2000_v49 = vpop.xlane.xlu1 %1999 }
 0xcb5   :  { %v2004_v50 = vmul.f32 0.03125, %v2000_v49 }
 0xcb6   :  { %v2007_v51 = vadd.f32 1e-05, %v2005_v48 }
 0xcb7   :  { %v2006_v52 = vadd.f32 1e-05, %v2004_v50 }
 0xcb8   :  { %9125 = vrsqrt.f32 %v2007_v51 }
 0xcb9   :  { %9127 = vrsqrt.f32 %v2006_v52 }
 0xcc2   :  { %v9126_v53 = vpop.eup %9125 }
 0xcc3   :  { %v9128_v55 = vpop.eup %9127  ;;  %v2011_v56 = vmul.f32 %v9126_v53, %v1995_v37 }
 0xcc4   :  { %v2010_v58 = vmul.f32 %v9128_v55, %v1994_v22 }
 0xcc5   :  { %v2019_v61 = vmul.f32 %v7699_v54, %v2011_v56 }
 0xcc6   :  { %v2018_v62 = vmul.f32 %v7699_v54, %v2010_v58 }
 0xcc7   :  { %v2027_v0 = vadd.f32 %v7700_v60, %v2019_v61 }
 0xcc8   :  { %v2026_v63 = vadd.f32 %v7700_v60, %v2018_v62 }
 0xcca   :  { %8379 = vmatprep.mubr.msk.f32.mxu0 %vm156_vm3, %v2026_v63 }
 0xccb   :  { %8380 = vmatmul.mubr.msk.f32.vlgmr.msra.gmra.mrb[24].mxu0 %vm156_vm3, %v2027_v0 }
 0xccc   :  { %8384 = vmatprep.mubr.msk.f32.mxu0 %vm9274_vm4, %v9270_v6 }
 0xd9e   :  { %v8381_v2 = vpop.f32.mrb[24].mxu0 }
 0xd9f   :  { %v9755_v3 = vadd.f32 %v8381_v2, %v7706_v1  ;;  %v2113_v4 = vpop.f32.mrb[25].mxu0 }
 0xda0   :  { %v9757_v5 = vadd.f32 %v7706_v1, %v2113_v4 }
 0xda1   :  { %2126 = vrot.lane.b32.xlu0 %v9755_v3, %s9271_s28 }
 0xda2   :  { %2124 = vrot.lane.b32.xlu1 %v9757_v5, %s9271_s28 }
 0xda5   :  { %2132 = vrot.lane.b32.xlu0 %v9757_v5, %s9272_s29 }
 0xda6   :  { %2128 = vrot.lane.b32.xlu1 %v9757_v5, %s10778_s1 }
 0xda9   :  { %2136 = vrot.lane.b32.xlu0 %v9757_v5, %s10776_s30 }
 0xdaa   :  { %2130 = vrot.lane.b32.xlu1 %v9755_v3, %s10778_s1 }
 0xdae   :  { %2134 = vrot.lane.b32.xlu1 %v9755_v3, %s9272_s29 }
 0xdb2   :  { %2212 = vrot.lane.b32.xlu1 %v9755_v3, %s10776_s30 }
 0xe13   :  { %v9775_v7 = vpop.permute.xlu0 %2126 }
 0xe14   :  { %2364 = vrot.lane.b32.xlu1 %v9775_v7, %s10776_s30  ;;  %v9779_v8 = vpop.permute.xlu1 %2124 }
 0xe15   :  { %2288 = vrot.lane.b32.xlu0 %v9779_v8, %s10776_s30 }
 0xe17   :  { %v9783_v9 = vpop.permute.xlu0 %2132 }
 0xe18   :  { %v9785_v10 = vpop.permute.xlu1 %2128 }
 0xe19   :  { %2440 = vrot.lane.b32.xlu0 %v9785_v10, %s10776_s30 }
 0xe1b   :  { %v2137_v11 = vpop.permute.xlu0 %2136 }
 0xe1c   :  { %8383 = vmatpush3.xpose.msk.msra.mxu0 %vm308_vm5, %v2137_v11  ;;  %v9790_v12 = vpop.permute.xlu1 %2130 }
 0xe1d   :  { %2592 = vrot.lane.b32.xlu0 %v9783_v9, %s10776_s30  ;;  %2516 = vrot.lane.b32.xlu1 %v9790_v12, %s10776_s30 }
 0xe1e   :  { %8387 = vmatprep.subr.mxu0 %v9270_v6 }
 0xe1f   :  { %8385 = vmatmul.mubr.msk.f32.vlgmr.msra.gmra.mrb[26].mxu0 %vm308_vm5, %v9757_v5 }
 0xe20   :  { %v9799_v15 = vpop.permute.xlu1 %2134  ;;  %8389 = vmatprep.mubr.msk.f32.mxu0 %vm9274_vm4, %v9270_v6 }
 0xe21   :  { %2668 = vrot.lane.b32.xlu1 %v9799_v15, %s10776_s30 }
 0xe24   :  { %v2213_v16 = vpop.permute.xlu1 %2212 }
 0xe25   :  { %8388 = vmatpush3.xpose.msk.msra.mxu0 %vm308_vm5, %v2213_v16 }
 0xe26   :  { %8392 = vmatprep.subr.mxu0 %v9270_v6 }
 0xe28   :  { %8390 = vmatmul.mubr.msk.f32.vlgmr.msra.gmra.mrb[28].mxu0 %vm308_vm5, %v9755_v3 }
 0xe29   :  { %8394 = vmatprep.mubr.msk.f32.mxu0 %vm9274_vm4, %v9270_v6 }
 0xe86   :  { %v2365_v18 = vpop.permute.xlu1 %2364 }
 0xe87   :  { %v2289_v17 = vpop.permute.xlu0 %2288 }
 0xe88   :  { %8393 = vmatpush3.xpose.msk.msra.mxu0 %vm308_vm5, %v2289_v17 }
 0xe89   :  { %8397 = vmatprep.subr.mxu0 %v9270_v6 }
 0xe8b   :  { %v2441_v19 = vpop.permute.xlu0 %2440  ;;  %8395 = vmatmul.mubr.msk.f32.vlgmr.msra.gmra.mrb[30].mxu0 %vm308_vm5, %v9779_v8 }
 0xe8c   :  { %8398 = vmatpush3.xpose.msk.msra.mxu0 %vm308_vm5, %v2365_v18  ;;  %8399 = vmatprep.mubr.msk.f32.mxu0 %vm9274_vm4, %v9270_v6 }
 0xe8d   :  { %8402 = vmatprep.subr.mxu0 %v9270_v6 }
 0xe8f   :  { %v2593_v20 = vpop.permute.xlu0 %2592  ;;  %8400 = vmatmul.mubr.msk.f32.vlgmr.msra.gmra.mrb[32].mxu0 %vm308_vm5, %v9775_v7  ;;  %v2517_v21 = vpop.permute.xlu1 %2516 }
 0xe90   :  { %8403 = vmatpush3.xpose.msk.msra.mxu0 %vm308_vm5, %v2441_v19  ;;  %8413 = vmatpush3.xpose.msk.msra.mxu1 %vm308_vm5, %v2593_v20 }
 0xe91   :  { %8404 = vmatprep.mubr.msk.f32.mxu0 %vm9274_vm4, %v9270_v6  ;;  %8407 = vmatprep.subr.mxu0 %v9270_v6 }
 0xe92   :  { %8422 = vmatprep.subr.mxu1 %v9270_v6 }
 0xe93   :  { %8405 = vmatmul.mubr.msk.f32.vlgmr.msra.gmra.mrb[34].mxu0 %vm308_vm5, %v9785_v10  ;;  %8415 = vmatmul.mubr.msk.f32.vlgmr.msra.gmra.mrb[18].mxu1 %vm308_vm5, %v9783_v9  ;;  %v2669_v59 = vpop.permute.xlu1 %2668 }
 0xe94   :  { %8408 = vmatpush3.xpose.msk.msra.mxu0 %vm308_vm5, %v2517_v21  ;;  %8409 = vmatprep.mubr.msk.f32.mxu0 %vm9274_vm4, %v9270_v6 }
 0xe95   :  { %8417 = vmatprep.subr.mxu0 %v9270_v6  ;;  %8424 = vmatprep.mubr.msk.f32.mxu1 %vm9274_vm4, %v9270_v6 }
 0xe97   :  { %8410 = vmatmul.mubr.msk.f32.vlgmr.msra.gmra.mrb[36].mxu0 %vm308_vm5, %v9790_v12 }
 0xe98   :  { %8418 = vmatpush3.xpose.msk.msra.mxu0 %vm308_vm5, %v2669_v59  ;;  %8419 = vmatprep.mubr.msk.f32.mxu0 %vm9274_vm4, %v9270_v6 }
 0xe99   :  { %8427 = vmatprep.subr.mxu0 %v9270_v6 }
 0xe9b   :  { %8420 = vmatmul.mubr.msk.f32.vlgmr.msra.gmra.mrb[38].mxu0 %vm308_vm5, %v9799_v15 }
 0xe9c   :  { %8429 = vmatprep.mubr.msk.f32.mxu0 %vm9274_vm4, %v9270_v6 }
 0xef2   :  { %v2208_v23 = vpop.f32.mrb[26].mxu0 }
 0xef3   :  { %v8386_v24 = vpop.f32.mrb[27].mxu0  ;;  %v2744_v25 = vsel %vm308_vm5, %v2208_v23, -inf }
 0xef4   :  { %2745 = vmax.xlane.f32.xlu0 %v2744_v25 }
 0xefb   :  { %v2284_v26 = vpop.f32.mrb[28].mxu0 }
 0xefc   :  { %v8391_v27 = vpop.f32.mrb[29].mxu0  ;;  %v2747_v28 = vsel %vm308_vm5, %v2284_v26, -inf }
 0xefd   :  { %2748 = vmax.xlane.f32.xlu1 %v2747_v28 }
 0xf5e   :  { %v2360_v13 = vpop.f32.mrb[30].mxu0 }
 0xf5f   :  { %v8396_v29 = vpop.f32.mrb[31].mxu0  ;;  %v2750_v31 = vsel %vm308_vm5, %v2360_v13, -inf }
 0xf60   :  { %2751 = vmax.xlane.f32.xlu0 %v2750_v31 }
 0xf62   :  { %v2436_v32 = vpop.f32.mrb[32].mxu0 }
 0xf63   :  { %v8401_v33 = vpop.f32.mrb[33].mxu0  ;;  %v2753_v34 = vsel %vm308_vm5, %v2436_v32, -inf }
 0xf64   :  { %2754 = vmax.xlane.f32.xlu0 %v2753_v34 }
 0xf66   :  { %v2512_v35 = vpop.f32.mrb[34].mxu0  ;;  %v2664_v36 = vpop.f32.mrb[18].mxu1 }
 0xf67   :  { %v8406_v37 = vpop.f32.mrb[35].mxu0  ;;  %v8416_v22 = vpop.f32.mrb[19].mxu1  ;;  %v2756_v38 = vsel %vm308_vm5, %v2512_v35, -inf  ;;  %v2762_v40 = vsel %vm308_vm5, %v2664_v36, -inf }
 0xf68   :  { %2757 = vmax.xlane.f32.xlu1 %v2756_v38 }
 0xf6a   :  { %v2588_v39 = vpop.f32.mrb[36].mxu0 }
 0xf6b   :  { %v8411_v57 = vpop.f32.mrb[37].mxu0  ;;  %v2759_v41 = vsel %vm308_vm5, %v2588_v39, -inf }
 0xf6c   :  { %2763 = vmax.xlane.f32.xlu1 %v2762_v40  ;;  %2760 = vmax.xlane.f32.xlu0 %v2759_v41 }
 0xf6e   :  { %v2740_v42 = vpop.f32.mrb[38].mxu0 }
 0xf6f   :  { %v8421_v43 = vpop.f32.mrb[39].mxu0  ;;  %v2765_v44 = vsel %vm308_vm5, %v2740_v42, -inf }
 0xf70   :  { %2766 = vmax.xlane.f32.xlu0 %v2765_v44 }
 0xf7d   :  { %2840 = vrot.lane.b32.xlu1 %v9757_v5, %s10774_s0 }
 0xf81   :  { %2992 = vrot.lane.b32.xlu1 %v9779_v8, %s10774_s0  ;;  %v2746_v47 = vpop.xlane.xlu0 %2745 }
 0xf82   :  { %v2768_v48 = vsub.f32 %v2208_v23, %v2746_v47 }
 0xf84   :  { %v2776_v50 = vmul.f32 1.442695, %v2768_v48 }
 0xf85   :  { %3068 = vrot.lane.b32.xlu1 %v9775_v7, %s10774_s0 }
 0xf86   :  { %2916 = vrot.lane.b32.xlu0 %v9755_v3, %s10774_s0 }
 0xf89   :  { %3220 = vrot.lane.b32.xlu1 %v9790_v12, %s10774_s0 }
 0xf8a   :  { %3144 = vrot.lane.b32.xlu0 %v9785_v10, %s10774_s0  ;;  %v2749_v45 = vpop.xlane.xlu1 %2748 }
 0xf8b   :  { %v2769_v46 = vsub.f32 %v2284_v26, %v2749_v45 }
 0xf8d   :  { %v2778_v49 = vmul.f32 1.442695, %v2769_v46 }
 0xf8f   :  { %9129 = vpow2.f32 %v2778_v49 }
 0xf90   :  { %9131 = vpow2.f32 %v2776_v50 }
 0xf99   :  { %v9867_v51 = vpop.eup %9129 }
 0xf9a   :  { %v2795_v52 = vsel %vm308_vm5, %v9867_v51, 0.0  ;;  %v9871_v53 = vpop.eup %9131 }
 0xf9b   :  { %v2792_v54 = vsel %vm308_vm5, %v9871_v53, 0.0 }
 0xfa9   :  { %2796 = vadd.xlane.f32.xlu0 %v2795_v52 }
 0xfad   :  { %2793 = vadd.xlane.f32.xlu1 %v2792_v54 }
 0xfed   :  { %v2752_v55 = vpop.xlane.xlu0 %2751 }
 0xfee   :  { %v2770_v56 = vsub.f32 %v2360_v13, %v2752_v55 }
 0xff0   :  { %v2780_v58 = vmul.f32 1.442695, %v2770_v56 }
 0xff1   :  { %v2755_v60 = vpop.xlane.xlu0 %2754 }
 0xff2   :  { %9133 = vpow2.f32 %v2780_v58  ;;  %v2771_v61 = vsub.f32 %v2436_v32, %v2755_v60 }
 0xff4   :  { %v2782_v62 = vmul.f32 1.442695, %v2771_v61 }
 0xff5   :  { %v2758_v63 = vpop.xlane.xlu1 %2757 }
 0xff6   :  { %9135 = vpow2.f32 %v2782_v62  ;;  %v2772_v0 = vsub.f32 %v2512_v35, %v2758_v63  ;;  %v7733_v63 = vld [vmem:[%s10756_s6 + $0x20] sm:$0xff] }
 0xff8   :  { %v2784_v10 = vmul.f32 1.442695, %v2772_v0  ;;  %v7734_v0 = vld [vmem:[%s10756_s6 + $0x28] sm:$0xff] }
 0xff9   :  { %v2761_v1 = vpop.xlane.xlu0 %2760  ;;  %v2764_v2 = vpop.xlane.xlu1 %2763 }
 0xffa   :  { %v2773_v3 = vsub.f32 %v2588_v39, %v2761_v1  ;;  %v2774_v4 = vsub.f32 %v2664_v36, %v2764_v2  ;;  %v8903_v2 = vpack.c.bf16 %v7734_v0, %v7733_v63  ;;  %v7758_v63 = vld [vmem:[%s10762_s12 + $0xa8] sm:$0xff] }
 0xffc   :  { %v9134_v5 = vpop.eup %9133  ;;  %v2786_v7 = vmul.f32 1.442695, %v2773_v3  ;;  %v2788_v8 = vmul.f32 1.442695, %v2774_v4 }
 0xffd   :  { %v2767_v11 = vpop.xlane.xlu0 %2766  ;;  %v2841_v12 = vpop.permute.xlu1 %2840  ;;  %v2798_v16 = vsel %vm308_vm5, %v9134_v5, 0.0 }
 0xffe   :  { %9137 = vpow2.f32 %v2786_v7  ;;  %v2775_v17 = vsub.f32 %v2740_v42, %v2767_v11  ;;  %2799 = vadd.xlane.f32.xlu1 %v2798_v16  ;;  %8423 = vmatpush3.msra.mxu1 %v2841_v12  ;;  %v7736_v7 = vld [vmem:[%s10756_s6 + $0x38] sm:$0xff] }
 0xfff   :  { %9139 = vpow2.f32 %v2788_v8  ;;  %8432 = vmatprep.subr.mxu1 %v9270_v6 }
0x1000   :  { %v9136_v18 = vpop.eup %9135  ;;  %v2790_v19 = vmul.f32 1.442695, %v2775_v17  ;;  %9141 = vpow2.f32 %v2784_v10 }
0x1001   :  { %v2917_v20 = vpop.permute.xlu0 %2916  ;;  %v2801_v21 = vsel %vm308_vm5, %v9136_v18, 0.0  ;;  %v2993_v29 = vpop.permute.xlu1 %2992 }
0x1002   :  { %9143 = vpow2.f32 %v2790_v19  ;;  %8428 = vmatpush3.msra.mxu0 %v2917_v20  ;;  %2802 = vadd.xlane.f32.xlu0 %v2801_v21 }
0x1003   :  { %8437 = vmatprep.subr.mxu0 %v9270_v6 }
0x1005   :  { %v3069_v31 = vpop.permute.xlu1 %3068  ;;  %v3145_v32 = vpop.permute.xlu0 %3144 }
0x1008   :  { %v9138_v59 = vpop.eup %9137 }
0x1009   :  { %v9879_v23 = vpop.eup %9139  ;;  %v2807_v24 = vsel %vm308_vm5, %v9138_v59, 0.0  ;;  %v3221_v33 = vpop.permute.xlu1 %3220 }
0x100a   :  { %2808 = vadd.xlane.f32.xlu0 %v2807_v24  ;;  %v2810_v25 = vsel %vm308_vm5, %v9879_v23, 0.0  ;;  %v9142_v26 = vpop.eup %9141 }
0x100b   :  { %2811 = vadd.xlane.f32.xlu1 %v2810_v25  ;;  %v2804_v13 = vsel %vm308_vm5, %v9142_v26, 0.0 }
0x100c   :  { %v9144_v27 = vpop.eup %9143 }
0x100d   :  { %v2813_v28 = vsel %vm308_vm5, %v9144_v27, 0.0 }
0x100e   :  { %2814 = vadd.xlane.f32.xlu0 %v2813_v28 }
0x100f   :  { %2805 = vadd.xlane.f32.xlu1 %v2804_v13 }
0x1020   :  { %3372 = vrot.lane.b32.xlu1 %v9799_v15, %s10774_s0 }
0x1024   :  { %3296 = vrot.lane.b32.xlu0 %v9783_v9, %s10774_s0 }
0x1036   :  { %v2797_v34 = vpop.xlane.xlu0 %2796 }
0x1037   :  { %9145 = vrcp.f32 %v2797_v34 }
0x103a   :  { %v2794_v35 = vpop.xlane.xlu1 %2793 }
0x103b   :  { %9147 = vrcp.f32 %v2794_v35 }
0x1041   :  { %v9146_v36 = vpop.eup %9145 }
0x1042   :  { %v2833_v37 = vmul.f32 %v9146_v36, %v9867_v51 }
0x1044   :  { %8430 = vmatmul.mubr.msk.f32.vlgmr.msra.gmra.mrb[40].mxu0 %vm308_vm5, %v2833_v37 }
0x1045   :  { %v9148_v22 = vpop.eup %9147  ;;  %8438 = vmatpush3.msra.mxu0 %v3069_v31  ;;  %8439 = vmatprep.mubr.msk.f32.mxu0 %vm9274_vm4, %v9270_v6 }
0x1046   :  { %v2832_v9 = vmul.f32 %v9148_v22, %v9871_v53  ;;  %8447 = vmatprep.subr.mxu0 %v9270_v6 }
0x1048   :  { %8425 = vmatmul.mubr.msk.f32.vlgmr.msra.gmra.mrb[20].mxu1 %vm308_vm5, %v2832_v9 }
0x1049   :  { %8433 = vmatpush3.msra.mxu1 %v2993_v29  ;;  %8434 = vmatprep.mubr.msk.f32.mxu1 %vm9274_vm4, %v9270_v6 }
0x104a   :  { %8442 = vmatprep.subr.mxu1 %v9270_v6 }
0x108b   :  { %v2800_v15 = vpop.xlane.xlu1 %2799 }
0x108c   :  { %9149 = vrcp.f32 %v2800_v15 }
0x108f   :  { %v2803_v38 = vpop.xlane.xlu0 %2802 }
0x1090   :  { %9151 = vrcp.f32 %v2803_v38 }
0x1096   :  { %v9150_v39 = vpop.eup %9149 }
0x1097   :  { %v2809_v57 = vpop.xlane.xlu0 %2808  ;;  %v2834_v40 = vmul.f32 %v9150_v39, %v9134_v5  ;;  %v7735_v5 = vld [vmem:[%s10756_s6 + $0x30] sm:$0xff] }
0x1098   :  { %9153 = vrcp.f32 %v2809_v57  ;;  %v2812_v41 = vpop.xlane.xlu1 %2811  ;;  %v8907_v8 = vpack.c.bf16 %v7736_v7, %v7735_v5  ;;  %v7762_v5 = vld [vmem:[%s10762_s12 + $0xc8] sm:$0xff] }
0x1099   :  { %8435 = vmatmul.mubr.msk.f32.vlgmr.msra.gmra.mrb[22].mxu1 %vm308_vm5, %v2834_v40 }
0x109a   :  { %v9152_v42 = vpop.eup %9151  ;;  %8443 = vmatpush3.msra.mxu1 %v3145_v32  ;;  %8444 = vmatprep.mubr.msk.f32.mxu1 %vm9274_vm4, %v9270_v6 }
0x109b   :  { %v2815_v43 = vpop.xlane.xlu0 %2814  ;;  %v2835_v44 = vmul.f32 %v9152_v42, %v9136_v18  ;;  %8452 = vmatprep.subr.mxu1 %v9270_v6 }
0x109c   :  { %9155 = vrcp.f32 %v2815_v43  ;;  %v2806_v45 = vpop.xlane.xlu1 %2805 }
0x109d   :  { %9157 = vrcp.f32 %v2806_v45  ;;  %8440 = vmatmul.mubr.msk.f32.vlgmr.msra.gmra.mrb[42].mxu0 %vm308_vm5, %v2835_v44 }
0x109e   :  { %8448 = vmatpush3.msra.mxu0 %v3221_v33  ;;  %8449 = vmatprep.mubr.msk.f32.mxu0 %vm9274_vm4, %v9270_v6  ;;  %9159 = vrcp.f32 %v2812_v41  ;;  %v7738_v33 = vld [vmem:[%s10757_s7 + $0x1] ss:$0 sm:$0xff] }
0x109f   :  { %8457 = vmatprep.subr.mxu0 %v9270_v6  ;;  %v3297_v54 = vpop.permute.xlu0 %3296 }
0x10a0   :  { %v3373_v48 = vpop.permute.xlu1 %3372 }
0x10a2   :  { %v9154_v46 = vpop.eup %9153 }
0x10a3   :  { %v2837_v47 = vmul.f32 %v9154_v46, %v9138_v59 }
0x10a5   :  { %8450 = vmatmul.mubr.msk.f32.vlgmr.msra.gmra.mrb[44].mxu0 %vm308_vm5, %v2837_v47 }
0x10a6   :  { %v9156_v49 = vpop.eup %9155  ;;  %8458 = vmatpush3.msra.mxu0 %v3373_v48  ;;  %8459 = vmatprep.mubr.msk.f32.mxu0 %vm9274_vm4, %v9270_v6  ;;  %v7745_v48 = vld [vmem:[%s10760_s10 + $0x20] sm:$0xff] }
0x10a7   :  { %v9158_v50 = vpop.eup %9157  ;;  %v2839_v51 = vmul.f32 %v9156_v49, %v9144_v27  ;;  %v7746_v49 = vld [vmem:[%s10760_s10 + $0x28] sm:$0xff] }
0x10a8   :  { %v2836_v52 = vmul.f32 %v9158_v50, %v9142_v26  ;;  %v9160_v53 = vpop.eup %9159  ;;  %v7747_v50 = vld [vmem:[%s10760_s10 + $0x30] sm:$0xff] }
0x10a9   :  { %8460 = vmatmul.mubr.msk.f32.vlgmr.msra.gmra.mrb[46].mxu0 %vm308_vm5, %v2839_v51  ;;  %v2838_v55 = vmul.f32 %v9160_v53, %v9879_v23  ;;  %v8911_v51 = vpack.c.bf16 %v7746_v49, %v7745_v48 }
0x10aa   :  { %8445 = vmatmul.mubr.msk.f32.vlgmr.msra.gmra.mrb[24].mxu1 %vm308_vm5, %v2836_v52  ;;  %v7748_v52 = vld [vmem:[%s10760_s10 + $0x38] sm:$0xff] }
0x10ab   :  { %8453 = vmatpush3.msra.mxu1 %v3297_v54  ;;  %8454 = vmatprep.mubr.msk.f32.mxu1 %vm9274_vm4, %v9270_v6  ;;  %v8915_v53 = vpack.c.bf16 %v7748_v52, %v7747_v50  ;;  %v7753_v54 = vld [vmem:[%s10762_s12 + $0x80] sm:$0xff] }
0x10ac   :  { %8904 = vmatprep.subr.bf16.mxu1 %v8903_v2  ;;  %8912 = vmatprep.subr.bf16.mxu0 %v8911_v51 }
0x10ad   :  { %8914 = vmatpush3.bf16.msra.mxu0 %v8911_v51 }
0x10ae   :  { %8455 = vmatmul.mubr.msk.f32.vlgmr.msra.gmra.mrb[26].mxu1 %vm308_vm5, %v2838_v55  ;;  %8916 = vmatprep.subr.bf16.mxu0 %v8915_v53  ;;  %v7754_v55 = vld [vmem:[%s10762_s12 + $0x88] sm:$0xff] }
0x10af   :  { %8906 = vmatpush3.bf16.msra.mxu1 %v8903_v2  ;;  %v7760_v2 = vld [vmem:[%s10762_s12 + $0xb8] sm:$0xff] }
0x10b0   :  { %8908 = vmatprep.subr.bf16.mxu1 %v8907_v8 }
0x10b1   :  { %8918 = vmatpush3.bf16.msra.mxu0 %v8915_v53 }
0x10b3   :  { %8910 = vmatpush3.bf16.msra.mxu1 %v8907_v8  ;;  %v7763_v8 = vld [vmem:[%s10762_s12 + $0xd0] sm:$0xff] }
0x1117   :  { %v2988_v56 = vpop.f32.mrb[40].mxu0 }
0x1118   :  { %v8431_v58 = vpop.f32.mrb[41].mxu0 }
0x1119   :  { %v8919_v58 = vpack.c.bf16 %v7754_v55, %v7753_v54 }
0x111b   :  { %v2912_v60 = vpop.f32.mrb[20].mxu1  ;;  %8920 = vmatprep.subr.bf16.mxu1 %v8919_v58 }
0x111c   :  { %v8426_v61 = vpop.f32.mrb[21].mxu1 }
0x116c   :  { %v3064_v62 = vpop.f32.mrb[22].mxu1 }
0x116d   :  { %3450 = vrot.lane.b32.xlu0 %v3064_v62, %s10772_s25  ;;  %v8436_v1 = vpop.f32.mrb[23].mxu1  ;;  %v7757_v62 = vld [vmem:[%s10762_s12 + $0xa0] sm:$0xff] }
0x116e   :  { %v8927_v0 = vpack.c.bf16 %v7758_v63, %v7757_v62  ;;  %v7759_v1 = vld [vmem:[%s10762_s12 + $0xb0] sm:$0xff]  ;;  %v7776_v62 = vld [vmem:[%s10754_s4 + $0x48] sm:$0xff] }
0x116f   :  { %v7777_v63 = vld [vmem:[%s10754_s4 + $0x50] sm:$0xff] }
0x1170   :  { %v3140_v3 = vpop.f32.mrb[42].mxu0 }
0x1171   :  { %3452 = vrot.lane.b32.xlu1 %v3140_v3, %s10772_s25  ;;  %v8441_v4 = vpop.f32.mrb[43].mxu0  ;;  %v8931_v3 = vpack.c.bf16 %v7760_v2, %v7759_v1  ;;  %v7778_v1 = vld [vmem:[%s10754_s4 + $0x58] sm:$0xff] }
0x1172   :  { %v7761_v4 = vld [vmem:[%s10762_s12 + $0xc0] sm:$0xff]  ;;  %v8955_v2 = vpack.c.bf16 %v7778_v1, %v7777_v63 }
0x1173   :  { %v8935_v7 = vpack.c.bf16 %v7762_v5, %v7761_v4 }
0x1178   :  { %v3292_v10 = vpop.f32.mrb[44].mxu0 }
0x1179   :  { %3460 = vrot.lane.b32.xlu1 %v3292_v10, %s10782_s21  ;;  %v8451_v11 = vpop.f32.mrb[45].mxu0  ;;  %v7764_v10 = vld [vmem:[%s10762_s12 + $0xd8] sm:$0xff] }
0x117a   :  { %v8939_v11 = vpack.c.bf16 %v7764_v10, %v7763_v8 }
0x117c   :  { %v3444_v12 = vpop.f32.mrb[46].mxu0 }
0x117d   :  { %v3216_v16 = vpop.f32.mrb[24].mxu1  ;;  %3468 = vrot.lane.b32.xlu1 %v3444_v12, %s10783_s22  ;;  %v8461_v17 = vpop.f32.mrb[47].mxu0  ;;  %v7765_v12 = vld [vmem:[%s10762_s12 + $0xe0] sm:$0xff] }
0x117e   :  { %3458 = vrot.lane.b32.xlu0 %v3216_v16, %s10782_s21  ;;  %v8446_v18 = vpop.f32.mrb[25].mxu1  ;;  %v7766_v16 = vld [vmem:[%s10762_s12 + $0xe8] sm:$0xff] }
0x117f   :  { %v8943_v17 = vpack.c.bf16 %v7766_v16, %v7765_v12  ;;  %v7773_v12 = vld [vmem:[%s10752_s2 + $0x2] ss:$0 sm:$0xff] }
0x1181   :  { %v3368_v19 = vpop.f32.mrb[26].mxu1 }
0x1182   :  { %3466 = vrot.lane.b32.xlu0 %v3368_v19, %s10783_s22  ;;  %v8456_v20 = vpop.f32.mrb[27].mxu1 }
0x11df   :  { %v3451_v59 = vpop.permute.xlu0 %3450 }
0x11e0   :  { %v3472_v25 = vsel %vm308_vm5, %v2912_v60, %v3451_v59  ;;  %v7756_v60 = vld [vmem:[%s10762_s12 + $0x98] sm:$0xff] }
0x11e3   :  { %v3453_v21 = vpop.permute.xlu1 %3452 }
0x11e4   :  { %v3473_v27 = vsel %vm308_vm5, %v2988_v56, %v3453_v21  ;;  %v7755_v56 = vld [vmem:[%s10762_s12 + $0x90] sm:$0xff] }
0x11e5   :  { %v8923_v61 = vpack.c.bf16 %v7756_v60, %v7755_v56 }
0x11eb   :  { %v3461_v23 = vpop.permute.xlu1 %3460 }
0x11ec   :  { %v3475_v29 = vsel %vm72_vm0, %v3473_v27, %v3461_v23  ;;  %v7744_v27 = vld [vmem:[%s10759_s9 + $0x1] ss:$0 sm:$0xff] }
0x11ef   :  { %v3469_v26 = vpop.permute.xlu1 %3468 }
0x11f0   :  { %v3459_v24 = vpop.permute.xlu0 %3458  ;;  %v3477_v32 = vsel %vm1647_vm6, %v3475_v29, %v3469_v26 }
0x11f1   :  { %v3474_v28 = vsel %vm72_vm0, %v3472_v25, %v3459_v24  ;;  %v7743_v25 = vld [vmem:[%s10758_s8 + $0x1] ss:$0 sm:$0xff] }
0x11f4   :  { %v3467_v13 = vpop.permute.xlu0 %3466 }
0x11f5   :  { %v3476_v31 = vsel %vm1647_vm6, %v3474_v28, %v3467_v13 }
0x11f6   :  { %8470 = vmatprep.mubr.msk.f32.mxu1 %vm156_vm3, %v3476_v31 }
0x11f7   :  { %8471 = vmatmul.mubr.msk.f32.vlgmr.msra.gmra.mrb[28].mxu1 %vm156_vm3, %v3477_v32 }
0x11f8   :  { %8922 = vmatpush3.bf16.msra.mxu1 %v8919_v58 }
0x11f9   :  { %8924 = vmatprep.subr.bf16.mxu1 %v8923_v61 }
0x11fc   :  { %8926 = vmatpush3.bf16.msra.mxu1 %v8923_v61  ;;  %v7775_v61 = vld [vmem:[%s10754_s4 + $0x40] sm:$0xff] }
0x11fd   :  { %8928 = vmatprep.subr.bf16.mxu1 %v8927_v0 }
0x1200   :  { %8930 = vmatpush3.bf16.msra.mxu1 %v8927_v0  ;;  %v8951_v0 = vpack.c.bf16 %v7776_v62, %v7775_v61 }
0x1201   :  { %8932 = vmatprep.subr.bf16.mxu1 %v8931_v3 }
0x1202   :  { %8952 = vmatprep.subr.bf16.mxu0 %v8951_v0 }
0x1204   :  { %8934 = vmatpush3.bf16.msra.mxu1 %v8931_v3 }
0x1205   :  { %8936 = vmatprep.subr.bf16.mxu1 %v8935_v7 }
0x1208   :  { %8938 = vmatpush3.bf16.msra.mxu1 %v8935_v7 }
0x1209   :  { %8940 = vmatprep.subr.bf16.mxu1 %v8939_v11 }
0x120c   :  { %8942 = vmatpush3.bf16.msra.mxu1 %v8939_v11 }
0x120d   :  { %8944 = vmatprep.subr.bf16.mxu1 %v8943_v17 }
0x1210   :  { %8946 = vmatpush3.bf16.msra.mxu1 %v8943_v17 }
0x12ca   :  { %v8472_v34 = vpop.f32.mrb[28].mxu1 }
0x12cb   :  { %v3569_v35 = vadd.f32 %v8472_v34, %v7738_v33  ;;  %v3563_v36 = vpop.f32.mrb[29].mxu1  ;;  %v7767_v34 = vld [vmem:[%s10762_s12 + $0xf0] sm:$0xff] }
0x12cc   :  { %v3564_v37 = vadd.f32 %v7738_v33, %v3563_v36 }
0x12cd   :  { %v9947_v22 = vadd.f32 %v3569_v35, %v9716_v14  ;;  %v7768_v35 = vld [vmem:[%s10762_s12 + $0xf8] sm:$0xff] }
0x12ce   :  { %v9950_v9 = vadd.f32 %v3564_v37, %v9719_v30  ;;  %v8947_v36 = vpack.c.bf16 %v7768_v35, %v7767_v34  ;;  %v7750_v37 = vld [vmem:[%s10761_s11 + $0x1] ss:$0 sm:$0xff] }
0x12cf   :  { %v3581_v15 = vsel %vm156_vm3, %v9947_v22, 0.0 }
0x12d0   :  { %3582 = vadd.xlane.f32.xlu1 %v3581_v15  ;;  %v3578_v38 = vsel %vm156_vm3, %v9950_v9, 0.0  ;;  %8948 = vmatprep.subr.bf16.mxu1 %v8947_v36 }
0x12d1   :  { %3579 = vadd.xlane.f32.xlu0 %v3578_v38  ;;  %8950 = vmatpush3.bf16.msra.mxu1 %v8947_v36 }
0x12d2   :  { %8560 = vmatprep.subr.mxu1 %v9270_v6 }
0x135d   :  { %v3583_v39 = vpop.xlane.xlu1 %3582 }
0x135e   :  { %v3585_v57 = vmul.f32 0.03125, %v3583_v39  ;;  %v3580_v40 = vpop.xlane.xlu0 %3579 }
0x135f   :  { %v3584_v41 = vmul.f32 0.03125, %v3580_v40 }
0x1360   :  { %v9957_v42 = vsub.f32 %v9947_v22, %v3585_v57 }
0x1361   :  { %v3586_v43 = vsub.f32 %v9950_v9, %v3584_v41 }
0x1362   :  { %v3589_v46 = vmul.f32 %v9957_v42, %v9957_v42 }
0x1363   :  { %v3588_v44 = vmul.f32 %v3586_v43, %v3586_v43 }
0x1364   :  { %v3593_v47 = vsel %vm156_vm3, %v3589_v46, 0.0 }
0x1365   :  { %v3590_v45 = vsel %vm156_vm3, %v3588_v44, 0.0 }
0x1366   :  { %3591 = vadd.xlane.f32.xlu0 %v3590_v45 }
0x136a   :  { %3594 = vadd.xlane.f32.xlu0 %v3593_v47 }
0x13f3   :  { %v3592_v18 = vpop.xlane.xlu0 %3591 }
0x13f4   :  { %v3596_v19 = vmul.f32 0.03125, %v3592_v18 }
0x13f6   :  { %v3598_v20 = vadd.f32 1e-05, %v3596_v19  ;;  %v7774_v19 = vld [vmem:[%s10753_s3 + $0x2] ss:$0 sm:$0xff] }
0x13f7   :  { %v3595_v21 = vpop.xlane.xlu0 %3594 }
0x13f8   :  { %9161 = vrsqrt.f32 %v3598_v20  ;;  %v3597_v59 = vmul.f32 0.03125, %v3595_v21 }
0x13fa   :  { %v3599_v23 = vadd.f32 1e-05, %v3597_v59 }
0x13fc   :  { %9163 = vrsqrt.f32 %v3599_v23 }
0x1402   :  { %v9162_v24 = vpop.eup %9161 }
0x1403   :  { %v3602_v26 = vmul.f32 %v9162_v24, %v3586_v43  ;;  %v7780_v24 = vld [vmem:[%s10755_s5 + $0x2] ss:$0 sm:$0xff] }
0x1405   :  { %v3610_v28 = vmul.f32 %v7743_v25, %v3602_v26 }
0x1406   :  { %v9164_v13 = vpop.eup %9163 }
0x1407   :  { %v3603_v29 = vmul.f32 %v9164_v13, %v9957_v42  ;;  %v3618_v31 = vadd.f32 %v7744_v27, %v3610_v28  ;;  %v7770_v42 = vld [vmem:[%s10763_s13 + $0x1] ss:$0 sm:$0xff] }
0x1409   :  { %v3611_v32 = vmul.f32 %v7743_v25, %v3603_v29  ;;  %8481 = vmatprep.mubr.msk.f32.mxu0 %vm156_vm3, %v3618_v31 }
0x140b   :  { %v3619_v33 = vadd.f32 %v7744_v27, %v3611_v32 }
0x140d   :  { %8482 = vmatmul.mubr.msk.f32.vlgmr.msra.gmra.mrb[48].mxu0 %vm156_vm3, %v3619_v33 }
0x140e   :  { %8954 = vmatpush3.bf16.msra.mxu0 %v8951_v0 }
0x140f   :  { %8956 = vmatprep.subr.bf16.mxu0 %v8955_v2 }
0x1412   :  { %8958 = vmatpush3.bf16.msra.mxu0 %v8955_v2 }
0x1413   :  { %8530 = vmatprep.subr.mxu0 %v9270_v6 }
0x14e0   :  { %v8483_v15 = vpop.f32.mrb[48].mxu0 }
0x14e1   :  { %v3711_v38 = vadd.f32 %v8483_v15, %v7750_v37  ;;  %v3705_v39 = vpop.f32.mrb[49].mxu0 }
0x14e2   :  { %v3706_v57 = vadd.f32 %v7750_v37, %v3705_v39 }
0x14e3   :  { %v3715_v41 = vmax.f32 %v3711_v38, 0.0 }
0x14e4   :  { %v3714_v40 = vmax.f32 %v3706_v57, 0.0 }
0x14e6   :  { %8516 = vmatprep.mubr.f32.mxu1 %v3714_v40 }
0x14e7   :  { %8517 = vmatmul.mubr.f32.vlgmr.msra.gmra.mrb[30].mxu1 %v3715_v41 }
0x14e8   :  { %8562 = vmatprep.mubr.msk.f32.mxu1 %vm9274_vm4, %v9270_v6 }
0x15ba   :  { %v8518_v43 = vpop.f32.mrb[30].mxu1 }
0x15bb   :  { %v3813_v44 = vadd.f32 %v8518_v43, %v7770_v42  ;;  %v3807_v45 = vpop.f32.mrb[31].mxu1 }
0x15bc   :  { %v3808_v46 = vadd.f32 %v7770_v42, %v3807_v45 }
0x15bd   :  { %v10043_v47 = vadd.f32 %v3813_v44, %v9947_v22 }
0x15be   :  { %v10046_v48 = vadd.f32 %v3808_v46, %v9950_v9 }
0x15bf   :  { %v3825_v49 = vsel %vm156_vm3, %v10043_v47, 0.0 }
0x15c0   :  { %3826 = vadd.xlane.f32.xlu0 %v3825_v49  ;;  %v3822_v50 = vsel %vm156_vm3, %v10046_v48, 0.0 }
0x15c1   :  { %3823 = vadd.xlane.f32.xlu1 %v3822_v50 }
0x164d   :  { %v3827_v51 = vpop.xlane.xlu0 %3826 }
0x164e   :  { %v3829_v52 = vmul.f32 0.03125, %v3827_v51  ;;  %v3824_v53 = vpop.xlane.xlu1 %3823 }
0x164f   :  { %v3828_v54 = vmul.f32 0.03125, %v3824_v53 }
0x1650   :  { %v3831_v55 = vsub.f32 %v10043_v47, %v3829_v52 }
0x1651   :  { %v3830_v22 = vsub.f32 %v10046_v48, %v3828_v54 }
0x1652   :  { %v3833_v56 = vmul.f32 %v3831_v55, %v3831_v55 }
0x1653   :  { %v3832_v58 = vmul.f32 %v3830_v22, %v3830_v22 }
0x1654   :  { %v3837_v9 = vsel %vm156_vm3, %v3833_v56, 0.0 }
0x1655   :  { %3838 = vadd.xlane.f32.xlu0 %v3837_v9  ;;  %v3834_v60 = vsel %vm156_vm3, %v3832_v58, 0.0 }
0x1656   :  { %3835 = vadd.xlane.f32.xlu1 %v3834_v60 }
0x16e2   :  { %v3839_v3 = vpop.xlane.xlu0 %3838 }
0x16e3   :  { %v3841_v4 = vmul.f32 0.03125, %v3839_v3  ;;  %v3836_v5 = vpop.xlane.xlu1 %3835 }
0x16e4   :  { %v3840_v7 = vmul.f32 0.03125, %v3836_v5 }
0x16e5   :  { %v3843_v8 = vadd.f32 1e-05, %v3841_v4 }
0x16e6   :  { %v3842_v10 = vadd.f32 1e-05, %v3840_v7 }
0x16e7   :  { %9165 = vrsqrt.f32 %v3843_v8 }
0x16e8   :  { %9167 = vrsqrt.f32 %v3842_v10 }
0x16f1   :  { %v9166_v11 = vpop.eup %9165 }
0x16f2   :  { %v9168_v16 = vpop.eup %9167  ;;  %v3847_v17 = vmul.f32 %v9166_v11, %v3831_v55 }
0x16f3   :  { %v3846_v18 = vmul.f32 %v9168_v16, %v3830_v22 }
0x16f4   :  { %v3855_v20 = vmul.f32 %v7773_v12, %v3847_v17 }
0x16f5   :  { %v3854_v21 = vmul.f32 %v7773_v12, %v3846_v18 }
0x16f6   :  { %v3863_v23 = vadd.f32 %v7774_v19, %v3855_v20 }
0x16f7   :  { %v3862_v59 = vadd.f32 %v7774_v19, %v3854_v21 }
0x16f9   :  { %8527 = vmatprep.mubr.msk.f32.mxu0 %vm156_vm3, %v3862_v59 }
0x16fa   :  { %8528 = vmatmul.mubr.msk.f32.vlgmr.msra.gmra.mrb[50].mxu0 %vm156_vm3, %v3863_v23 }
0x16fb   :  { %8532 = vmatprep.mubr.msk.f32.mxu0 %vm9274_vm4, %v9270_v6 }
0x17cd   :  { %v8529_v25 = vpop.f32.mrb[50].mxu0 }
0x17ce   :  { %v10082_v26 = vadd.f32 %v8529_v25, %v7780_v24  ;;  %v3949_v27 = vpop.f32.mrb[51].mxu0 }
0x17cf   :  { %v10084_v28 = vadd.f32 %v7780_v24, %v3949_v27 }
0x17d0   :  { %3962 = vrot.lane.b32.xlu0 %v10082_v26, %s9271_s28 }
0x17d1   :  { %3960 = vrot.lane.b32.xlu1 %v10084_v28, %s9271_s28 }
0x17d4   :  { %3968 = vrot.lane.b32.xlu0 %v10084_v28, %s9272_s29 }
0x17d5   :  { %3964 = vrot.lane.b32.xlu1 %v10084_v28, %s10778_s1 }
0x17d8   :  { %3972 = vrot.lane.b32.xlu0 %v10084_v28, %s10776_s30 }
0x17d9   :  { %3966 = vrot.lane.b32.xlu1 %v10082_v26, %s10778_s1  ;;  %s10787_s1 = smov 96  }
0x17dd   :  { %3970 = vrot.lane.b32.xlu1 %v10082_v26, %s9272_s29 }
0x17e1   :  { %4048 = vrot.lane.b32.xlu1 %v10082_v26, %s10776_s30 }
0x1842   :  { %v10102_v13 = vpop.permute.xlu0 %3962 }
0x1843   :  { %4200 = vrot.lane.b32.xlu1 %v10102_v13, %s10776_s30  ;;  %v10106_v29 = vpop.permute.xlu1 %3960 }
0x1844   :  { %4124 = vrot.lane.b32.xlu0 %v10106_v29, %s10776_s30 }
0x1846   :  { %v10110_v31 = vpop.permute.xlu0 %3968 }
0x1847   :  { %v10112_v32 = vpop.permute.xlu1 %3964 }
0x1848   :  { %4276 = vrot.lane.b32.xlu0 %v10112_v32, %s10776_s30 }
0x184a   :  { %v3973_v33 = vpop.permute.xlu0 %3972 }
0x184b   :  { %8531 = vmatpush3.xpose.msk.msra.mxu0 %vm308_vm5, %v3973_v33  ;;  %v10117_v34 = vpop.permute.xlu1 %3966 }
0x184c   :  { %4428 = vrot.lane.b32.xlu0 %v10110_v31, %s10776_s30  ;;  %4352 = vrot.lane.b32.xlu1 %v10117_v34, %s10776_s30 }
0x184d   :  { %8535 = vmatprep.subr.mxu0 %v9270_v6 }
0x184e   :  { %8533 = vmatmul.mubr.msk.f32.vlgmr.msra.gmra.mrb[52].mxu0 %vm308_vm5, %v10084_v28 }
0x184f   :  { %v10126_v35 = vpop.permute.xlu1 %3970  ;;  %8537 = vmatprep.mubr.msk.f32.mxu0 %vm9274_vm4, %v9270_v6 }
0x1850   :  { %4504 = vrot.lane.b32.xlu1 %v10126_v35, %s10776_s30 }
0x1853   :  { %v4049_v36 = vpop.permute.xlu1 %4048 }
0x1854   :  { %8536 = vmatpush3.xpose.msk.msra.mxu0 %vm308_vm5, %v4049_v36 }
0x1855   :  { %8540 = vmatprep.subr.mxu0 %v9270_v6 }
0x1857   :  { %8538 = vmatmul.mubr.msk.f32.vlgmr.msra.gmra.mrb[54].mxu0 %vm308_vm5, %v10082_v26 }
0x1858   :  { %8542 = vmatprep.mubr.msk.f32.mxu0 %vm9274_vm4, %v9270_v6 }
0x18b5   :  { %v4201_v15 = vpop.permute.xlu1 %4200 }
0x18b6   :  { %v4125_v37 = vpop.permute.xlu0 %4124 }
0x18b7   :  { %8541 = vmatpush3.xpose.msk.msra.mxu0 %vm308_vm5, %v4125_v37 }
0x18b8   :  { %8545 = vmatprep.subr.mxu0 %v9270_v6 }
0x18ba   :  { %v4277_v38 = vpop.permute.xlu0 %4276  ;;  %8543 = vmatmul.mubr.msk.f32.vlgmr.msra.gmra.mrb[56].mxu0 %vm308_vm5, %v10106_v29 }
0x18bb   :  { %8546 = vmatpush3.xpose.msk.msra.mxu0 %vm308_vm5, %v4201_v15  ;;  %8547 = vmatprep.mubr.msk.f32.mxu0 %vm9274_vm4, %v9270_v6 }
0x18bc   :  { %8550 = vmatprep.subr.mxu0 %v9270_v6 }
0x18be   :  { %v4429_v39 = vpop.permute.xlu0 %4428  ;;  %8548 = vmatmul.mubr.msk.f32.vlgmr.msra.gmra.mrb[58].mxu0 %vm308_vm5, %v10102_v13  ;;  %v4353_v57 = vpop.permute.xlu1 %4352 }
0x18bf   :  { %8551 = vmatpush3.xpose.msk.msra.mxu0 %vm308_vm5, %v4277_v38  ;;  %8561 = vmatpush3.xpose.msk.msra.mxu1 %vm308_vm5, %v4429_v39 }
0x18c0   :  { %8552 = vmatprep.mubr.msk.f32.mxu0 %vm9274_vm4, %v9270_v6  ;;  %8555 = vmatprep.subr.mxu0 %v9270_v6 }
0x18c1   :  { %8570 = vmatprep.subr.mxu1 %v9270_v6 }
0x18c2   :  { %8553 = vmatmul.mubr.msk.f32.vlgmr.msra.gmra.mrb[60].mxu0 %vm308_vm5, %v10112_v32  ;;  %8563 = vmatmul.mubr.msk.f32.vlgmr.msra.gmra.mrb[32].mxu1 %vm308_vm5, %v10110_v31  ;;  %v4505_v40 = vpop.permute.xlu1 %4504 }
0x18c3   :  { %8556 = vmatpush3.xpose.msk.msra.mxu0 %vm308_vm5, %v4353_v57  ;;  %8557 = vmatprep.mubr.msk.f32.mxu0 %vm9274_vm4, %v9270_v6 }
0x18c4   :  { %8565 = vmatprep.subr.mxu0 %v9270_v6  ;;  %8572 = vmatprep.mubr.msk.f32.mxu1 %vm9274_vm4, %v9270_v6 }
0x18c6   :  { %8558 = vmatmul.mubr.msk.f32.vlgmr.msra.gmra.mrb[62].mxu0 %vm308_vm5, %v10117_v34 }
0x18c7   :  { %8566 = vmatpush3.xpose.msk.msra.mxu0 %vm308_vm5, %v4505_v40  ;;  %8567 = vmatprep.mubr.msk.f32.mxu0 %vm9274_vm4, %v9270_v6 }
0x18c8   :  { %8575 = vmatprep.subr.mxu0 %v9270_v6 }
0x18ca   :  { %8568 = vmatmul.mubr.msk.f32.vlgmr.msra.gmra.mrb[64].mxu0 %vm308_vm5, %v10126_v35 }
0x18cb   :  { %8577 = vmatprep.mubr.msk.f32.mxu0 %vm9274_vm4, %v9270_v6 }
0x1921   :  { %v4044_v41 = vpop.f32.mrb[52].mxu0 }
0x1922   :  { %v8534_v42 = vpop.f32.mrb[53].mxu0  ;;  %v4580_v43 = vsel %vm308_vm5, %v4044_v41, -inf }
0x1923   :  { %4581 = vmax.xlane.f32.xlu0 %v4580_v43 }
0x192a   :  { %v4120_v44 = vpop.f32.mrb[54].mxu0 }
0x192b   :  { %v8539_v45 = vpop.f32.mrb[55].mxu0  ;;  %v4583_v46 = vsel %vm308_vm5, %v4120_v44, -inf }
0x192c   :  { %4584 = vmax.xlane.f32.xlu1 %v4583_v46 }
0x198d   :  { %v4196_v49 = vpop.f32.mrb[56].mxu0 }
0x198e   :  { %v8544_v50 = vpop.f32.mrb[57].mxu0  ;;  %v4586_v51 = vsel %vm308_vm5, %v4196_v49, -inf }
0x198f   :  { %4587 = vmax.xlane.f32.xlu0 %v4586_v51 }
0x1991   :  { %v4272_v52 = vpop.f32.mrb[58].mxu0 }
0x1992   :  { %v8549_v53 = vpop.f32.mrb[59].mxu0  ;;  %v4589_v54 = vsel %vm308_vm5, %v4272_v52, -inf }
0x1993   :  { %4590 = vmax.xlane.f32.xlu0 %v4589_v54 }
0x1995   :  { %v4348_v55 = vpop.f32.mrb[60].mxu0  ;;  %v4500_v22 = vpop.f32.mrb[32].mxu1 }
0x1996   :  { %v8554_v56 = vpop.f32.mrb[61].mxu0  ;;  %v8564_v58 = vpop.f32.mrb[33].mxu1  ;;  %v4592_v9 = vsel %vm308_vm5, %v4348_v55, -inf  ;;  %v4598_v62 = vsel %vm308_vm5, %v4500_v22, -inf }
0x1997   :  { %4593 = vmax.xlane.f32.xlu1 %v4592_v9 }
0x1999   :  { %v4424_v60 = vpop.f32.mrb[62].mxu0 }
0x199a   :  { %v8559_v61 = vpop.f32.mrb[63].mxu0  ;;  %v4595_v63 = vsel %vm308_vm5, %v4424_v60, -inf }
0x199b   :  { %4599 = vmax.xlane.f32.xlu1 %v4598_v62  ;;  %4596 = vmax.xlane.f32.xlu0 %v4595_v63 }
0x199d   :  { %v4576_v0 = vpop.f32.mrb[64].mxu0 }
0x199e   :  { %v8569_v1 = vpop.f32.mrb[65].mxu0  ;;  %v4601_v2 = vsel %vm308_vm5, %v4576_v0, -inf }
0x199f   :  { %4602 = vmax.xlane.f32.xlu0 %v4601_v2 }
0x19ac   :  { %4676 = vrot.lane.b32.xlu1 %v10084_v28, %s10784_s19 }
0x19b0   :  { %4828 = vrot.lane.b32.xlu1 %v10106_v29, %s10784_s19  ;;  %v4582_v5 = vpop.xlane.xlu0 %4581 }
0x19b1   :  { %v4604_v7 = vsub.f32 %v4044_v41, %v4582_v5 }
0x19b3   :  { %v4612_v10 = vmul.f32 1.442695, %v4604_v7 }
0x19b4   :  { %4904 = vrot.lane.b32.xlu1 %v10102_v13, %s10784_s19 }
0x19b5   :  { %4752 = vrot.lane.b32.xlu0 %v10082_v26, %s10784_s19 }
0x19b8   :  { %5056 = vrot.lane.b32.xlu1 %v10117_v34, %s10784_s19 }
0x19b9   :  { %4980 = vrot.lane.b32.xlu0 %v10112_v32, %s10784_s19  ;;  %v4585_v3 = vpop.xlane.xlu1 %4584 }
0x19ba   :  { %v4605_v4 = vsub.f32 %v4120_v44, %v4585_v3 }
0x19bc   :  { %v4614_v8 = vmul.f32 1.442695, %v4605_v4 }
0x19be   :  { %9169 = vpow2.f32 %v4614_v8 }
0x19bf   :  { %9171 = vpow2.f32 %v4612_v10 }
0x19c8   :  { %v10194_v11 = vpop.eup %9169 }
0x19c9   :  { %v4631_v12 = vsel %vm308_vm5, %v10194_v11, 0.0  ;;  %v10198_v16 = vpop.eup %9171 }
0x19ca   :  { %v4628_v17 = vsel %vm308_vm5, %v10198_v16, 0.0 }
0x19d8   :  { %4632 = vadd.xlane.f32.xlu0 %v4631_v12 }
0x19dc   :  { %4629 = vadd.xlane.f32.xlu1 %v4628_v17 }
0x1a1c   :  { %v4588_v18 = vpop.xlane.xlu0 %4587 }
0x1a1d   :  { %v4606_v19 = vsub.f32 %v4196_v49, %v4588_v18 }
0x1a1f   :  { %v4616_v20 = vmul.f32 1.442695, %v4606_v19 }
0x1a20   :  { %v4591_v21 = vpop.xlane.xlu0 %4590 }
0x1a21   :  { %9173 = vpow2.f32 %v4616_v20  ;;  %v4607_v59 = vsub.f32 %v4272_v52, %v4591_v21 }
0x1a23   :  { %v4618_v23 = vmul.f32 1.442695, %v4607_v59 }
0x1a24   :  { %v4594_v24 = vpop.xlane.xlu1 %4593 }
0x1a25   :  { %9175 = vpow2.f32 %v4618_v23  ;;  %v4608_v25 = vsub.f32 %v4348_v55, %v4594_v24 }
0x1a27   :  { %v4620_v34 = vmul.f32 1.442695, %v4608_v25 }
0x1a28   :  { %v4597_v26 = vpop.xlane.xlu0 %4596  ;;  %v4600_v27 = vpop.xlane.xlu1 %4599 }
0x1a29   :  { %v4609_v28 = vsub.f32 %v4424_v60, %v4597_v26  ;;  %v4610_v13 = vsub.f32 %v4500_v22, %v4600_v27  ;;  %v7807_v26 = vld [vmem:[%s10756_s6 + $0x40] sm:$0xff]  ;;  %v7808_v27 = vld [vmem:[%s10756_s6 + $0x48] sm:$0xff] }
0x1a2b   :  { %v9174_v29 = vpop.eup %9173  ;;  %v4622_v32 = vmul.f32 1.442695, %v4609_v28  ;;  %v4624_v33 = vmul.f32 1.442695, %v4610_v13  ;;  %v8959_v13 = vpack.c.bf16 %v7808_v27, %v7807_v26  ;;  %v7831_v27 = vld [vmem:[%s10762_s12 + $0x120] sm:$0xff] }
0x1a2c   :  { %v4603_v36 = vpop.xlane.xlu0 %4602  ;;  %v4677_v37 = vpop.permute.xlu1 %4676  ;;  %v4634_v15 = vsel %vm308_vm5, %v9174_v29, 0.0 }
0x1a2d   :  { %9177 = vpow2.f32 %v4622_v32  ;;  %v4611_v38 = vsub.f32 %v4576_v0, %v4603_v36  ;;  %4635 = vadd.xlane.f32.xlu1 %v4634_v15  ;;  %8571 = vmatpush3.msra.mxu1 %v4677_v37 }
0x1a2e   :  { %9179 = vpow2.f32 %v4624_v33  ;;  %8580 = vmatprep.subr.mxu1 %v9270_v6  ;;  %v7809_v33 = vld [vmem:[%s10756_s6 + $0x50] sm:$0xff] }
0x1a2f   :  { %v9176_v39 = vpop.eup %9175  ;;  %v4626_v57 = vmul.f32 1.442695, %v4611_v38  ;;  %9181 = vpow2.f32 %v4620_v34  ;;  %v7810_v34 = vld [vmem:[%s10756_s6 + $0x58] sm:$0xff] }
0x1a30   :  { %v4753_v40 = vpop.permute.xlu0 %4752  ;;  %v4637_v41 = vsel %vm308_vm5, %v9176_v39, 0.0  ;;  %v4829_v52 = vpop.permute.xlu1 %4828  ;;  %v8963_v36 = vpack.c.bf16 %v7810_v34, %v7809_v33  ;;  %v7835_v34 = vld [vmem:[%s10762_s12 + $0x140] sm:$0xff] }
0x1a31   :  { %9183 = vpow2.f32 %v4626_v57  ;;  %8576 = vmatpush3.msra.mxu0 %v4753_v40  ;;  %4638 = vadd.xlane.f32.xlu0 %v4637_v41 }
0x1a32   :  { %8585 = vmatprep.subr.mxu0 %v9270_v6 }
0x1a34   :  { %v4905_v53 = vpop.permute.xlu1 %4904  ;;  %v4981_v54 = vpop.permute.xlu0 %4980 }
0x1a37   :  { %v9178_v42 = vpop.eup %9177 }
0x1a38   :  { %v10206_v43 = vpop.eup %9179  ;;  %v4643_v44 = vsel %vm308_vm5, %v9178_v42, 0.0  ;;  %v5057_v55 = vpop.permute.xlu1 %5056 }
0x1a39   :  { %4644 = vadd.xlane.f32.xlu0 %v4643_v44  ;;  %v4646_v45 = vsel %vm308_vm5, %v10206_v43, 0.0  ;;  %v9182_v46 = vpop.eup %9181 }
0x1a3a   :  { %4647 = vadd.xlane.f32.xlu1 %v4646_v45  ;;  %v4640_v51 = vsel %vm308_vm5, %v9182_v46, 0.0 }
0x1a3b   :  { %v9184_v49 = vpop.eup %9183 }
0x1a3c   :  { %v4649_v50 = vsel %vm308_vm5, %v9184_v49, 0.0 }
0x1a3d   :  { %4650 = vadd.xlane.f32.xlu0 %v4649_v50 }
0x1a3e   :  { %4641 = vadd.xlane.f32.xlu1 %v4640_v51 }
0x1a4f   :  { %5208 = vrot.lane.b32.xlu1 %v10126_v35, %s10784_s19 }
0x1a53   :  { %5132 = vrot.lane.b32.xlu0 %v10110_v31, %s10784_s19 }
0x1a65   :  { %v4633_v22 = vpop.xlane.xlu0 %4632 }
0x1a66   :  { %9185 = vrcp.f32 %v4633_v22 }
0x1a69   :  { %v4630_v56 = vpop.xlane.xlu1 %4629 }
0x1a6a   :  { %9187 = vrcp.f32 %v4630_v56  ;;  %v7812_v56 = vld [vmem:[%s10757_s7 + $0x2] ss:$0 sm:$0xff] }
0x1a70   :  { %v9186_v58 = vpop.eup %9185 }
0x1a71   :  { %v4669_v9 = vmul.f32 %v9186_v58, %v10194_v11 }
0x1a73   :  { %8578 = vmatmul.mubr.msk.f32.vlgmr.msra.gmra.mrb[66].mxu0 %vm308_vm5, %v4669_v9 }
0x1a74   :  { %v9188_v60 = vpop.eup %9187  ;;  %8586 = vmatpush3.msra.mxu0 %v4905_v53  ;;  %8587 = vmatprep.mubr.msk.f32.mxu0 %vm9274_vm4, %v9270_v6 }
0x1a75   :  { %v4668_v31 = vmul.f32 %v9188_v60, %v10198_v16  ;;  %8595 = vmatprep.subr.mxu0 %v9270_v6 }
0x1a77   :  { %8573 = vmatmul.mubr.msk.f32.vlgmr.msra.gmra.mrb[34].mxu1 %vm308_vm5, %v4668_v31 }
0x1a78   :  { %8581 = vmatpush3.msra.mxu1 %v4829_v52  ;;  %8582 = vmatprep.mubr.msk.f32.mxu1 %vm9274_vm4, %v9270_v6 }
0x1a79   :  { %8590 = vmatprep.subr.mxu1 %v9270_v6 }
0x1aba   :  { %v4636_v35 = vpop.xlane.xlu1 %4635 }
0x1abb   :  { %9189 = vrcp.f32 %v4636_v35 }
0x1abe   :  { %v4639_v61 = vpop.xlane.xlu0 %4638 }
0x1abf   :  { %9191 = vrcp.f32 %v4639_v61 }
0x1ac5   :  { %v9190_v62 = vpop.eup %9189 }
0x1ac6   :  { %v4670_v63 = vmul.f32 %v9190_v62, %v9174_v29  ;;  %v4645_v0 = vpop.xlane.xlu0 %4644 }
0x1ac7   :  { %9193 = vrcp.f32 %v4645_v0  ;;  %v4648_v1 = vpop.xlane.xlu1 %4647 }
0x1ac8   :  { %8583 = vmatmul.mubr.msk.f32.vlgmr.msra.gmra.mrb[36].mxu1 %vm308_vm5, %v4670_v63 }
0x1ac9   :  { %v9192_v2 = vpop.eup %9191  ;;  %8591 = vmatpush3.msra.mxu1 %v4981_v54  ;;  %8592 = vmatprep.mubr.msk.f32.mxu1 %vm9274_vm4, %v9270_v6 }
0x1aca   :  { %v4671_v3 = vmul.f32 %v9192_v2, %v9176_v39  ;;  %v4651_v4 = vpop.xlane.xlu0 %4650  ;;  %8600 = vmatprep.subr.mxu1 %v9270_v6 }
0x1acb   :  { %9195 = vrcp.f32 %v4651_v4  ;;  %v4642_v5 = vpop.xlane.xlu1 %4641 }
0x1acc   :  { %9197 = vrcp.f32 %v4642_v5  ;;  %8588 = vmatmul.mubr.msk.f32.vlgmr.msra.gmra.mrb[68].mxu0 %vm308_vm5, %v4671_v3 }
0x1acd   :  { %8596 = vmatpush3.msra.mxu0 %v5057_v55  ;;  %8597 = vmatprep.mubr.msk.f32.mxu0 %vm9274_vm4, %v9270_v6  ;;  %9199 = vrcp.f32 %v4648_v1 }
0x1ace   :  { %8605 = vmatprep.subr.mxu0 %v9270_v6  ;;  %v5133_v19 = vpop.permute.xlu0 %5132 }
0x1acf   :  { %v5209_v10 = vpop.permute.xlu1 %5208 }
0x1ad1   :  { %v9194_v7 = vpop.eup %9193 }
0x1ad2   :  { %v4673_v8 = vmul.f32 %v9194_v7, %v9178_v42 }
0x1ad4   :  { %8598 = vmatmul.mubr.msk.f32.vlgmr.msra.gmra.mrb[70].mxu0 %vm308_vm5, %v4673_v8 }
0x1ad5   :  { %v9196_v11 = vpop.eup %9195  ;;  %8606 = vmatpush3.msra.mxu0 %v5209_v10  ;;  %8607 = vmatprep.mubr.msk.f32.mxu0 %vm9274_vm4, %v9270_v6 }
0x1ad6   :  { %v9198_v12 = vpop.eup %9197  ;;  %v4675_v16 = vmul.f32 %v9196_v11, %v9184_v49 }
0x1ad7   :  { %v4672_v17 = vmul.f32 %v9198_v12, %v9182_v46  ;;  %v9200_v18 = vpop.eup %9199  ;;  %v7819_v12 = vld [vmem:[%s10760_s10 + $0x40] sm:$0xff] }
0x1ad8   :  { %8608 = vmatmul.mubr.msk.f32.vlgmr.msra.gmra.mrb[72].mxu0 %vm308_vm5, %v4675_v16  ;;  %v4674_v20 = vmul.f32 %v9200_v18, %v10206_v43  ;;  %v7820_v16 = vld [vmem:[%s10760_s10 + $0x48] sm:$0xff]  ;;  %v7821_v18 = vld [vmem:[%s10760_s10 + $0x50] sm:$0xff] }
0x1ad9   :  { %8593 = vmatmul.mubr.msk.f32.vlgmr.msra.gmra.mrb[38].mxu1 %vm308_vm5, %v4672_v17  ;;  %v8967_v17 = vpack.c.bf16 %v7820_v16, %v7819_v12 }
0x1ada   :  { %8601 = vmatpush3.msra.mxu1 %v5133_v19  ;;  %8602 = vmatprep.mubr.msk.f32.mxu1 %vm9274_vm4, %v9270_v6  ;;  %v7822_v19 = vld [vmem:[%s10760_s10 + $0x58] sm:$0xff] }
0x1adb   :  { %8960 = vmatprep.subr.bf16.mxu1 %v8959_v13  ;;  %8968 = vmatprep.subr.bf16.mxu0 %v8967_v17 }
0x1adc   :  { %8970 = vmatpush3.bf16.msra.mxu0 %v8967_v17 }
0x1add   :  { %8603 = vmatmul.mubr.msk.f32.vlgmr.msra.gmra.mrb[40].mxu1 %vm308_vm5, %v4674_v20  ;;  %v8971_v20 = vpack.c.bf16 %v7822_v19, %v7821_v18 }
0x1ade   :  { %8962 = vmatpush3.bf16.msra.mxu1 %v8959_v13 }
0x1adf   :  { %8964 = vmatprep.subr.bf16.mxu1 %v8963_v36  ;;  %8972 = vmatprep.subr.bf16.mxu0 %v8971_v20 }
0x1ae0   :  { %8974 = vmatpush3.bf16.msra.mxu0 %v8971_v20 }
0x1ae2   :  { %8966 = vmatpush3.bf16.msra.mxu1 %v8963_v36  ;;  %v7836_v36 = vld [vmem:[%s10762_s12 + $0x148] sm:$0xff] }
0x1b46   :  { %v4824_v21 = vpop.f32.mrb[66].mxu0 }
0x1b47   :  { %v8579_v59 = vpop.f32.mrb[67].mxu0 }
0x1b48   :  { %v7828_v59 = vld [vmem:[%s10762_s12 + $0x108] sm:$0xff] }
0x1b4a   :  { %v4748_v23 = vpop.f32.mrb[34].mxu1 }
0x1b4b   :  { %v8574_v24 = vpop.f32.mrb[35].mxu1 }
0x1b9b   :  { %v4900_v25 = vpop.f32.mrb[36].mxu1 }
0x1b9c   :  { %5286 = vrot.lane.b32.xlu0 %v4900_v25, %s10785_s24  ;;  %v8584_v28 = vpop.f32.mrb[37].mxu1  ;;  %v7830_v25 = vld [vmem:[%s10762_s12 + $0x118] sm:$0xff] }
0x1b9d   :  { %v7832_v28 = vld [vmem:[%s10762_s12 + $0x128] sm:$0xff] }
0x1b9e   :  { %v8983_v13 = vpack.c.bf16 %v7832_v28, %v7831_v27  ;;  %v7849_v28 = vld [vmem:[%s10754_s4 + $0x60] sm:$0xff] }
0x1b9f   :  { %v4976_v29 = vpop.f32.mrb[68].mxu0 }
0x1ba0   :  { %5288 = vrot.lane.b32.xlu1 %v4976_v29, %s10785_s24  ;;  %v8589_v32 = vpop.f32.mrb[69].mxu0  ;;  %v7833_v29 = vld [vmem:[%s10762_s12 + $0x130] sm:$0xff] }
0x1ba1   :  { %v7834_v32 = vld [vmem:[%s10762_s12 + $0x138] sm:$0xff] }
0x1ba2   :  { %v8987_v33 = vpack.c.bf16 %v7834_v32, %v7833_v29  ;;  %v7851_v32 = vld [vmem:[%s10754_s4 + $0x70] sm:$0xff] }
0x1ba7   :  { %v5128_v37 = vpop.f32.mrb[70].mxu0 }
0x1ba8   :  { %5296 = vrot.lane.b32.xlu1 %v5128_v37, %s10782_s21  ;;  %v8599_v15 = vpop.f32.mrb[71].mxu0  ;;  %v8991_v37 = vpack.c.bf16 %v7836_v36, %v7835_v34 }
0x1ba9   :  { %v7837_v15 = vld [vmem:[%s10762_s12 + $0x150] sm:$0xff] }
0x1bab   :  { %v5280_v38 = vpop.f32.mrb[72].mxu0 }
0x1bac   :  { %v5052_v39 = vpop.f32.mrb[38].mxu1  ;;  %5304 = vrot.lane.b32.xlu1 %v5280_v38, %s10783_s22  ;;  %v8609_v57 = vpop.f32.mrb[73].mxu0  ;;  %v7838_v38 = vld [vmem:[%s10762_s12 + $0x158] sm:$0xff] }
0x1bad   :  { %5294 = vrot.lane.b32.xlu0 %v5052_v39, %s10782_s21  ;;  %v8594_v40 = vpop.f32.mrb[39].mxu1  ;;  %v8995_v39 = vpack.c.bf16 %v7838_v38, %v7837_v15  ;;  %v7839_v57 = vld [vmem:[%s10762_s12 + $0x160] sm:$0xff] }
0x1bae   :  { %v7840_v40 = vld [vmem:[%s10762_s12 + $0x168] sm:$0xff] }
0x1bb0   :  { %v5204_v41 = vpop.f32.mrb[40].mxu1 }
0x1bb1   :  { %5302 = vrot.lane.b32.xlu0 %v5204_v41, %s10783_s22  ;;  %v8604_v42 = vpop.f32.mrb[41].mxu1  ;;  %v8999_v41 = vpack.c.bf16 %v7840_v40, %v7839_v57 }
0x1c0e   :  { %v5287_v44 = vpop.permute.xlu0 %5286 }
0x1c0f   :  { %v5308_v49 = vsel %vm308_vm5, %v4748_v23, %v5287_v44  ;;  %v7829_v23 = vld [vmem:[%s10762_s12 + $0x110] sm:$0xff] }
0x1c10   :  { %v8979_v26 = vpack.c.bf16 %v7830_v25, %v7829_v23 }
0x1c12   :  { %v5289_v43 = vpop.permute.xlu1 %5288 }
0x1c13   :  { %v5309_v51 = vsel %vm308_vm5, %v4824_v21, %v5289_v43  ;;  %v7827_v21 = vld [vmem:[%s10762_s12 + $0x100] sm:$0xff] }
0x1c14   :  { %v8975_v24 = vpack.c.bf16 %v7828_v59, %v7827_v21 }
0x1c16   :  { %8976 = vmatprep.subr.bf16.mxu1 %v8975_v24 }
0x1c1a   :  { %v5297_v45 = vpop.permute.xlu1 %5296 }
0x1c1b   :  { %v5311_v54 = vsel %vm72_vm0, %v5309_v51, %v5297_v45  ;;  %v7817_v51 = vld [vmem:[%s10758_s8 + $0x2] ss:$0 sm:$0xff] }
0x1c1e   :  { %v5305_v50 = vpop.permute.xlu1 %5304 }
0x1c1f   :  { %v5295_v46 = vpop.permute.xlu0 %5294  ;;  %v5313_v22 = vsel %vm1647_vm6, %v5311_v54, %v5305_v50 }
0x1c20   :  { %v5310_v52 = vsel %vm72_vm0, %v5308_v49, %v5295_v46 }
0x1c23   :  { %v5303_v53 = vpop.permute.xlu0 %5302 }
0x1c24   :  { %v5312_v55 = vsel %vm1647_vm6, %v5310_v52, %v5303_v53  ;;  %v7818_v53 = vld [vmem:[%s10759_s9 + $0x2] ss:$0 sm:$0xff] }
0x1c25   :  { %8618 = vmatprep.mubr.msk.f32.mxu1 %vm156_vm3, %v5312_v55 }
0x1c26   :  { %8619 = vmatmul.mubr.msk.f32.vlgmr.msra.gmra.mrb[42].mxu1 %vm156_vm3, %v5313_v22 }
0x1c27   :  { %8978 = vmatpush3.bf16.msra.mxu1 %v8975_v24 }
0x1c28   :  { %8980 = vmatprep.subr.bf16.mxu1 %v8979_v26 }
0x1c2b   :  { %8982 = vmatpush3.bf16.msra.mxu1 %v8979_v26 }
0x1c2c   :  { %8984 = vmatprep.subr.bf16.mxu1 %v8983_v13 }
0x1c2f   :  { %8986 = vmatpush3.bf16.msra.mxu1 %v8983_v13  ;;  %v7850_v13 = vld [vmem:[%s10754_s4 + $0x68] sm:$0xff] }
0x1c30   :  { %8988 = vmatprep.subr.bf16.mxu1 %v8987_v33  ;;  %v9007_v29 = vpack.c.bf16 %v7850_v13, %v7849_v28 }
0x1c32   :  { %9008 = vmatprep.subr.bf16.mxu0 %v9007_v29 }
0x1c33   :  { %8990 = vmatpush3.bf16.msra.mxu1 %v8987_v33  ;;  %v7852_v33 = vld [vmem:[%s10754_s4 + $0x78] sm:$0xff] }
0x1c34   :  { %8992 = vmatprep.subr.bf16.mxu1 %v8991_v37  ;;  %v9011_v34 = vpack.c.bf16 %v7852_v33, %v7851_v32 }
0x1c37   :  { %8994 = vmatpush3.bf16.msra.mxu1 %v8991_v37 }
0x1c38   :  { %8996 = vmatprep.subr.bf16.mxu1 %v8995_v39 }
0x1c3b   :  { %8998 = vmatpush3.bf16.msra.mxu1 %v8995_v39 }
0x1c3c   :  { %9000 = vmatprep.subr.bf16.mxu1 %v8999_v41 }
0x1c3f   :  { %9002 = vmatpush3.bf16.msra.mxu1 %v8999_v41  ;;  %v7847_v41 = vld [vmem:[%s10752_s2 + $0x3] ss:$0 sm:$0xff] }
0x1cf9   :  { %v8620_v58 = vpop.f32.mrb[42].mxu1 }
0x1cfa   :  { %v5405_v9 = vadd.f32 %v8620_v58, %v7812_v56  ;;  %v5399_v60 = vpop.f32.mrb[43].mxu1 }
0x1cfb   :  { %v5400_v31 = vadd.f32 %v7812_v56, %v5399_v60  ;;  %v7841_v60 = vld [vmem:[%s10762_s12 + $0x170] sm:$0xff] }
0x1cfc   :  { %v10274_v35 = vadd.f32 %v5405_v9, %v10043_v47 }
0x1cfd   :  { %v10277_v61 = vadd.f32 %v5400_v31, %v10046_v48  ;;  %v7842_v31 = vld [vmem:[%s10762_s12 + $0x178] sm:$0xff] }
0x1cfe   :  { %v5417_v62 = vsel %vm156_vm3, %v10274_v35, 0.0 }
0x1cff   :  { %5418 = vadd.xlane.f32.xlu1 %v5417_v62  ;;  %v5414_v63 = vsel %vm156_vm3, %v10277_v61, 0.0  ;;  %v9003_v62 = vpack.c.bf16 %v7842_v31, %v7841_v60 }
0x1d00   :  { %5415 = vadd.xlane.f32.xlu0 %v5414_v63  ;;  %v7824_v63 = vld [vmem:[%s10761_s11 + $0x2] ss:$0 sm:$0xff] }
0x1d01   :  { %9004 = vmatprep.subr.bf16.mxu1 %v9003_v62 }
0x1d02   :  { %9006 = vmatpush3.bf16.msra.mxu1 %v9003_v62 }
0x1d03   :  { %8708 = vmatprep.subr.mxu1 %v9270_v6 }
0x1d8c   :  { %v5419_v0 = vpop.xlane.xlu1 %5418 }
0x1d8d   :  { %v5421_v1 = vmul.f32 0.03125, %v5419_v0  ;;  %v5416_v2 = vpop.xlane.xlu0 %5415 }
0x1d8e   :  { %v5420_v3 = vmul.f32 0.03125, %v5416_v2 }
0x1d8f   :  { %v10284_v4 = vsub.f32 %v10274_v35, %v5421_v1 }
0x1d90   :  { %v5422_v5 = vsub.f32 %v10277_v61, %v5420_v3 }
0x1d91   :  { %v5425_v10 = vmul.f32 %v10284_v4, %v10284_v4 }
0x1d92   :  { %v5424_v7 = vmul.f32 %v5422_v5, %v5422_v5 }
0x1d93   :  { %v5429_v11 = vsel %vm156_vm3, %v5425_v10, 0.0 }
0x1d94   :  { %v5426_v8 = vsel %vm156_vm3, %v5424_v7, 0.0  ;;  %v7844_v7 = vld [vmem:[%s10763_s13 + $0x2] ss:$0 sm:$0xff] }
0x1d95   :  { %5427 = vadd.xlane.f32.xlu0 %v5426_v8 }
0x1d99   :  { %5430 = vadd.xlane.f32.xlu0 %v5429_v11 }
0x1e22   :  { %v5428_v42 = vpop.xlane.xlu0 %5427 }
0x1e23   :  { %v5432_v43 = vmul.f32 0.03125, %v5428_v42 }
0x1e25   :  { %v5434_v44 = vadd.f32 1e-05, %v5432_v43 }
0x1e26   :  { %v5431_v45 = vpop.xlane.xlu0 %5430 }
0x1e27   :  { %9201 = vrsqrt.f32 %v5434_v44  ;;  %v5433_v46 = vmul.f32 0.03125, %v5431_v45  ;;  %v7848_v45 = vld [vmem:[%s10753_s3 + $0x3] ss:$0 sm:$0xff]  ;;  %s10786_s3 = smov 112  }
0x1e29   :  { %v5435_v49 = vadd.f32 1e-05, %v5433_v46 }
0x1e2b   :  { %9203 = vrsqrt.f32 %v5435_v49 }
0x1e31   :  { %v9202_v50 = vpop.eup %9201 }
0x1e32   :  { %v5438_v52 = vmul.f32 %v9202_v50, %v5422_v5 }
0x1e34   :  { %v5446_v54 = vmul.f32 %v7817_v51, %v5438_v52  ;;  %v7854_v52 = vld [vmem:[%s10755_s5 + $0x3] ss:$0 sm:$0xff] }
0x1e35   :  { %v9204_v55 = vpop.eup %9203 }
0x1e36   :  { %v5439_v22 = vmul.f32 %v9204_v55, %v10284_v4  ;;  %v5454_v56 = vadd.f32 %v7818_v53, %v5446_v54 }
0x1e38   :  { %v5447_v58 = vmul.f32 %v7817_v51, %v5439_v22  ;;  %8629 = vmatprep.mubr.msk.f32.mxu0 %vm156_vm3, %v5454_v56 }
0x1e3a   :  { %v5455_v9 = vadd.f32 %v7818_v53, %v5447_v58 }
0x1e3c   :  { %8630 = vmatmul.mubr.msk.f32.vlgmr.msra.gmra.mrb[74].mxu0 %vm156_vm3, %v5455_v9 }
0x1e3d   :  { %9010 = vmatpush3.bf16.msra.mxu0 %v9007_v29 }
0x1e3e   :  { %9012 = vmatprep.subr.bf16.mxu0 %v9011_v34 }
0x1e41   :  { %9014 = vmatpush3.bf16.msra.mxu0 %v9011_v34 }
0x1e42   :  { %8678 = vmatprep.subr.mxu0 %v9270_v6 }
0x1f0f   :  { %v8631_v0 = vpop.f32.mrb[74].mxu0 }
0x1f10   :  { %v5547_v1 = vadd.f32 %v8631_v0, %v7824_v63  ;;  %v5541_v2 = vpop.f32.mrb[75].mxu0 }
0x1f11   :  { %v5542_v3 = vadd.f32 %v7824_v63, %v5541_v2 }
0x1f12   :  { %v5551_v5 = vmax.f32 %v5547_v1, 0.0 }
0x1f13   :  { %v5550_v4 = vmax.f32 %v5542_v3, 0.0 }
0x1f15   :  { %8664 = vmatprep.mubr.f32.mxu1 %v5550_v4 }
0x1f16   :  { %8665 = vmatmul.mubr.f32.vlgmr.msra.gmra.mrb[44].mxu1 %v5551_v5 }
0x1f17   :  { %8710 = vmatprep.mubr.msk.f32.mxu1 %vm9274_vm4, %v9270_v6 }
0x1fe9   :  { %v8666_v8 = vpop.f32.mrb[44].mxu1 }
0x1fea   :  { %v5649_v10 = vadd.f32 %v8666_v8, %v7844_v7  ;;  %v5643_v11 = vpop.f32.mrb[45].mxu1 }
0x1feb   :  { %v5644_v12 = vadd.f32 %v7844_v7, %v5643_v11 }
0x1fec   :  { %v10370_v16 = vadd.f32 %v5649_v10, %v10274_v35 }
0x1fed   :  { %v10373_v17 = vadd.f32 %v5644_v12, %v10277_v61 }
0x1fee   :  { %v5661_v18 = vsel %vm156_vm3, %v10370_v16, 0.0 }
0x1fef   :  { %5662 = vadd.xlane.f32.xlu0 %v5661_v18  ;;  %v5658_v19 = vsel %vm156_vm3, %v10373_v17, 0.0 }
0x1ff0   :  { %5659 = vadd.xlane.f32.xlu1 %v5658_v19 }
0x207c   :  { %v5663_v20 = vpop.xlane.xlu0 %5662 }
0x207d   :  { %v5665_v21 = vmul.f32 0.03125, %v5663_v20  ;;  %v5660_v59 = vpop.xlane.xlu1 %5659 }
0x207e   :  { %v5664_v23 = vmul.f32 0.03125, %v5660_v59 }
0x207f   :  { %v5667_v24 = vsub.f32 %v10370_v16, %v5665_v21 }
0x2080   :  { %v5666_v35 = vsub.f32 %v10373_v17, %v5664_v23 }
0x2081   :  { %v5669_v25 = vmul.f32 %v5667_v24, %v5667_v24 }
0x2082   :  { %v5668_v26 = vmul.f32 %v5666_v35, %v5666_v35 }
0x2083   :  { %v5673_v61 = vsel %vm156_vm3, %v5669_v25, 0.0 }
0x2084   :  { %5674 = vadd.xlane.f32.xlu0 %v5673_v61  ;;  %v5670_v27 = vsel %vm156_vm3, %v5668_v26, 0.0 }
0x2085   :  { %5671 = vadd.xlane.f32.xlu1 %v5670_v27 }
0x2111   :  { %v5675_v36 = vpop.xlane.xlu0 %5674 }
0x2112   :  { %v5677_v37 = vmul.f32 0.03125, %v5675_v36  ;;  %v5672_v15 = vpop.xlane.xlu1 %5671 }
0x2113   :  { %v5676_v38 = vmul.f32 0.03125, %v5672_v15 }
0x2114   :  { %v5679_v39 = vadd.f32 1e-05, %v5677_v37 }
0x2115   :  { %v5678_v57 = vadd.f32 1e-05, %v5676_v38 }
0x2116   :  { %9205 = vrsqrt.f32 %v5679_v39 }
0x2117   :  { %9207 = vrsqrt.f32 %v5678_v57 }
0x2120   :  { %v9206_v40 = vpop.eup %9205 }
0x2121   :  { %v9208_v42 = vpop.eup %9207  ;;  %v5683_v43 = vmul.f32 %v9206_v40, %v5667_v24 }
0x2122   :  { %v5682_v44 = vmul.f32 %v9208_v42, %v5666_v35 }
0x2123   :  { %v5691_v46 = vmul.f32 %v7847_v41, %v5683_v43 }
0x2124   :  { %v5690_v49 = vmul.f32 %v7847_v41, %v5682_v44 }
0x2125   :  { %v5699_v51 = vadd.f32 %v7848_v45, %v5691_v46 }
0x2126   :  { %v5698_v50 = vadd.f32 %v7848_v45, %v5690_v49 }
0x2128   :  { %8675 = vmatprep.mubr.msk.f32.mxu0 %vm156_vm3, %v5698_v50 }
0x2129   :  { %8676 = vmatmul.mubr.msk.f32.vlgmr.msra.gmra.mrb[76].mxu0 %vm156_vm3, %v5699_v51 }
0x212a   :  { %8680 = vmatprep.mubr.msk.f32.mxu0 %vm9274_vm4, %v9270_v6 }
0x21fc   :  { %v8677_v53 = vpop.f32.mrb[76].mxu0 }
0x21fd   :  { %v10409_v54 = vadd.f32 %v8677_v53, %v7854_v52  ;;  %v5785_v55 = vpop.f32.mrb[77].mxu0 }
0x21fe   :  { %v10411_v22 = vadd.f32 %v7854_v52, %v5785_v55 }
0x21ff   :  { %5798 = vrot.lane.b32.xlu0 %v10409_v54, %s9271_s28 }
0x2200   :  { %5796 = vrot.lane.b32.xlu1 %v10411_v22, %s9271_s28 }
0x2203   :  { %5804 = vrot.lane.b32.xlu0 %v10411_v22, %s9272_s29 }
0x2204   :  { %5800 = vrot.lane.b32.xlu1 %v10411_v22, %s10786_s3 }
0x2207   :  { %5808 = vrot.lane.b32.xlu0 %v10411_v22, %s10787_s1 }
0x2208   :  { %5802 = vrot.lane.b32.xlu1 %v10409_v54, %s10786_s3 }
0x220c   :  { %5806 = vrot.lane.b32.xlu1 %v10409_v54, %s9272_s29 }
0x2210   :  { %5884 = vrot.lane.b32.xlu1 %v10409_v54, %s10787_s1 }
0x2271   :  { %v10429_v56 = vpop.permute.xlu0 %5798 }
0x2272   :  { %6036 = vrot.lane.b32.xlu1 %v10429_v56, %s10787_s1  ;;  %v10433_v58 = vpop.permute.xlu1 %5796 }
0x2273   :  { %5960 = vrot.lane.b32.xlu0 %v10433_v58, %s10787_s1 }
0x2275   :  { %v10437_v9 = vpop.permute.xlu0 %5804 }
0x2276   :  { %v10439_v60 = vpop.permute.xlu1 %5800 }
0x2277   :  { %6112 = vrot.lane.b32.xlu0 %v10439_v60, %s10787_s1 }
0x2279   :  { %v5809_v31 = vpop.permute.xlu0 %5808 }
0x227a   :  { %8679 = vmatpush3.xpose.msk.msra.mxu0 %vm308_vm5, %v5809_v31  ;;  %v10444_v62 = vpop.permute.xlu1 %5802 }
0x227b   :  { %6264 = vrot.lane.b32.xlu0 %v10437_v9, %s10787_s1  ;;  %6188 = vrot.lane.b32.xlu1 %v10444_v62, %s10787_s1 }
0x227c   :  { %8683 = vmatprep.subr.mxu0 %v9270_v6 }
0x227d   :  { %8681 = vmatmul.mubr.msk.f32.vlgmr.msra.gmra.mrb[78].mxu0 %vm308_vm5, %v10411_v22 }
0x227e   :  { %v10453_v63 = vpop.permute.xlu1 %5806  ;;  %8685 = vmatprep.mubr.msk.f32.mxu0 %vm9274_vm4, %v9270_v6 }
0x227f   :  { %6340 = vrot.lane.b32.xlu1 %v10453_v63, %s10787_s1 }
0x2282   :  { %v5885_v0 = vpop.permute.xlu1 %5884 }
0x2283   :  { %8684 = vmatpush3.xpose.msk.msra.mxu0 %vm308_vm5, %v5885_v0 }
0x2284   :  { %8688 = vmatprep.subr.mxu0 %v9270_v6 }
0x2286   :  { %8686 = vmatmul.mubr.msk.f32.vlgmr.msra.gmra.mrb[80].mxu0 %vm308_vm5, %v10409_v54 }
0x2287   :  { %8690 = vmatprep.mubr.msk.f32.mxu0 %vm9274_vm4, %v9270_v6 }
0x22e4   :  { %v6037_v2 = vpop.permute.xlu1 %6036 }
0x22e5   :  { %v5961_v1 = vpop.permute.xlu0 %5960 }
0x22e6   :  { %8689 = vmatpush3.xpose.msk.msra.mxu0 %vm308_vm5, %v5961_v1 }
0x22e7   :  { %8693 = vmatprep.subr.mxu0 %v9270_v6 }
0x22e9   :  { %v6113_v3 = vpop.permute.xlu0 %6112  ;;  %8691 = vmatmul.mubr.msk.f32.vlgmr.msra.gmra.mrb[82].mxu0 %vm308_vm5, %v10433_v58 }
0x22ea   :  { %8694 = vmatpush3.xpose.msk.msra.mxu0 %vm308_vm5, %v6037_v2  ;;  %8695 = vmatprep.mubr.msk.f32.mxu0 %vm9274_vm4, %v9270_v6 }
0x22eb   :  { %8698 = vmatprep.subr.mxu0 %v9270_v6 }
0x22ed   :  { %v6265_v4 = vpop.permute.xlu0 %6264  ;;  %8696 = vmatmul.mubr.msk.f32.vlgmr.msra.gmra.mrb[84].mxu0 %vm308_vm5, %v10429_v56  ;;  %v6189_v5 = vpop.permute.xlu1 %6188 }
0x22ee   :  { %8699 = vmatpush3.xpose.msk.msra.mxu0 %vm308_vm5, %v6113_v3  ;;  %8709 = vmatpush3.xpose.msk.msra.mxu1 %vm308_vm5, %v6265_v4 }
0x22ef   :  { %8700 = vmatprep.mubr.msk.f32.mxu0 %vm9274_vm4, %v9270_v6  ;;  %8703 = vmatprep.subr.mxu0 %v9270_v6 }
0x22f0   :  { %8718 = vmatprep.subr.mxu1 %v9270_v6 }
0x22f1   :  { %8701 = vmatmul.mubr.msk.f32.vlgmr.msra.gmra.mrb[86].mxu0 %vm308_vm5, %v10439_v60  ;;  %8711 = vmatmul.mubr.msk.f32.vlgmr.msra.gmra.mrb[46].mxu1 %vm308_vm5, %v10437_v9  ;;  %v6341_v7 = vpop.permute.xlu1 %6340 }
0x22f2   :  { %8704 = vmatpush3.xpose.msk.msra.mxu0 %vm308_vm5, %v6189_v5  ;;  %8705 = vmatprep.mubr.msk.f32.mxu0 %vm9274_vm4, %v9270_v6 }
0x22f3   :  { %8713 = vmatprep.subr.mxu0 %v9270_v6  ;;  %8720 = vmatprep.mubr.msk.f32.mxu1 %vm9274_vm4, %v9270_v6 }
0x22f5   :  { %8706 = vmatmul.mubr.msk.f32.vlgmr.msra.gmra.mrb[88].mxu0 %vm308_vm5, %v10444_v62 }
0x22f6   :  { %8714 = vmatpush3.xpose.msk.msra.mxu0 %vm308_vm5, %v6341_v7  ;;  %8715 = vmatprep.mubr.msk.f32.mxu0 %vm9274_vm4, %v9270_v6 }
0x22f7   :  { %8723 = vmatprep.subr.mxu0 %v9270_v6 }
0x22f9   :  { %8716 = vmatmul.mubr.msk.f32.vlgmr.msra.gmra.mrb[90].mxu0 %vm308_vm5, %v10453_v63 }
0x22fa   :  { %8725 = vmatprep.mubr.msk.f32.mxu0 %vm9274_vm4, %v9270_v6 }
0x2350   :  { %v5880_v8 = vpop.f32.mrb[78].mxu0 }
0x2351   :  { %v8682_v10 = vpop.f32.mrb[79].mxu0  ;;  %v6416_v11 = vsel %vm308_vm5, %v5880_v8, -inf }
0x2352   :  { %6417 = vmax.xlane.f32.xlu0 %v6416_v11 }
0x2359   :  { %v5956_v12 = vpop.f32.mrb[80].mxu0 }
0x235a   :  { %v8687_v18 = vpop.f32.mrb[81].mxu0  ;;  %v6419_v19 = vsel %vm308_vm5, %v5956_v12, -inf }
0x235b   :  { %6420 = vmax.xlane.f32.xlu1 %v6419_v19 }
0x23bc   :  { %v6032_v20 = vpop.f32.mrb[82].mxu0 }
0x23bd   :  { %v8692_v21 = vpop.f32.mrb[83].mxu0  ;;  %v6422_v59 = vsel %vm308_vm5, %v6032_v20, -inf }
0x23be   :  { %6423 = vmax.xlane.f32.xlu0 %v6422_v59 }
0x23c0   :  { %v6108_v23 = vpop.f32.mrb[84].mxu0 }
0x23c1   :  { %v8697_v24 = vpop.f32.mrb[85].mxu0  ;;  %v6425_v35 = vsel %vm308_vm5, %v6108_v23, -inf }
0x23c2   :  { %6426 = vmax.xlane.f32.xlu0 %v6425_v35 }
0x23c4   :  { %v6184_v25 = vpop.f32.mrb[86].mxu0  ;;  %v6336_v26 = vpop.f32.mrb[46].mxu1 }
0x23c5   :  { %v8702_v61 = vpop.f32.mrb[87].mxu0  ;;  %v8712_v27 = vpop.f32.mrb[47].mxu1  ;;  %v6428_v28 = vsel %vm308_vm5, %v6184_v25, -inf  ;;  %v6434_v32 = vsel %vm308_vm5, %v6336_v26, -inf }
0x23c6   :  { %6429 = vmax.xlane.f32.xlu1 %v6428_v28 }
0x23c8   :  { %v6260_v13 = vpop.f32.mrb[88].mxu0 }
0x23c9   :  { %v8707_v29 = vpop.f32.mrb[89].mxu0  ;;  %v6431_v33 = vsel %vm308_vm5, %v6260_v13, -inf }
0x23ca   :  { %6435 = vmax.xlane.f32.xlu1 %v6434_v32  ;;  %6432 = vmax.xlane.f32.xlu0 %v6431_v33 }
0x23cc   :  { %v6412_v34 = vpop.f32.mrb[90].mxu0 }
0x23cd   :  { %v8717_v36 = vpop.f32.mrb[91].mxu0  ;;  %v6437_v37 = vsel %vm308_vm5, %v6412_v34, -inf }
0x23ce   :  { %6438 = vmax.xlane.f32.xlu0 %v6437_v37 }
0x23db   :  { %6512 = vrot.lane.b32.xlu1 %v10411_v22, %s10784_s19 }
0x23df   :  { %6664 = vrot.lane.b32.xlu1 %v10433_v58, %s10784_s19  ;;  %v6418_v39 = vpop.xlane.xlu0 %6417 }
0x23e0   :  { %v6440_v57 = vsub.f32 %v5880_v8, %v6418_v39 }
0x23e2   :  { %v6448_v41 = vmul.f32 1.442695, %v6440_v57 }
0x23e3   :  { %6740 = vrot.lane.b32.xlu1 %v10429_v56, %s10784_s19 }
0x23e4   :  { %6588 = vrot.lane.b32.xlu0 %v10409_v54, %s10784_s19 }
0x23e7   :  { %6892 = vrot.lane.b32.xlu1 %v10444_v62, %s10784_s19 }
0x23e8   :  { %6816 = vrot.lane.b32.xlu0 %v10439_v60, %s10784_s19  ;;  %v6421_v15 = vpop.xlane.xlu1 %6420 }
0x23e9   :  { %v6441_v38 = vsub.f32 %v5956_v12, %v6421_v15 }
0x23eb   :  { %v6450_v40 = vmul.f32 1.442695, %v6441_v38 }
0x23ed   :  { %9209 = vpow2.f32 %v6450_v40 }
0x23ee   :  { %9211 = vpow2.f32 %v6448_v41 }
0x23f7   :  { %v10521_v42 = vpop.eup %9209 }
0x23f8   :  { %v6467_v43 = vsel %vm308_vm5, %v10521_v42, 0.0  ;;  %v10525_v44 = vpop.eup %9211 }
0x23f9   :  { %v6464_v45 = vsel %vm308_vm5, %v10525_v44, 0.0 }
0x2407   :  { %6468 = vadd.xlane.f32.xlu0 %v6467_v43 }
0x240b   :  { %6465 = vadd.xlane.f32.xlu1 %v6464_v45 }
0x244b   :  { %v6424_v46 = vpop.xlane.xlu0 %6423 }
0x244c   :  { %v6442_v49 = vsub.f32 %v6032_v20, %v6424_v46 }
0x244e   :  { %v6452_v50 = vmul.f32 1.442695, %v6442_v49 }
0x244f   :  { %v6427_v51 = vpop.xlane.xlu0 %6426 }
0x2450   :  { %9213 = vpow2.f32 %v6452_v50  ;;  %v6443_v52 = vsub.f32 %v6108_v23, %v6427_v51 }
0x2452   :  { %v6454_v53 = vmul.f32 1.442695, %v6443_v52 }
0x2453   :  { %v6430_v54 = vpop.xlane.xlu1 %6429 }
0x2454   :  { %9215 = vpow2.f32 %v6454_v53  ;;  %v6444_v55 = vsub.f32 %v6184_v25, %v6430_v54 }
0x2456   :  { %v6456_v1 = vmul.f32 1.442695, %v6444_v55 }
0x2457   :  { %v6433_v22 = vpop.xlane.xlu0 %6432  ;;  %v6436_v56 = vpop.xlane.xlu1 %6435 }
0x2458   :  { %v6445_v58 = vsub.f32 %v6260_v13, %v6433_v22  ;;  %v6446_v60 = vsub.f32 %v6336_v26, %v6436_v56 }
0x245a   :  { %v9214_v31 = vpop.eup %9213  ;;  %v6458_v62 = vmul.f32 1.442695, %v6445_v58  ;;  %v6460_v0 = vmul.f32 1.442695, %v6446_v60  ;;  %v7881_v58 = vld [vmem:[%s10756_s6 + $0x60] sm:$0xff]  ;;  %v7882_v60 = vld [vmem:[%s10756_s6 + $0x68] sm:$0xff] }
0x245b   :  { %v6439_v2 = vpop.xlane.xlu0 %6438  ;;  %v6513_v3 = vpop.permute.xlu1 %6512  ;;  %v6470_v4 = vsel %vm308_vm5, %v9214_v31, 0.0 }
0x245c   :  { %9217 = vpow2.f32 %v6458_v62  ;;  %v6447_v5 = vsub.f32 %v6412_v34, %v6439_v2  ;;  %6471 = vadd.xlane.f32.xlu1 %v6470_v4  ;;  %8719 = vmatpush3.msra.mxu1 %v6513_v3  ;;  %v7884_v2 = vld [vmem:[%s10756_s6 + $0x78] sm:$0xff] }
0x245d   :  { %9219 = vpow2.f32 %v6460_v0  ;;  %8728 = vmatprep.subr.mxu1 %v9270_v6 }
0x245e   :  { %v9216_v7 = vpop.eup %9215  ;;  %v6462_v8 = vmul.f32 1.442695, %v6447_v5  ;;  %9221 = vpow2.f32 %v6456_v1  ;;  %v7883_v1 = vld [vmem:[%s10756_s6 + $0x70] sm:$0xff] }
0x245f   :  { %v6589_v10 = vpop.permute.xlu0 %6588  ;;  %v6473_v11 = vsel %vm308_vm5, %v9216_v7, 0.0  ;;  %v6665_v35 = vpop.permute.xlu1 %6664  ;;  %v9019_v3 = vpack.c.bf16 %v7884_v2, %v7883_v1  ;;  %v7906_v1 = vld [vmem:[%s10762_s12 + $0x1a8] sm:$0xff] }
0x2460   :  { %9223 = vpow2.f32 %v6462_v8  ;;  %8724 = vmatpush3.msra.mxu0 %v6589_v10  ;;  %6474 = vadd.xlane.f32.xlu0 %v6473_v11 }
0x2461   :  { %8733 = vmatprep.subr.mxu0 %v9270_v6 }
0x2463   :  { %v6741_v25 = vpop.permute.xlu1 %6740  ;;  %v6817_v26 = vpop.permute.xlu0 %6816 }
0x2466   :  { %v9218_v12 = vpop.eup %9217 }
0x2467   :  { %v10533_v18 = vpop.eup %9219  ;;  %v6479_v19 = vsel %vm308_vm5, %v9218_v12, 0.0  ;;  %v6893_v61 = vpop.permute.xlu1 %6892 }
0x2468   :  { %6480 = vadd.xlane.f32.xlu0 %v6479_v19  ;;  %v6482_v20 = vsel %vm308_vm5, %v10533_v18, 0.0  ;;  %v9222_v21 = vpop.eup %9221 }
0x2469   :  { %6483 = vadd.xlane.f32.xlu1 %v6482_v20  ;;  %v6476_v24 = vsel %vm308_vm5, %v9222_v21, 0.0 }
0x246a   :  { %v9224_v59 = vpop.eup %9223 }
0x246b   :  { %v6485_v23 = vsel %vm308_vm5, %v9224_v59, 0.0 }
0x246c   :  { %6486 = vadd.xlane.f32.xlu0 %v6485_v23 }
0x246d   :  { %6477 = vadd.xlane.f32.xlu1 %v6476_v24 }
0x247e   :  { %7044 = vrot.lane.b32.xlu1 %v10453_v63, %s10784_s19 }
0x2482   :  { %6968 = vrot.lane.b32.xlu0 %v10437_v9, %s10784_s19 }
0x2494   :  { %v6469_v27 = vpop.xlane.xlu0 %6468 }
0x2495   :  { %9225 = vrcp.f32 %v6469_v27 }
0x2498   :  { %v6466_v28 = vpop.xlane.xlu1 %6465 }
0x2499   :  { %9227 = vrcp.f32 %v6466_v28 }
0x249f   :  { %v9226_v13 = vpop.eup %9225 }
0x24a0   :  { %v6505_v29 = vmul.f32 %v9226_v13, %v10521_v42  ;;  %v7886_v13 = vld [vmem:[%s10757_s7 + $0x3] ss:$0 sm:$0xff] }
0x24a2   :  { %8726 = vmatmul.mubr.msk.f32.vlgmr.msra.gmra.mrb[92].mxu0 %vm308_vm5, %v6505_v29 }
0x24a3   :  { %v9228_v32 = vpop.eup %9227  ;;  %8734 = vmatpush3.msra.mxu0 %v6741_v25  ;;  %8735 = vmatprep.mubr.msk.f32.mxu0 %vm9274_vm4, %v9270_v6 }
0x24a4   :  { %v6504_v9 = vmul.f32 %v9228_v32, %v10525_v44  ;;  %8743 = vmatprep.subr.mxu0 %v9270_v6 }
0x24a6   :  { %8721 = vmatmul.mubr.msk.f32.vlgmr.msra.gmra.mrb[48].mxu1 %vm308_vm5, %v6504_v9 }
0x24a7   :  { %8729 = vmatpush3.msra.mxu1 %v6665_v35  ;;  %8730 = vmatprep.mubr.msk.f32.mxu1 %vm9274_vm4, %v9270_v6 }
0x24a8   :  { %8738 = vmatprep.subr.mxu1 %v9270_v6 }
0x24e9   :  { %v6472_v63 = vpop.xlane.xlu1 %6471 }
0x24ea   :  { %9229 = vrcp.f32 %v6472_v63 }
0x24ed   :  { %v6475_v33 = vpop.xlane.xlu0 %6474 }
0x24ee   :  { %9231 = vrcp.f32 %v6475_v33 }
0x24f4   :  { %v9230_v34 = vpop.eup %9229 }
0x24f5   :  { %v6506_v36 = vmul.f32 %v9230_v34, %v9214_v31  ;;  %v6481_v37 = vpop.xlane.xlu0 %6480  ;;  %v9015_v31 = vpack.c.bf16 %v7882_v60, %v7881_v58  ;;  %v7902_v58 = vld [vmem:[%s10762_s12 + $0x188] sm:$0xff]  ;;  %v7903_v60 = vld [vmem:[%s10762_s12 + $0x190] sm:$0xff] }
0x24f6   :  { %9233 = vrcp.f32 %v6481_v37  ;;  %v6484_v15 = vpop.xlane.xlu1 %6483 }
0x24f7   :  { %8731 = vmatmul.mubr.msk.f32.vlgmr.msra.gmra.mrb[50].mxu1 %vm308_vm5, %v6506_v36 }
0x24f8   :  { %v9232_v38 = vpop.eup %9231  ;;  %8739 = vmatpush3.msra.mxu1 %v6817_v26  ;;  %8740 = vmatprep.mubr.msk.f32.mxu1 %vm9274_vm4, %v9270_v6 }
0x24f9   :  { %v6507_v39 = vmul.f32 %v9232_v38, %v9216_v7  ;;  %v6487_v57 = vpop.xlane.xlu0 %6486  ;;  %8748 = vmatprep.subr.mxu1 %v9270_v6 }
0x24fa   :  { %9235 = vrcp.f32 %v6487_v57  ;;  %v6478_v40 = vpop.xlane.xlu1 %6477 }
0x24fb   :  { %9237 = vrcp.f32 %v6478_v40  ;;  %8736 = vmatmul.mubr.msk.f32.vlgmr.msra.gmra.mrb[94].mxu0 %vm308_vm5, %v6507_v39 }
0x24fc   :  { %8744 = vmatpush3.msra.mxu0 %v6893_v61  ;;  %8745 = vmatprep.mubr.msk.f32.mxu0 %vm9274_vm4, %v9270_v6  ;;  %9239 = vrcp.f32 %v6484_v15 }
0x24fd   :  { %8753 = vmatprep.subr.mxu0 %v9270_v6  ;;  %v6969_v51 = vpop.permute.xlu0 %6968 }
0x24fe   :  { %v7045_v43 = vpop.permute.xlu1 %7044 }
0x2500   :  { %v9234_v41 = vpop.eup %9233 }
0x2501   :  { %v6509_v42 = vmul.f32 %v9234_v41, %v9218_v12 }
0x2503   :  { %8746 = vmatmul.mubr.msk.f32.vlgmr.msra.gmra.mrb[96].mxu0 %vm308_vm5, %v6509_v42 }
0x2504   :  { %v9236_v44 = vpop.eup %9235  ;;  %8754 = vmatpush3.msra.mxu0 %v7045_v43  ;;  %8755 = vmatprep.mubr.msk.f32.mxu0 %vm9274_vm4, %v9270_v6 }
0x2505   :  { %v9238_v45 = vpop.eup %9237  ;;  %v6511_v46 = vmul.f32 %v9236_v44, %v9224_v59 }
0x2506   :  { %v6508_v49 = vmul.f32 %v9238_v45, %v9222_v21  ;;  %v9240_v50 = vpop.eup %9239 }
0x2507   :  { %8756 = vmatmul.mubr.msk.f32.vlgmr.msra.gmra.mrb[98].mxu0 %vm308_vm5, %v6511_v46  ;;  %v6510_v52 = vmul.f32 %v9240_v50, %v10533_v18  ;;  %v7893_v46 = vld [vmem:[%s10760_s10 + $0x60] sm:$0xff] }
0x2508   :  { %8741 = vmatmul.mubr.msk.f32.vlgmr.msra.gmra.mrb[52].mxu1 %vm308_vm5, %v6508_v49  ;;  %v7894_v49 = vld [vmem:[%s10760_s10 + $0x68] sm:$0xff] }
0x2509   :  { %8749 = vmatpush3.msra.mxu1 %v6969_v51  ;;  %8750 = vmatprep.mubr.msk.f32.mxu1 %vm9274_vm4, %v9270_v6  ;;  %v9023_v50 = vpack.c.bf16 %v7894_v49, %v7893_v46  ;;  %v7895_v51 = vld [vmem:[%s10760_s10 + $0x70] sm:$0xff] }
0x250a   :  { %9016 = vmatprep.subr.bf16.mxu1 %v9015_v31 }
0x250b   :  { %9024 = vmatprep.subr.bf16.mxu0 %v9023_v50 }
0x250c   :  { %8751 = vmatmul.mubr.msk.f32.vlgmr.msra.gmra.mrb[54].mxu1 %vm308_vm5, %v6510_v52  ;;  %9026 = vmatpush3.bf16.msra.mxu0 %v9023_v50  ;;  %v7896_v52 = vld [vmem:[%s10760_s10 + $0x78] sm:$0xff] }
0x250d   :  { %9018 = vmatpush3.bf16.msra.mxu1 %v9015_v31  ;;  %v7904_v31 = vld [vmem:[%s10762_s12 + $0x198] sm:$0xff] }
0x250e   :  { %9020 = vmatprep.subr.bf16.mxu1 %v9019_v3 }
0x2511   :  { %9022 = vmatpush3.bf16.msra.mxu1 %v9019_v3  ;;  %v7907_v3 = vld [vmem:[%s10762_s12 + $0x1b0] sm:$0xff] }
0x2575   :  { %v6660_v53 = vpop.f32.mrb[92].mxu0 }
0x2576   :  { %v8727_v54 = vpop.f32.mrb[93].mxu0 }
0x2577   :  { %v7490_v54 = vld [vmem:[%s10764_s14] sm:$0xff] }
0x2579   :  { %v6584_v55 = vpop.f32.mrb[48].mxu1 }
0x257a   :  { %v8722_v22 = vpop.f32.mrb[49].mxu1 }
0x25ca   :  { %v6736_v56 = vpop.f32.mrb[50].mxu1 }
0x25cb   :  { %7122 = vrot.lane.b32.xlu0 %v6736_v56, %s10785_s24  ;;  %v8732_v6 = vpop.f32.mrb[51].mxu1  ;;  %v7901_v56 = vld [vmem:[%s10762_s12 + $0x180] sm:$0xff] }
0x25cc   :  { %v9031_v6 = vpack.c.bf16 %v7902_v58, %v7901_v56  ;;  %v7918_v58 = vld [vmem:[%s10763_s13 + $0x3] ss:$0 sm:$0xff] }
0x25ce   :  { %v6812_v62 = vpop.f32.mrb[94].mxu0  ;;  %9032 = vmatprep.subr.bf16.mxu1 %v9031_v6 }
0x25cf   :  { %7124 = vrot.lane.b32.xlu1 %v6812_v62, %s10785_s24  ;;  %v8737_v0 = vpop.f32.mrb[95].mxu0  ;;  %v9035_v62 = vpack.c.bf16 %v7904_v31, %v7903_v60 }
0x25d0   :  { %v7905_v0 = vld [vmem:[%s10762_s12 + $0x1a0] sm:$0xff] }
0x25d1   :  { %v9039_v2 = vpack.c.bf16 %v7906_v1, %v7905_v0 }
0x25d6   :  { %v6964_v4 = vpop.f32.mrb[96].mxu0 }
0x25d7   :  { %7132 = vrot.lane.b32.xlu1 %v6964_v4, %s10782_s21  ;;  %v8747_v5 = vpop.f32.mrb[97].mxu0  ;;  %v7908_v4 = vld [vmem:[%s10762_s12 + $0x1b8] sm:$0xff] }
0x25d8   :  { %v9043_v5 = vpack.c.bf16 %v7908_v4, %v7907_v3 }
0x25da   :  { %v7116_v7 = vpop.f32.mrb[98].mxu0 }
0x25db   :  { %v6888_v8 = vpop.f32.mrb[52].mxu1  ;;  %7140 = vrot.lane.b32.xlu1 %v7116_v7, %s10783_s22  ;;  %v8757_v10 = vpop.f32.mrb[99].mxu0  ;;  %v7909_v7 = vld [vmem:[%s10762_s12 + $0x1c0] sm:$0xff] }
0x25dc   :  { %7130 = vrot.lane.b32.xlu0 %v6888_v8, %s10782_s21  ;;  %v8742_v11 = vpop.f32.mrb[53].mxu1  ;;  %v7910_v8 = vld [vmem:[%s10762_s12 + $0x1c8] sm:$0xff] }
0x25dd   :  { %v9047_v10 = vpack.c.bf16 %v7910_v8, %v7909_v7  ;;  %v7911_v11 = vld [vmem:[%s10762_s12 + $0x1d0] sm:$0xff] }
0x25df   :  { %v7040_v12 = vpop.f32.mrb[54].mxu1 }
0x25e0   :  { %7138 = vrot.lane.b32.xlu0 %v7040_v12, %s10783_s22  ;;  %v8752_v18 = vpop.f32.mrb[55].mxu1  ;;  %v7912_v12 = vld [vmem:[%s10762_s12 + $0x1d8] sm:$0xff] }
0x25e1   :  { %v9051_v18 = vpack.c.bf16 %v7912_v12, %v7911_v11 }
0x263d   :  { %v7123_v20 = vpop.permute.xlu0 %7122 }
0x263e   :  { %v7144_v23 = vsel %vm308_vm5, %v6584_v55, %v7123_v20  ;;  %v7491_v55 = vld [vmem:[%s10764_s14 + $0x8] sm:$0xff] }
0x263f   :  { %v9063_v22 = vpack.c.bf16 %v7491_v55, %v7490_v54  ;;  %v7914_v20 = vld [vmem:[%s10762_s12 + $0x1e8] sm:$0xff] }
0x2641   :  { %v7125_v19 = vpop.permute.xlu1 %7124 }
0x2642   :  { %v7145_v35 = vsel %vm308_vm5, %v6660_v53, %v7125_v19  ;;  %v9027_v53 = vpack.c.bf16 %v7896_v52, %v7895_v51  ;;  %v7913_v19 = vld [vmem:[%s10762_s12 + $0x1e0] sm:$0xff] }
0x2644   :  { %9028 = vmatprep.subr.bf16.mxu0 %v9027_v53 }
0x2645   :  { %9030 = vmatpush3.bf16.msra.mxu0 %v9027_v53 }
0x2646   :  { %9064 = vmatprep.subr.bf16.mxu0 %v9063_v22 }
0x2649   :  { %v7133_v21 = vpop.permute.xlu1 %7132 }
0x264a   :  { %v7147_v61 = vsel %vm72_vm0, %v7145_v35, %v7133_v21  ;;  %v9055_v21 = vpack.c.bf16 %v7914_v20, %v7913_v19 }
0x264d   :  { %v7141_v24 = vpop.permute.xlu1 %7140 }
0x264e   :  { %v7131_v59 = vpop.permute.xlu0 %7130  ;;  %v7149_v28 = vsel %vm1647_vm6, %v7147_v61, %v7141_v24 }
0x264f   :  { %v7146_v25 = vsel %vm72_vm0, %v7144_v23, %v7131_v59 }
0x2652   :  { %v7139_v26 = vpop.permute.xlu0 %7138 }
0x2653   :  { %v7148_v27 = vsel %vm1647_vm6, %v7146_v25, %v7139_v26 }
0x2654   :  { %8766 = vmatprep.mubr.msk.f32.mxu1 %vm156_vm3, %v7148_v27  ;;  %v7891_v27 = vld [vmem:[%s10758_s8 + $0x3] ss:$0 sm:$0xff] }
0x2655   :  { %8767 = vmatmul.mubr.msk.f32.vlgmr.msra.gmra.mrb[56].mxu1 %vm156_vm3, %v7149_v28 }
0x2656   :  { %9034 = vmatpush3.bf16.msra.mxu1 %v9031_v6 }
0x2657   :  { %9036 = vmatprep.subr.bf16.mxu1 %v9035_v62 }
0x265a   :  { %9038 = vmatpush3.bf16.msra.mxu1 %v9035_v62 }
0x265b   :  { %9040 = vmatprep.subr.bf16.mxu1 %v9039_v2 }
0x265e   :  { %9042 = vmatpush3.bf16.msra.mxu1 %v9039_v2 }
0x265f   :  { %9044 = vmatprep.subr.bf16.mxu1 %v9043_v5 }
0x2662   :  { %9046 = vmatpush3.bf16.msra.mxu1 %v9043_v5 }
0x2663   :  { %9048 = vmatprep.subr.bf16.mxu1 %v9047_v10 }
0x2666   :  { %9050 = vmatpush3.bf16.msra.mxu1 %v9047_v10 }
0x2667   :  { %9052 = vmatprep.subr.bf16.mxu1 %v9051_v18 }
0x266a   :  { %9054 = vmatpush3.bf16.msra.mxu1 %v9051_v18 }
0x266b   :  { %9056 = vmatprep.subr.bf16.mxu1 %v9055_v21 }
0x266e   :  { %9058 = vmatpush3.bf16.msra.mxu1 %v9055_v21 }
0x2728   :  { %v8768_v29 = vpop.f32.mrb[56].mxu1 }
0x2729   :  { %v7241_v32 = vadd.f32 %v8768_v29, %v7886_v13  ;;  %v7235_v9 = vpop.f32.mrb[57].mxu1 }
0x272a   :  { %v7236_v63 = vadd.f32 %v7886_v13, %v7235_v9  ;;  %v7892_v13 = vld [vmem:[%s10759_s9 + $0x3] ss:$0 sm:$0xff] }
0x272b   :  { %v10601_v33 = vadd.f32 %v7241_v32, %v10370_v16 }
0x272c   :  { %v10604_v34 = vadd.f32 %v7236_v63, %v10373_v17 }
0x272d   :  { %v7253_v36 = vsel %vm156_vm3, %v10601_v33, 0.0 }
0x272e   :  { %7254 = vadd.xlane.f32.xlu1 %v7253_v36  ;;  %v7250_v37 = vsel %vm156_vm3, %v10604_v34, 0.0  ;;  %v7492_v36 = vld [vmem:[%s10764_s14 + $0x10] sm:$0xff] }
0x272f   :  { %7251 = vadd.xlane.f32.xlu0 %v7250_v37  ;;  %v7493_v37 = vld [vmem:[%s10764_s14 + $0x18] sm:$0xff] }
0x27bb   :  { %v7255_v15 = vpop.xlane.xlu1 %7254 }
0x27bc   :  { %v7257_v38 = vmul.f32 0.03125, %v7255_v15  ;;  %v7252_v39 = vpop.xlane.xlu0 %7251 }
0x27bd   :  { %v7256_v57 = vmul.f32 0.03125, %v7252_v39  ;;  %v9067_v39 = vpack.c.bf16 %v7493_v37, %v7492_v36 }
0x27be   :  { %v10611_v40 = vsub.f32 %v10601_v33, %v7257_v38 }
0x27bf   :  { %v10614_v41 = vsub.f32 %v10604_v34, %v7256_v57 }
0x27c0   :  { %v7261_v44 = vmul.f32 %v10611_v40, %v10611_v40 }
0x27c1   :  { %v7260_v42 = vmul.f32 %v10614_v41, %v10614_v41 }
0x27c2   :  { %v7265_v45 = vsel %vm156_vm3, %v7261_v44, 0.0 }
0x27c3   :  { %v7262_v43 = vsel %vm156_vm3, %v7260_v42, 0.0 }
0x27c4   :  { %7263 = vadd.xlane.f32.xlu0 %v7262_v43  ;;  %v7919_v43 = vld [vmem:[%s10765_s15] ss:$0 sm:$0xff]  ;;  %s9280_s15 = smov [#allocation2]  }
0x27c5   :  { %s7644_s3 = sshll.u32 %s9280_s15, 4  ;;  %s7645_s3 = int_to_ptr.vmem [resolvable:$true] %s7644_s3 }
0x27c6   :  { %s9245_s13 = scalar_lea.vmem %s7645_s3, 1024  ;;  %p9250_p1 = scmp.lt.s32.totalorder %s7645_s3, %s7645_s3 }
0x27c7   :  { %p9246_p0 = scmp.ne.s32.totalorder %s7645_s3, %s9245_s13  ;;  %p9251_p2 = scmp.lt.s32.totalorder %s9245_s13, %s9245_s13 }
0x27c8   :  { %7266 = vadd.xlane.f32.xlu0 %v7265_v45 }
0x27c9   :  { %p9252_p3 = por %p9251_p2, %p9250_p1 }
0x27cb   :  { %p9253_p4 = pnand %p9252_p3, %p9246_p0 }
0x2851   :  { %v7264_v59 = vpop.xlane.xlu0 %7263 }
0x2852   :  { %v7268_v23 = vmul.f32 0.03125, %v7264_v59 }
0x2854   :  { %v7270_v24 = vadd.f32 1e-05, %v7268_v23 }
0x2855   :  { %v7267_v35 = vpop.xlane.xlu0 %7266 }
0x2856   :  { %9241 = vrsqrt.f32 %v7270_v24  ;;  %v7269_v25 = vmul.f32 0.03125, %v7267_v35 }
0x2858   :  { %v7271_v26 = vadd.f32 1e-05, %v7269_v25 }
0x285a   :  { %9243 = vrsqrt.f32 %v7271_v26 }
0x2860   :  { %v9242_v61 = vpop.eup %9241 }
0x2861   :  { %v7274_v28 = vmul.f32 %v9242_v61, %v10614_v41 }
0x2863   :  { %v7282_v29 = vmul.f32 %v7891_v27, %v7274_v28 }
0x2864   :  { %v9244_v32 = vpop.eup %9243 }
0x2865   :  { %v7275_v9 = vmul.f32 %v9244_v32, %v10611_v40  ;;  %v7290_v63 = vadd.f32 %v7892_v13, %v7282_v29 }
0x2867   :  { %v7283_v15 = vmul.f32 %v7891_v27, %v7275_v9  ;;  %8777 = vmatprep.mubr.msk.f32.mxu0 %vm156_vm3, %v7290_v63 }
0x2869   :  { %v7291_v38 = vadd.f32 %v7892_v13, %v7283_v15 }
0x286b   :  { %8778 = vmatmul.mubr.msk.f32.vlgmr.msra.gmra.mrb[100].mxu0 %vm156_vm3, %v7291_v38 }
0x286c   :  { %9066 = vmatpush3.bf16.msra.mxu0 %v9063_v22  ;;  %8823 = vmatprep.mubr.msk.f32.mxu0 %vm156_vm3, %v9719_v30  ;;  %v7915_v30 = vld [vmem:[%s10762_s12 + $0x1f0] sm:$0xff] }
0x286d   :  { %9068 = vmatprep.subr.bf16.mxu0 %v9067_v39 }
0x2870   :  { %9070 = vmatpush3.bf16.msra.mxu0 %v9067_v39 }
0x2873   :  { %8824 = vmatmul.mubr.msk.f32.vlgmr.msra.gmra.mrb[102].mxu0 %vm156_vm3, %v9716_v14  ;;  %v7916_v14 = vld [vmem:[%s10762_s12 + $0x1f8] sm:$0xff] }
0x2874   :  { %8826 = vmatprep.mubr.msk.f32.mxu0 %vm156_vm3, %v10046_v48  ;;  %v9059_v57 = vpack.c.bf16 %v7916_v14, %v7915_v30 }
0x2876   :  { %9060 = vmatprep.subr.bf16.mxu1 %v9059_v57 }
0x2877   :  { %8827 = vmatmul.mubr.msk.f32.gmra.mrb[104].mxu0 %vm156_vm3, %v10043_v47  ;;  %9062 = vmatpush3.bf16.msra.mxu1 %v9059_v57  ;;  %v7898_v47 = vld [vmem:[%s10761_s11 + $0x3] ss:$0 sm:$0xff] }
0x2878   :  { %8829 = vmatprep.mubr.msk.f32.mxu0 %vm156_vm3, %v10373_v17 }
0x287b   :  { %8830 = vmatmul.mubr.msk.f32.gmra.mrb[106].mxu0 %vm156_vm3, %v10370_v16 }
0x293e   :  { %v8779_v48 = vpop.f32.mrb[100].mxu0 }
0x293f   :  { %v7383_v17 = vadd.f32 %v8779_v48, %v7898_v47  ;;  %v7377_v40 = vpop.f32.mrb[101].mxu0 }
0x2940   :  { %v7378_v41 = vadd.f32 %v7898_v47, %v7377_v40 }
0x2941   :  { %v7387_v42 = vmax.f32 %v7383_v17, 0.0 }
0x2942   :  { %v7386_v16 = vmax.f32 %v7378_v41, 0.0 }
0x2944   :  { %8812 = vmatprep.mubr.f32.mxu1 %v7386_v16 }
0x2945   :  { %8813 = vmatmul.mubr.f32.vlgmr.msra.gmra.mrb[58].mxu1 %v7387_v42 }
0x2946   :  { %v8825_v44 = vpop.f32.mrb[102].mxu0 }
0x2947   :  { %v7597_v45 = vadd.f32 %v8825_v44, %v7919_v43  ;;  %v7591_v46 = vpop.f32.mrb[103].mxu0 }
0x2948   :  { %v7592_v49 = vadd.f32 %v7919_v43, %v7591_v46 }
0x2949   :  { %7632 = vst.msk [vmem:[#allocation2 + $0x8] sm:$0xff] %vm7630_vm7, %v7597_v45 }
0x294a   :  { %7631 = vst.msk [vmem:[#allocation2] sm:$0xff] %vm7630_vm7, %v7592_v49  ;;  %v8828_v50 = vpop.f32.mrb[104].mxu0 }
0x294b   :  { %v7607_v51 = vadd.f32 %v8828_v50, %v7919_v43  ;;  %v7601_v52 = vpop.f32.mrb[105].mxu0 }
0x294c   :  { %v7602_v53 = vadd.f32 %v7919_v43, %v7601_v52 }
0x294d   :  { %7634 = vst.msk [vmem:[#allocation2 + $0x18] sm:$0xff] %vm7630_vm7, %v7607_v51 }
0x294e   :  { %7633 = vst.msk [vmem:[#allocation2 + $0x10] sm:$0xff] %vm7630_vm7, %v7602_v53  ;;  %v8831_v54 = vpop.f32.mrb[106].mxu0 }
0x294f   :  { %v7617_v55 = vadd.f32 %v8831_v54, %v7919_v43  ;;  %v7611_v22 = vpop.f32.mrb[107].mxu0 }
0x2950   :  { %v7612_v56 = vadd.f32 %v7919_v43, %v7611_v22 }
0x2951   :  { %7636 = vst.msk [vmem:[#allocation2 + $0x28] sm:$0xff] %vm7630_vm7, %v7617_v55 }
0x2952   :  { %7635 = vst.msk [vmem:[#allocation2 + $0x20] sm:$0xff] %vm7630_vm7, %v7612_v56 }
0x2a18   :  { %v8814_v60 = vpop.f32.mrb[58].mxu1 }
0x2a19   :  { %v7485_v6 = vadd.f32 %v8814_v60, %v7918_v58  ;;  %v7479_v31 = vpop.f32.mrb[59].mxu1 }
0x2a1a   :  { %v7480_v62 = vadd.f32 %v7918_v58, %v7479_v31 }
0x2a1b   :  { %v7489_v1 = vadd.f32 %v7485_v6, %v10601_v33 }
0x2a1c   :  { %v7488_v0 = vadd.f32 %v7480_v62, %v10604_v34 }
0x2a1e   :  { %8832 = vmatprep.mubr.msk.f32.mxu0 %vm156_vm3, %v7488_v0 }
0x2a1f   :  { %8833 = vmatmul.mubr.msk.f32.gmra.mrb[108].mxu0 %vm156_vm3, %v7489_v1 }
0x2af2   :  { %v8834_v2 = vpop.f32.mrb[108].mxu0 }
0x2af3   :  { %v7627_v3 = vadd.f32 %v8834_v2, %v7919_v43  ;;  %v7621_v4 = vpop.f32.mrb[109].mxu0 }
0x2af4   :  { %v7622_v5 = vadd.f32 %v7919_v43, %v7621_v4 }
0x2af5   :  { %7638 = vst.msk [vmem:[#allocation2 + $0x38] sm:$0xff] %vm7630_vm7, %v7627_v3 }
0x2af6   :  { %7637 = vst.msk [vmem:[#allocation2 + $0x30] sm:$0xff] %vm7630_vm7, %v7622_v5 }
0x2af7   :  { %9256 = shalt.err (!%p9253_p4)
}
0x2af8   :  { %s9257_s28 = scalar_lea.hbm %s10766_s16, 1024 }
0x2af9   :  { %p9258_p5 = scmp.ne.s32.totalorder %s10766_s16, %s9257_s28  ;;  %p9261_p6 = scmp.lt.u32.totalorder %s9257_s28, %s10766_s16 }
0x2afb   :  { %p9263_p7 = pnand %p9261_p6, %p9258_p5 }
0x2afd   :  { %9266 = shalt.err (!%p9263_p7)
}
0x2afe   :  { %s9281_s26 = smov 128  }
0x2aff   :  { %7650 = dma.vmem_to_hbm [thread:$0]  %s7645_s3, 1024, %s10766_s16, [#allocation3], %s9281_s26, %s9281_s26, %s10785_s24  }
0x2b00   :  { %9267 = dma.done.wait [#allocation3], 1024  }
0x2b01   :  { %9268 = vsyncadd [#allocation3], 4294966272 }
0x2b02   :  { %7654 = vsyncpa [#allocation3], 1 }

</bundles_post_ra>
